<compile_context>
chip_gen: v7x
topology: tpu7x:2x2x1
jax: 0.10.0
libtpu: 0.0.40
codegen_flags: <defaults>
</compile_context>

<pallas_src>
import functools

import jax
import jax.numpy as jnp
from jax.experimental import pallas as pl
from jax.experimental.pallas import tpu as pltpu


# ----------------------------------------------------------------------------
# Kernels
# ----------------------------------------------------------------------------
def _shuffle_kernel(x_ref, o_ref, *, block_size, s_depth):
    """Matmul-free PixelUnShuffle tile: XLU lane interleave + sublane-strided stores."""
    bs, sd = block_size, s_depth
    _, tH, W = x_ref.shape
    Wo = W * bs
    # Static unroll over the bs output-row phases (bs is a tiny compile-time constant).
    for i in range(bs):
        # The bs channel chunks that land on output rows h*bs + i.
        parts = [x_ref[(i * bs + r) * sd:(i * bs + r + 1) * sd, :, :] for r in range(bs)]
        # Lane interleave: element (w, r) -> output lane w*bs + r.  Pure data movement
        # (lane shuffles); exact for all dtypes, no MXU, no f32 accumulator.
        y = jnp.stack(parts, axis=-1).reshape(sd, tH, Wo)
        # Sublane interleave: rows i, i+bs, i+2*bs, ... of the output tile.
        # TODO(synk): if a v5e bundle dump shows the single vst slot saturating, assemble
        # the full (sd, tH*bs, Wo) tile in-register and issue one dense store instead.
        o_ref[:, pl.ds(i, tH, stride=bs), :] = y


def _matmul_kernel(c_ref, x_ref, o_ref, *, block_size, s_depth):
    """Fallback: demoted one-hot MXU lane scatter (only used if the shuffle path fails)."""
    bs, sd = block_size, s_depth
    _, tH, W = x_ref.shape
    Wo = W * bs
    cdtype = c_ref.dtype
    for i in range(bs):
        # Each r hits disjoint output lanes, so summing the bs dot results is an exact
        # merge; written as one expression (no zero-initialised VMEM accumulator pass).
        y = None
        for r in range(bs):
            chunk = x_ref[(i * bs + r) * sd:(i * bs + r + 1) * sd, :, :].astype(cdtype)
            part = jnp.dot(chunk.reshape(sd * tH, W), c_ref[r],
                           preferred_element_type=jnp.float32)
            y = part if y is None else y + part
        o_ref[:, pl.ds(i, tH, stride=bs), :] = y.reshape(sd, tH, Wo).astype(o_ref.dtype)


# ----------------------------------------------------------------------------
# Generation-aware tiling helpers
# ----------------------------------------------------------------------------
def _vmem_capacity_bytes():
    try:
        info = pltpu.get_tpu_info()
        return int(getattr(info, "vmem_capacity_bytes", 64 * 1024 * 1024))
    except Exception:
        return 64 * 1024 * 1024  # conservative (v7x-sized) default


def _h_tile_candidates(H, align):
    for a in (align, 8):
        cands = [t for t in range(a, H + 1, a) if H % t == 0]
        if cands:
            return cands
    return [H]  # no aligned divisor (small / odd H): single full tile


def _choose_h_tile(H, B, row_bytes, budget_bytes, align, min_steps=4):
    """Largest aligned divisor of H that fits the budget, then shrink until the grid
    has at least `min_steps` steps (pipelining + both v7x TensorCores)."""
    cands = _h_tile_candidates(H, align)
    fit = [t for t in cands if t * row_bytes <= budget_bytes]
    tH = fit[-1] if fit else cands[0]
    while B * (H // tH) < min_steps:
        smaller = [t for t in cands if t < tH]
        if not smaller:
            break
        tH = smaller[-1]
    return tH


# ----------------------------------------------------------------------------
# Wrapper
# ----------------------------------------------------------------------------
def pixel_unshuffle(x, block_size, *, h_tile=None):
    """Pallas TPU implementation of the i-RevNet PixelUnShuffle.forward (NCHW)."""
    B, C, H, W = x.shape
    bs = block_size
    if C % (bs * bs) != 0:
        raise ValueError("channels must be divisible by block_size**2")
    sd = C // (bs * bs)
    Ho, Wo = H * bs, W * bs
    itemsize = jnp.dtype(x.dtype).itemsize

    # --- generation-aware VMEM sizing ---------------------------------------
    vmem_cap = _vmem_capacity_bytes()                      # 64 MiB (v7x) / 128 MiB (v5e/v6e)
    vmem_limit = max(16 * 1024 * 1024,
                     min((vmem_cap * 3) // 5, 96 * 1024 * 1024))   # ~38 MiB v7x, ~76 MiB v5e/v6e

    # Sublane packing: 8 rows of 32-bit, 16 of bf16, 32 of int8.
    align = 8 * max(1, 4 // itemsize)
    if h_tile is None:
        # Input tile and output tile have the same byte size (C*tH*W elems each);
        # x2 for double buffering and ~x2 more for interleave intermediates.
        row_bytes = 6 * C * W * itemsize
        budget = min((vmem_limit * 2) // 5, 16 * 1024 * 1024)
        h_tile = _choose_h_tile(H, B, row_bytes, budget, align)
    tH = h_tile
    if H % tH != 0:
        raise ValueError("h_tile must divide H")
    # TODO(synk): for very large C*W (tH=8 tile alone exceeding the budget) an extra W
    # grid axis would be needed; not required for typical i-RevNet shapes.

    grid = (B, H // tH)
    x_spec = pl.BlockSpec((None, C, tH, W), lambda b, h: (b, 0, h, 0))
    o_spec = pl.BlockSpec((None, sd, tH * bs, Wo), lambda b, h: (b, 0, h, 0))
    out_shape = jax.ShapeDtypeStruct((B, sd, Ho, Wo), x.dtype)
    cparams = pltpu.CompilerParams(
        dimension_semantics=("parallel", "parallel"),
        vmem_limit_bytes=int(vmem_limit),
    )
    # TODO(synk): for W*itemsize < ~512 B the input DMA rows are short and the (8,128)
    # input tiles are lane-padded; a lane-dense (C, tH*W) input view would restore
    # HBM-roofline DMA for very small W.

    # --- primary: matmul-free shuffle kernel --------------------------------
    shuffle_call = pl.pallas_call(
        functools.partial(_shuffle_kernel, block_size=bs, s_depth=sd),
        out_shape=out_shape, grid=grid,
        in_specs=[x_spec], out_specs=o_spec,
        compiler_params=cparams)
    try:
        # Eager call: block here so any Mosaic lowering/compile rejection of the lane
        # interleave surfaces inside this try and we transparently use the fallback.
        return jax.block_until_ready(shuffle_call(x))
    except Exception:
        pass

    # --- fallback: demoted one-hot MXU lane scatter --------------------------
    cdtype = jnp.bfloat16 if x.dtype == jnp.bfloat16 else jnp.float32
    # TODO(synk): integer inputs with |x| >= 2**24 lose precision on this f32 MXU
    # fallback path (the primary shuffle kernel above is exact for all dtypes).
    w_ids = jnp.arange(W, dtype=jnp.int32)[None, :, None]
    ow_ids = jnp.arange(Wo, dtype=jnp.int32)[None, None, :]
    r_ids = jnp.arange(bs, dtype=jnp.int32)[:, None, None]
    cmat = (ow_ids == w_ids * bs + r_ids).astype(cdtype)        # (bs, W, Wo) one-hots
    c_spec = pl.BlockSpec((bs, W, Wo), lambda b, h: (0, 0, 0))  # constant map -> resident
    matmul_call = pl.pallas_call(
        functools.partial(_matmul_kernel, block_size=bs, s_depth=sd),
        out_shape=out_shape, grid=grid,
        in_specs=[c_spec, x_spec], out_specs=o_spec,
        compiler_params=cparams)
    return matmul_call(cmat, x)


# ----------------------------------------------------------------------------
# Pure-JAX reference (verification only) -- mirrors the PyTorch module
# ----------------------------------------------------------------------------
def _reference_pixel_unshuffle(x, bs):
    B, C, H, W = x.shape
    sd = C // (bs * bs)
    x6 = x.reshape(B, bs, bs, sd, H, W)            # (b, i, r, d, h, w)
    y = jnp.transpose(x6, (0, 3, 4, 1, 5, 2))      # (b, d, h, i, w, r)
    return y.reshape(B, sd, H * bs, W * bs)


if __name__ == "__main__":
    block_size = 2
    B, C, H, W = 2, 16, 16, 16            # -> output (2, 4, 32, 32)

    key = jax.random.PRNGKey(0)
    x = jax.random.normal(key, (B, C, H, W), dtype=jnp.float32)

    out = jax.block_until_ready(pixel_unshuffle(x, block_size))

    expected = _reference_pixel_unshuffle(x, block_size)
    assert out.shape == (B, C // (block_size ** 2), H * block_size, W * block_size)
    assert out.dtype == x.dtype
    if not bool(jnp.allclose(out, expected, atol=1e-6, rtol=1e-6)):
        raise AssertionError("Pallas PixelUnShuffle does not match reference")

    print("KERNEL_OK")
</pallas_src>

<mosaic_0001>
module attributes {stable_mosaic.version = 11 : i64} {
  func.func @_shuffle_kernel(%arg0: i32, %arg1: i32, %arg2: memref<1x16x8x16xf32, #tpu.memory_space<vmem>>, %arg3: memref<1x4x16x32xf32, #tpu.memory_space<vmem>>) attributes {dimension_semantics = [#tpu.dimension_semantics<parallel>, #tpu.dimension_semantics<parallel>], iteration_bounds = array<i64: 2, 2>, scalar_prefetch = 0 : i64, scratch_operands = 0 : i64, tpu.core_type = #tpu.core_type<tc>, window_params = [{transform_indices = @transform_0, window_bounds = array<i64: 1, 16, 8, 16>}, {transform_indices = @transform_1, window_bounds = array<i64: 1, 4, 16, 32>}]} {
    %c0 = arith.constant 0 : index
    %c0_0 = arith.constant 0 : index
    %c0_1 = arith.constant 0 : index
    %c0_2 = arith.constant 0 : index
    %0 = vector.load %arg2[%c0, %c0_0, %c0_1, %c0_2] : memref<1x16x8x16xf32, #tpu.memory_space<vmem>>, vector<1x4x8x16xf32>
    %1 = vector.shape_cast %0 : vector<1x4x8x16xf32> to vector<4x8x16xf32>
    %c0_3 = arith.constant 0 : index
    %c4 = arith.constant 4 : index
    %c0_4 = arith.constant 0 : index
    %c0_5 = arith.constant 0 : index
    %2 = vector.load %arg2[%c0_3, %c4, %c0_4, %c0_5] : memref<1x16x8x16xf32, #tpu.memory_space<vmem>>, vector<1x4x8x16xf32>
    %3 = vector.shape_cast %2 : vector<1x4x8x16xf32> to vector<4x8x16xf32>
    %4 = vector.shape_cast %1 : vector<4x8x16xf32> to vector<4x8x16x1xf32>
    %5 = vector.shape_cast %3 : vector<4x8x16xf32> to vector<4x8x16x1xf32>
    %6 = tpu.concatenate %4, %5 in 3 : vector<4x8x16x1xf32>, vector<4x8x16x1xf32> -> vector<4x8x16x2xf32>
    %7 = vector.shape_cast %6 : vector<4x8x16x2xf32> to vector<4x8x32xf32>
    %c0_6 = arith.constant 0 : index
    %c0_7 = arith.constant 0 : index
    %c0_8 = arith.constant 0 : index
    %c0_9 = arith.constant 0 : index
    %8 = tpu.strided_load %arg3[%c0_6, %c0_7, %c0_8, %c0_9] {strides = array<i32: 1, 1, 2, 1>} : memref<1x4x16x32xf32, #tpu.memory_space<vmem>>, vector<1x4x8x32xf32>
    %9 = vector.shape_cast %8 : vector<1x4x8x32xf32> to vector<4x8x32xf32>
    %10 = vector.shape_cast %7 : vector<4x8x32xf32> to vector<1x4x8x32xf32>
    tpu.strided_store %arg3[%c0_6, %c0_7, %c0_8, %c0_9], %10 {strides = array<i32: 1, 1, 2, 1>} : memref<1x4x16x32xf32, #tpu.memory_space<vmem>>, vector<1x4x8x32xf32>
    %c0_10 = arith.constant 0 : index
    %c8 = arith.constant 8 : index
    %c0_11 = arith.constant 0 : index
    %c0_12 = arith.constant 0 : index
    %11 = vector.load %arg2[%c0_10, %c8, %c0_11, %c0_12] : memref<1x16x8x16xf32, #tpu.memory_space<vmem>>, vector<1x4x8x16xf32>
    %12 = vector.shape_cast %11 : vector<1x4x8x16xf32> to vector<4x8x16xf32>
    %c0_13 = arith.constant 0 : index
    %c12 = arith.constant 12 : index
    %c0_14 = arith.constant 0 : index
    %c0_15 = arith.constant 0 : index
    %13 = vector.load %arg2[%c0_13, %c12, %c0_14, %c0_15] : memref<1x16x8x16xf32, #tpu.memory_space<vmem>>, vector<1x4x8x16xf32>
    %14 = vector.shape_cast %13 : vector<1x4x8x16xf32> to vector<4x8x16xf32>
    %15 = vector.shape_cast %12 : vector<4x8x16xf32> to vector<4x8x16x1xf32>
    %16 = vector.shape_cast %14 : vector<4x8x16xf32> to vector<4x8x16x1xf32>
    %17 = tpu.concatenate %15, %16 in 3 : vector<4x8x16x1xf32>, vector<4x8x16x1xf32> -> vector<4x8x16x2xf32>
    %18 = vector.shape_cast %17 : vector<4x8x16x2xf32> to vector<4x8x32xf32>
    %c0_16 = arith.constant 0 : index
    %c0_17 = arith.constant 0 : index
    %c1 = arith.constant 1 : index
    %c0_18 = arith.constant 0 : index
    %19 = tpu.strided_load %arg3[%c0_16, %c0_17, %c1, %c0_18] {strides = array<i32: 1, 1, 2, 1>} : memref<1x4x16x32xf32, #tpu.memory_space<vmem>>, vector<1x4x8x32xf32>
    %20 = vector.shape_cast %19 : vector<1x4x8x32xf32> to vector<4x8x32xf32>
    %21 = vector.shape_cast %18 : vector<4x8x32xf32> to vector<1x4x8x32xf32>
    tpu.strided_store %arg3[%c0_16, %c0_17, %c1, %c0_18], %21 {strides = array<i32: 1, 1, 2, 1>} : memref<1x4x16x32xf32, #tpu.memory_space<vmem>>, vector<1x4x8x32xf32>
    return
  }
  func.func @transform_0(%arg0: i32, %arg1: i32) -> (i32, i32, i32, i32) {
    %c0_i32 = arith.constant 0 : i32
    %c0_i32_0 = arith.constant 0 : i32
    %c0_i32_1 = arith.constant 0 : i32
    return %arg0, %c0_i32, %arg1, %c0_i32_0 : i32, i32, i32, i32
  }
  func.func @transform_1(%arg0: i32, %arg1: i32) -> (i32, i32, i32, i32) {
    %c0_i32 = arith.constant 0 : i32
    %c0_i32_0 = arith.constant 0 : i32
    %c0_i32_1 = arith.constant 0 : i32
    return %arg0, %c0_i32, %arg1, %c0_i32_0 : i32, i32, i32, i32
  }
}

module attributes {stable_mosaic.version = 11 : i64} {
  func.func @_matmul_kernel(%arg0: i32, %arg1: i32, %arg2: memref<2x16x32xf32, #tpu.memory_space<vmem>>, %arg3: memref<1x16x8x16xf32, #tpu.memory_space<vmem>>, %arg4: memref<1x4x16x32xf32, #tpu.memory_space<vmem>>) attributes {dimension_semantics = [#tpu.dimension_semantics<parallel>, #tpu.dimension_semantics<parallel>], iteration_bounds = array<i64: 2, 2>, scalar_prefetch = 0 : i64, scratch_operands = 0 : i64, tpu.core_type = #tpu.core_type<tc>, window_params = [{pipeline_mode = #tpu.pipeline_mode<synchronous>, transform_indices = @transform_0, window_bounds = array<i64: 2, 16, 32>}, {transform_indices = @transform_1, window_bounds = array<i64: 1, 16, 8, 16>}, {transform_indices = @transform_2, window_bounds = array<i64: 1, 4, 16, 32>}]} {
    %c0 = arith.constant 0 : index
    %c0_0 = arith.constant 0 : index
    %c0_1 = arith.constant 0 : index
    %c0_2 = arith.constant 0 : index
    %0 = vector.load %arg3[%c0, %c0_0, %c0_1, %c0_2] : memref<1x16x8x16xf32, #tpu.memory_space<vmem>>, vector<1x4x8x16xf32>
    %1 = vector.shape_cast %0 : vector<1x4x8x16xf32> to vector<4x8x16xf32>
    %2 = vector.shape_cast %1 : vector<4x8x16xf32> to vector<32x16xf32>
    %c0_3 = arith.constant 0 : index
    %c0_4 = arith.constant 0 : index
    %c0_5 = arith.constant 0 : index
    %3 = vector.load %arg2[%c0_3, %c0_4, %c0_5] : memref<2x16x32xf32, #tpu.memory_space<vmem>>, vector<1x16x32xf32>
    %4 = vector.shape_cast %3 : vector<1x16x32xf32> to vector<16x32xf32>
    %cst = arith.constant dense<0.000000e+00> : vector<32x32xf32>
    %5 = tpu.matmul %2, %4, %cst {dimension_numbers = #tpu.dot_dimension_numbers<[1], [0], [0], [1], [0, 0, 1, 1], [], []>} : vector<32x16xf32>, vector<16x32xf32>, vector<32x32xf32> -> vector<32x32xf32>
    %c0_6 = arith.constant 0 : index
    %c4 = arith.constant 4 : index
    %c0_7 = arith.constant 0 : index
    %c0_8 = arith.constant 0 : index
    %6 = vector.load %arg3[%c0_6, %c4, %c0_7, %c0_8] : memref<1x16x8x16xf32, #tpu.memory_space<vmem>>, vector<1x4x8x16xf32>
    %7 = vector.shape_cast %6 : vector<1x4x8x16xf32> to vector<4x8x16xf32>
    %8 = vector.shape_cast %7 : vector<4x8x16xf32> to vector<32x16xf32>
    %c1 = arith.constant 1 : index
    %c0_9 = arith.constant 0 : index
    %c0_10 = arith.constant 0 : index
    %9 = vector.load %arg2[%c1, %c0_9, %c0_10] : memref<2x16x32xf32, #tpu.memory_space<vmem>>, vector<1x16x32xf32>
    %10 = vector.shape_cast %9 : vector<1x16x32xf32> to vector<16x32xf32>
    %cst_11 = arith.constant dense<0.000000e+00> : vector<32x32xf32>
    %11 = tpu.matmul %8, %10, %cst_11 {dimension_numbers = #tpu.dot_dimension_numbers<[1], [0], [0], [1], [0, 0, 1, 1], [], []>} : vector<32x16xf32>, vector<16x32xf32>, vector<32x32xf32> -> vector<32x32xf32>
    %12 = arith.addf %5, %11 : vector<32x32xf32>
    %13 = vector.shape_cast %12 : vector<32x32xf32> to vector<4x8x32xf32>
    %c0_12 = arith.constant 0 : index
    %c0_13 = arith.constant 0 : index
    %c0_14 = arith.constant 0 : index
    %c0_15 = arith.constant 0 : index
    %14 = tpu.strided_load %arg4[%c0_12, %c0_13, %c0_14, %c0_15] {strides = array<i32: 1, 1, 2, 1>} : memref<1x4x16x32xf32, #tpu.memory_space<vmem>>, vector<1x4x8x32xf32>
    %15 = vector.shape_cast %14 : vector<1x4x8x32xf32> to vector<4x8x32xf32>
    %16 = vector.shape_cast %13 : vector<4x8x32xf32> to vector<1x4x8x32xf32>
    tpu.strided_store %arg4[%c0_12, %c0_13, %c0_14, %c0_15], %16 {strides = array<i32: 1, 1, 2, 1>} : memref<1x4x16x32xf32, #tpu.memory_space<vmem>>, vector<1x4x8x32xf32>
    %c0_16 = arith.constant 0 : index
    %c8 = arith.constant 8 : index
    %c0_17 = arith.constant 0 : index
    %c0_18 = arith.constant 0 : index
    %17 = vector.load %arg3[%c0_16, %c8, %c0_17, %c0_18] : memref<1x16x8x16xf32, #tpu.memory_space<vmem>>, vector<1x4x8x16xf32>
    %18 = vector.shape_cast %17 : vector<1x4x8x16xf32> to vector<4x8x16xf32>
    %19 = vector.shape_cast %18 : vector<4x8x16xf32> to vector<32x16xf32>
    %c0_19 = arith.constant 0 : index
    %c0_20 = arith.constant 0 : index
    %c0_21 = arith.constant 0 : index
    %20 = vector.load %arg2[%c0_19, %c0_20, %c0_21] : memref<2x16x32xf32, #tpu.memory_space<vmem>>, vector<1x16x32xf32>
    %21 = vector.shape_cast %20 : vector<1x16x32xf32> to vector<16x32xf32>
    %cst_22 = arith.constant dense<0.000000e+00> : vector<32x32xf32>
    %22 = tpu.matmul %19, %21, %cst_22 {dimension_numbers = #tpu.dot_dimension_numbers<[1], [0], [0], [1], [0, 0, 1, 1], [], []>} : vector<32x16xf32>, vector<16x32xf32>, vector<32x32xf32> -> vector<32x32xf32>
    %c0_23 = arith.constant 0 : index
    %c12 = arith.constant 12 : index
    %c0_24 = arith.constant 0 : index
    %c0_25 = arith.constant 0 : index
    %23 = vector.load %arg3[%c0_23, %c12, %c0_24, %c0_25] : memref<1x16x8x16xf32, #tpu.memory_space<vmem>>, vector<1x4x8x16xf32>
    %24 = vector.shape_cast %23 : vector<1x4x8x16xf32> to vector<4x8x16xf32>
    %25 = vector.shape_cast %24 : vector<4x8x16xf32> to vector<32x16xf32>
    %c1_26 = arith.constant 1 : index
    %c0_27 = arith.constant 0 : index
    %c0_28 = arith.constant 0 : index
    %26 = vector.load %arg2[%c1_26, %c0_27, %c0_28] : memref<2x16x32xf32, #tpu.memory_space<vmem>>, vector<1x16x32xf32>
    %27 = vector.shape_cast %26 : vector<1x16x32xf32> to vector<16x32xf32>
    %cst_29 = arith.constant dense<0.000000e+00> : vector<32x32xf32>
    %28 = tpu.matmul %25, %27, %cst_29 {dimension_numbers = #tpu.dot_dimension_numbers<[1], [0], [0], [1], [0, 0, 1, 1], [], []>} : vector<32x16xf32>, vector<16x32xf32>, vector<32x32xf32> -> vector<32x32xf32>
    %29 = arith.addf %22, %28 : vector<32x32xf32>
    %30 = vector.shape_cast %29 : vector<32x32xf32> to vector<4x8x32xf32>
    %c0_30 = arith.constant 0 : index
    %c0_31 = arith.constant 0 : index
    %c1_32 = arith.constant 1 : index
    %c0_33 = arith.constant 0 : index
    %31 = tpu.strided_load %arg4[%c0_30, %c0_31, %c1_32, %c0_33] {strides = array<i32: 1, 1, 2, 1>} : memref<1x4x16x32xf32, #tpu.memory_space<vmem>>, vector<1x4x8x32xf32>
    %32 = vector.shape_cast %31 : vector<1x4x8x32xf32> to vector<4x8x32xf32>
    %33 = vector.shape_cast %30 : vector<4x8x32xf32> to vector<1x4x8x32xf32>
    tpu.strided_store %arg4[%c0_30, %c0_31, %c1_32, %c0_33], %33 {strides = array<i32: 1, 1, 2, 1>} : memref<1x4x16x32xf32, #tpu.memory_space<vmem>>, vector<1x4x8x32xf32>
    return
  }
  func.func @transform_0(%arg0: i32, %arg1: i32) -> (i32, i32, i32) {
    %c0_i32 = arith.constant 0 : i32
    %c0_i32_0 = arith.constant 0 : i32
    %c0_i32_1 = arith.constant 0 : i32
    %c0_i32_2 = arith.constant 0 : i32
    return %c0_i32, %c0_i32_0, %c0_i32_1 : i32, i32, i32
  }
  func.func @transform_1(%arg0: i32, %arg1: i32) -> (i32, i32, i32, i32) {
    %c0_i32 = arith.constant 0 : i32
    %c0_i32_0 = arith.constant 0 : i32
    %c0_i32_1 = arith.constant 0 : i32
    return %arg0, %c0_i32, %arg1, %c0_i32_0 : i32, i32, i32, i32
  }
  func.func @transform_2(%arg0: i32, %arg1: i32) -> (i32, i32, i32, i32) {
    %c0_i32 = arith.constant 0 : i32
    %c0_i32_0 = arith.constant 0 : i32
    %c0_i32_1 = arith.constant 0 : i32
    return %arg0, %c0_i32, %arg1, %c0_i32_0 : i32, i32, i32, i32
  }
}

</mosaic_0001>

<bundles_post_ra>
// kernel: tpu_custom_call.1
= control target key start
LH: loop header
LB: loop body
LE: loop exit
PB: predicated region body
PF: predicated region fallthrough
CT: control target
= control target key end

     0   :  { %6 = vsyncpa [#allocation3], 0  ;;  %s7474_s0 = inlined_call_operand.hbm [shape: f32[2,16,16,16], index: 0, kind: input, shape index: {}]   ;;  %s7475_s1 = inlined_call_operand.hbm [shape: f32[2,4,32,32], index: 1, kind: output, shape index: {}]  }
   0x1   :  { %8 = vsyncpa [#allocation3 + $0x1], 0 }
   0x2   :  { %9 = vsyncpa [#allocation4], 0 }
   0x3   :  { %11 = vsyncpa [#allocation4 + $0x1], 0  ;;  %s4935_s6 = smov 0   ;;  %s4937_s7 = smov 0  }
   0x4   :  { %s4939_s8 = smov 0   ;;  %s4941_s9 = smov 0  }
   0x5   :  { %s4943_s10 = smov 0   ;;  %s4945_s11 = smov 0  }
   0x6   :  { %s4947_s12 = smov 0   ;;  %s4949_s13 = smov 0  }
   0x7 LB: > { %s4649_s14 = sadd.s32 4294967295, %s4895_s13   ;;  %s4650_s15 = sadd.s32 4294967294, %s4895_s13   ;;  %s4895_s13 = sphi %s4949_s13, %s17_s13   ;;  %s4891_s12 = sphi %s4947_s12, %s7801_s12   ;;  %s4887_s11 = sphi %s4945_s11, %s7800_s11   ;;  %s4883_s10 = sphi %s4943_s10, %s7799_s10   ;;  %s4879_s9 = sphi %s4941_s9, %s7798_s9   ;;  %s4875_s8 = sphi %s4939_s8, %s7797_s8   ;;  %s4871_s7 = sphi %s4937_s7, %s7796_s7   ;;  %s4867_s6 = sphi %s4935_s6, %s7795_s6  }
   0x8   : > { %s26_s16 = sadd.s32 1, %s4887_s11  ;;  %s29_s17 = sadd.s32 1, %s4891_s12 }
   0x9   : > { %p27_p0 = scmp.ge.s32.totalorder %s26_s16, 2  ;;  %s38_s18 = sadd.s32 1, %s4875_s8 }
   0xa   : > { %p45_p1 = scmp.ne.s32.totalorder %s4875_s8, %s4871_s7  ;;  %p46_p2 = scmp.eq.s32.totalorder %s4895_s13, 0 }
   0xb   : > { %s7803_s16 = smov (%p27_p0, %s26_s16), 0  ;;  %s7805_s17 = smov (!%p27_p0, %s29_s17), %s4891_s12 }
   0xc   : > { %s34_s19 = ssub.s32 %s4887_s11, %s7803_s16  ;;  %p4988_p3 = por %p46_p2, %p45_p1 }
   0xd   : > { %p31_p4 = scmp.ge.s32.totalorder %s7805_s17, 2  ;;  %p51_p5 = scmp.ne.s32.totalorder %s4871_s7, %s4867_s6 }
   0xe   : > { %p52_p6 = scmp.eq.s32.totalorder %s4649_s14, 0  ;;  %p77_p7 = scmp.eq.s32.totalorder %s4649_s14, 3 }
   0xf   : > { %s7807_s17 = smov (%p31_p4, %s7805_s17), 0  ;;  %p83_p10 = scmp.eq.s32.totalorder %s4650_s15, 3 }
  0x10   : > { %p4996_p8 = por %p52_p6, %p51_p5  ;;  %p5000_p9 = por %p77_p7, %p45_p1 }
  0x11   : > { %s33_s23 = ssub.s32 %s4891_s12, %s7807_s17  ;;  %p5006_p12 = por %p83_p10, %p51_p5 }
  0x12   : > { %s7541_s22 = scalar_select %p5000_p9, 1, 0 }
  0x13   : > { %s35_s24 = sor.u32 %s34_s19, %s33_s23  ;;  %p4702_p13 = scmp.lt.s32.totalorder %s4895_s13, 4 }
  0x14   : > { %p36_p11 = scmp.eq.s32.totalorder %s35_s24, 0  ;;  %s103_s26 = sand.u32 1, %s4875_s8  }
  0x15   : > { %s7542_s25 = scalar_select %p5006_p12, 1, 0 }
  0x16   : > { %s5013_s27 = scalar_select %p36_p11, %s4875_s8, %s38_s18  }
  0x17   : > { %s4653_s28 = sshll.u32 %s103_s26, 7  ;;  %s4654_s29 = sshll.u32 %s4891_s12, 5 }
  0x18   : > { %s112_s30 = sadd.s32 %s4887_s11, %s4654_s29  ;;  %s107_s2 = scalar_lea.vmem [#allocation2], %s4653_s28 }
  0x19   : > { %s115_s3 = sshll.u32 %s107_s2, 4  ;;  %s4655_s4 = sshll.u32 %s112_s30, 7  ;;  %s5017_s3 = int_to_ptr.vmem [resolvable:$true] %s115_s3 }
  0x1a   : > { %s5022_s15 = scalar_lea.hbm %s7474_s0, %s4655_s4  ;;  %p5026_p0 = pnand %p4702_p13, %p4988_p3 }
  0x1b   : > { %s5030_s19 = scalar_lea.sflag [#allocation3], %s103_s26  ;;  %s4795_s23 = scalar_lea.hbm %s5022_s15, 2048 }
  0x1c   : > { %p4796_p1 = scmp.ne.s32.totalorder %s5022_s15, %s4795_s23  ;;  %p4797_p2 = pneg %p5026_p0 }
  0x1d   : > { %s4800_s28 = scalar_lea.hbm %s7474_s0, 8192  ;;  %p4801_p3 = scmp.lt.u32.totalorder %s5022_s15, %s7474_s0 }
  0x1e   : > { %p4798_p4 = pnand %p4797_p2, %p4796_p1  ;;  %p4802_p6 = scmp.lt.u32.totalorder %s4800_s28, %s4795_s23 }
  0x1f   : > { %p4804_p10 = scmp.lt.u32.totalorder %s4795_s23, %s5022_s15 }
  0x20   : > { %p4799_p5 = pneg %p4798_p4  ;;  %p4803_p7 = por %p4802_p6, %p4801_p3 }
  0x22   : > { %p4805_p11 = por %p4804_p10, %p4803_p7 }
  0x24   : > { %p4806_p13 = pnand %p4805_p11, %p4799_p5 }
  0x26   : > { %4809 = shalt.err (!%p4806_p13)
}
  0x27   : > { %s4810_s26 = scalar_lea.vmem %s5017_s3, 2048  ;;  %s4897_s2 = smov [#allocation2]  }
  0x28   : > { %p4811_p1 = scmp.ne.s32.totalorder %s5017_s3, %s4810_s26  ;;  %s4815_s4 = sshll.u32 %s4897_s2, 4  ;;  %s4816_s4 = int_to_ptr.vmem [resolvable:$false] %s4815_s4 }
  0x29   : > { %s4817_s5 = scalar_lea.vmem %s4816_s4, 4096  ;;  %p4818_p9 = scmp.lt.s32.totalorder %s5017_s3, %s4816_s4 }
  0x2a   : > { %p4813_p4 = pnand %p4811_p1, %p4797_p2  ;;  %p4819_p3 = scmp.lt.s32.totalorder %s4817_s5, %s4810_s26 }
  0x2c   : > { %p4814_p12 = pneg %p4813_p4  ;;  %p4820_p6 = por %p4819_p3, %p4818_p9 }
  0x2e   : > { %p4821_p7 = pnand %p4820_p6, %p4814_p12 }
  0x30   : > { %4824 = shalt.err (!%p4821_p7)
}
  0x31   : > { %s4898_s14 = smov 256   ;;  %s4899_s23 = smov 128  }
  0x32   : > { %s4900_s20 = smov 8   ;;  %p4656_p2 = scmp.ge.s32.totalorder %s4895_s13, 1 }
  0x33   : > { %4697 = dma.hbm_to_vmem [thread:$0]  (!%p5026_p0), %s5022_s15, 2048, %s5017_s3, %s5030_s19, %s4898_s14, %s4899_s23, %s4900_s20  }
  0x34   : > { %p123_p5 = scmp.lt.s32.totalorder %s4895_s13, 5 }
  0x36   : > { %p124_p10 = pnand %p4656_p2, %p123_p5 }
  0x38   : > { %127 = sbr.rel (%p124_p10) target bundleno = 1176 (0x498), region = 24 }
  0x3f   : > { %s5061_s24 = sand.u32 1, %s4871_s7  }
  0x40   : > { %s4657_s28 = sshll.u32 %s5061_s24, 7  ;;  %s130_s29 = scalar_lea.sflag [#allocation3], %s5061_s24 }
  0x41   : > { %s5065_s30 = scalar_lea.vmem [#allocation2], %s4657_s28 }
  0x42   : > { %4858 = dma.done.wait (%p4996_p8), %s130_s29, 2048  }
  0x43   : > { %4860 = vsyncadd (%p4996_p8), %s130_s29, 4294965248  ;;  %v162_v0 = vlaneseq  ;;  %v153_v4 = vld [vmem:[%s5065_s30] sm:$0xff]  ;;  %v154_v19 = vld [vmem:[%s5065_s30 + $0x8] sm:$0xff]  ;;  %vm866_vm0 = vcmask 7168   ;;  %s4903_s21 = smov 2   ;;  %s4904_s3 = smov 4  }
  0x44   : > { %v155_v28 = vld [vmem:[%s5065_s30 + $0x10] sm:$0xff]  ;;  %v156_v37 = vld [vmem:[%s5065_s30 + $0x18] sm:$0xff]  ;;  %v4659_v50 = vld [vmem:[%s5065_s30 + $0x20] sm:$0xff]  ;;  %s4905_s15 = smov 6   ;;  %s4906_s18 = smov 8   ;;  %vm2259_vm1 = vcmask 15360  }
  0x45   : > { %v5071_v1 = vshrl.u32 %v162_v0, 7  ;;  %s4907_s19 = smov 10   ;;  %s4908_s26 = smov 12   ;;  %vm2264_vm2 = vcmask 31744   ;;  %vm2269_vm3 = vcmask 48128   ;;  %vm2274_vm4 = vcmask 64512  }
  0x46   : > { %s4909_s2 = smov 14   ;;  %s4910_s4 = smov 16   ;;  %vm2279_vm5 = vcmask 80896   ;;  %vm2284_vm6 = vcmask 97280   ;;  %vm2289_vm7 = vcmask 113664   ;;  %vm2294_vm8 = vcmask 130048  }
  0x47   : > { %v5074_v2 = vsub.s32 1, %v5071_v1  ;;  %v5077_v3 = vsub.s32 0, %v5071_v1  ;;  %v5083_v7 = vsub.s32 2, %v5071_v1  ;;  %v5087_v9 = vsub.s32 3, %v5071_v1  ;;  %s7505_s5 = smov 18   ;;  %s4912_s14 = smov 20  }
  0x48   : > { %v5091_v11 = vsub.s32 4, %v5071_v1  ;;  %v5095_v13 = vsub.s32 5, %v5071_v1  ;;  %v5099_v15 = vsub.s32 6, %v5071_v1  ;;  %v5103_v17 = vsub.s32 7, %v5071_v1  ;;  %s4913_s23 = smov 22   ;;  %s4914_s20 = smov 24  }
  0x49   : > { %7544 = vst [vmem:[#allocation10_spill] sm:$0xff] %v5074_v2  ;;  %7545 = vst [vmem:[#allocation11_spill] sm:$0xff] %v5077_v3  ;;  %v176_v5 = vrot.slane %v153_v4, %v5074_v2  ;;  %v165_v6 = vrot.slane %v153_v4, %v5077_v3  ;;  %v187_v8 = vrot.slane %v153_v4, %v5083_v7  ;;  %s4915_s28 = smov 26   ;;  %s7513_s29 = smov 28   ;;  %vm2299_vm9 = vcmask 146432  }
  0x4a   : > { %7546 = vst [vmem:[#allocation12_spill] sm:$0xff] %v5083_v7  ;;  %7547 = vst [vmem:[#allocation13_spill] sm:$0xff] %v5087_v9  ;;  %v198_v10 = vrot.slane %v153_v4, %v5087_v9  ;;  %v209_v12 = vrot.slane %v153_v4, %v5091_v11  ;;  %v220_v14 = vrot.slane %v153_v4, %v5095_v13  ;;  %vm2304_vm10 = vcmask 162816  }
  0x4b   : > { %178 = vbcast.lane.b32.xlu1 %v176_v5, 256  ;;  %167 = vbcast.lane.b32.xlu0 %v165_v6, 256  ;;  %7548 = vst [vmem:[#allocation14_spill] sm:$0xff] %v5091_v11  ;;  %7549 = vst [vmem:[#allocation15_spill] sm:$0xff] %v5095_v13  ;;  %v231_v16 = vrot.slane %v153_v4, %v5099_v15  ;;  %v242_v18 = vrot.slane %v153_v4, %v5103_v17  ;;  %vm2309_vm11 = vcmask 179200   ;;  %vm2314_vm12 = vcmask 195584  }
  0x4c   : > { %7550 = vst [vmem:[#allocation16_spill] sm:$0xff] %v5099_v15  ;;  %7551 = vst [vmem:[#allocation17_spill] sm:$0xff] %v5103_v17  ;;  %v253_v20 = vrot.slane %v154_v19, %v5077_v3  ;;  %v264_v21 = vrot.slane %v154_v19, %v5074_v2  ;;  %v275_v22 = vrot.slane %v154_v19, %v5083_v7  ;;  %vm2319_vm13 = vcmask 211968  }
  0x4d   : > { %v286_v23 = vrot.slane %v154_v19, %v5087_v9  ;;  %v297_v24 = vrot.slane %v154_v19, %v5091_v11  ;;  %v308_v25 = vrot.slane %v154_v19, %v5095_v13  ;;  %v319_v26 = vrot.slane %v154_v19, %v5099_v15 }
  0x4e   : > { %v330_v27 = vrot.slane %v154_v19, %v5103_v17  ;;  %v341_v29 = vrot.slane %v155_v28, %v5077_v3  ;;  %v352_v30 = vrot.slane %v155_v28, %v5074_v2  ;;  %v363_v31 = vrot.slane %v155_v28, %v5083_v7 }
  0x4f   : > { %182 = vbcast.lane.b32.xlu1 %v176_v5, 264  ;;  %171 = vbcast.lane.b32.xlu0 %v165_v6, 264  ;;  %v374_v32 = vrot.slane %v155_v28, %v5087_v9  ;;  %v385_v33 = vrot.slane %v155_v28, %v5091_v11  ;;  %v396_v34 = vrot.slane %v155_v28, %v5095_v13  ;;  %vm2324_vm14 = vcmask 228352  }
  0x50   : > { %v407_v35 = vrot.slane %v155_v28, %v5099_v15  ;;  %v418_v36 = vrot.slane %v155_v28, %v5103_v17  ;;  %v429_v38 = vrot.slane %v156_v37, %v5077_v3  ;;  %v440_v39 = vrot.slane %v156_v37, %v5074_v2 }
  0x51   : > { %v451_v40 = vrot.slane %v156_v37, %v5083_v7  ;;  %v462_v41 = vrot.slane %v156_v37, %v5087_v9  ;;  %v473_v42 = vrot.slane %v156_v37, %v5091_v11  ;;  %v484_v43 = vrot.slane %v156_v37, %v5095_v13 }
  0x52   : > { %v495_v46 = vrot.slane %v156_v37, %v5099_v15  ;;  %v506_v49 = vrot.slane %v156_v37, %v5103_v17  ;;  %v517_v53 = vrot.slane %v4659_v50, %v5077_v3  ;;  %v528_v56 = vrot.slane %v4659_v50, %v5074_v2 }
  0x53   : > { %193 = vbcast.lane.b32.xlu1 %v187_v8, 264  ;;  %189 = vbcast.lane.b32.xlu0 %v187_v8, 256  ;;  %v539_v59 = vrot.slane %v4659_v50, %v5083_v7  ;;  %v550_v62 = vrot.slane %v4659_v50, %v5087_v9  ;;  %v561_v4 = vrot.slane %v4659_v50, %v5091_v11  ;;  %vm2329_vm15 = vcmask 244736  }
  0x54   : > { %v572_v8 = vrot.slane %v4659_v50, %v5095_v13  ;;  %v594_v19 = vrot.slane %v4659_v50, %v5103_v17 }
  0x57   : > { %204 = vbcast.lane.b32.xlu1 %v198_v10, 264  ;;  %200 = vbcast.lane.b32.xlu0 %v198_v10, 256 }
  0x5b   : > { %215 = vbcast.lane.b32.xlu1 %v209_v12, 264  ;;  %211 = vbcast.lane.b32.xlu0 %v209_v12, 256 }
  0x5f   : > { %226 = vbcast.lane.b32.xlu1 %v220_v14, 264  ;;  %222 = vbcast.lane.b32.xlu0 %v220_v14, 256  ;;  %v583_v14 = vrot.slane %v4659_v50, %v5099_v15 }
  0x63   : > { %237 = vbcast.lane.b32.xlu1 %v231_v16, 264  ;;  %233 = vbcast.lane.b32.xlu0 %v231_v16, 256 }
  0x67   : > { %248 = vbcast.lane.b32.xlu1 %v242_v18, 264  ;;  %244 = vbcast.lane.b32.xlu0 %v242_v18, 256 }
  0x6b   : > { %259 = vbcast.lane.b32.xlu1 %v253_v20, 264  ;;  %255 = vbcast.lane.b32.xlu0 %v253_v20, 256  ;;  %v4660_v20 = vld [vmem:[%s5065_s30 + $0x28] sm:$0xff] }
  0x6f   : > { %270 = vbcast.lane.b32.xlu1 %v264_v21, 264  ;;  %266 = vbcast.lane.b32.xlu0 %v264_v21, 256 }
  0x73   : > { %281 = vbcast.lane.b32.xlu1 %v275_v22, 264  ;;  %277 = vbcast.lane.b32.xlu0 %v275_v22, 256 }
  0x77   : > { %292 = vbcast.lane.b32.xlu1 %v286_v23, 264  ;;  %288 = vbcast.lane.b32.xlu0 %v286_v23, 256  ;;  %v605_v23 = vrot.slane %v4660_v20, %v5077_v3 }
  0x7b   : > { %303 = vbcast.lane.b32.xlu1 %v297_v24, 264  ;;  %299 = vbcast.lane.b32.xlu0 %v297_v24, 256 }
  0x7f   : > { %314 = vbcast.lane.b32.xlu1 %v308_v25, 264  ;;  %310 = vbcast.lane.b32.xlu0 %v308_v25, 256 }
  0x83   : > { %325 = vbcast.lane.b32.xlu1 %v319_v26, 264  ;;  %321 = vbcast.lane.b32.xlu0 %v319_v26, 256  ;;  %v616_v26 = vrot.slane %v4660_v20, %v5074_v2 }
  0x87   : > { %336 = vbcast.lane.b32.xlu1 %v330_v27, 264  ;;  %332 = vbcast.lane.b32.xlu0 %v330_v27, 256 }
  0x8b   : > { %347 = vbcast.lane.b32.xlu1 %v341_v29, 264  ;;  %343 = vbcast.lane.b32.xlu0 %v341_v29, 256  ;;  %v627_v29 = vrot.slane %v4660_v20, %v5083_v7 }
  0x8f   : > { %358 = vbcast.lane.b32.xlu1 %v352_v30, 264  ;;  %354 = vbcast.lane.b32.xlu0 %v352_v30, 256 }
  0x93   : > { %369 = vbcast.lane.b32.xlu1 %v363_v31, 264  ;;  %365 = vbcast.lane.b32.xlu0 %v363_v31, 256 }
  0x97   : > { %380 = vbcast.lane.b32.xlu1 %v374_v32, 264  ;;  %376 = vbcast.lane.b32.xlu0 %v374_v32, 256  ;;  %v638_v32 = vrot.slane %v4660_v20, %v5087_v9 }
  0x9b   : > { %391 = vbcast.lane.b32.xlu1 %v385_v33, 264  ;;  %387 = vbcast.lane.b32.xlu0 %v385_v33, 256 }
  0x9f   : > { %402 = vbcast.lane.b32.xlu1 %v396_v34, 264  ;;  %398 = vbcast.lane.b32.xlu0 %v396_v34, 256 }
  0xa3   : > { %413 = vbcast.lane.b32.xlu1 %v407_v35, 264  ;;  %409 = vbcast.lane.b32.xlu0 %v407_v35, 256  ;;  %v649_v35 = vrot.slane %v4660_v20, %v5091_v11 }
  0xa7   : > { %424 = vbcast.lane.b32.xlu1 %v418_v36, 264  ;;  %420 = vbcast.lane.b32.xlu0 %v418_v36, 256 }
  0xab   : > { %435 = vbcast.lane.b32.xlu1 %v429_v38, 264  ;;  %431 = vbcast.lane.b32.xlu0 %v429_v38, 256  ;;  %v660_v38 = vrot.slane %v4660_v20, %v5095_v13 }
  0xaf   : > { %446 = vbcast.lane.b32.xlu1 %v440_v39, 264  ;;  %442 = vbcast.lane.b32.xlu0 %v440_v39, 256 }
  0xb3   : > { %457 = vbcast.lane.b32.xlu1 %v451_v40, 264  ;;  %453 = vbcast.lane.b32.xlu0 %v451_v40, 256 }
  0xb7   : > { %468 = vbcast.lane.b32.xlu1 %v462_v41, 264  ;;  %464 = vbcast.lane.b32.xlu0 %v462_v41, 256  ;;  %v671_v41 = vrot.slane %v4660_v20, %v5099_v15 }
  0xbb   : > { %479 = vbcast.lane.b32.xlu1 %v473_v42, 264  ;;  %475 = vbcast.lane.b32.xlu0 %v473_v42, 256 }
  0xbd   : > { %v5131_v44 = vpop.permute.xlu1 %178  ;;  %v5133_v45 = vpop.permute.xlu0 %167 }
  0xbf   : > { %490 = vbcast.lane.b32.xlu1 %v484_v43, 264  ;;  %486 = vbcast.lane.b32.xlu0 %v484_v43, 256 }
  0xc1   : > { %v5136_v47 = vpop.permute.xlu1 %182  ;;  %v5138_v48 = vpop.permute.xlu0 %171 }
  0xc2   : > { %7552 = vst [vmem:[#allocation18_spill] sm:$0xff] %v5138_v48 }
  0xc3   : > { %501 = vbcast.lane.b32.xlu1 %v495_v46, 264  ;;  %497 = vbcast.lane.b32.xlu0 %v495_v46, 256  ;;  %v682_v46 = vrot.slane %v4660_v20, %v5103_v17 }
  0xc5   : > { %v5142_v51 = vpop.permute.xlu1 %193  ;;  %v5144_v52 = vpop.permute.xlu0 %189 }
  0xc7   : > { %512 = vbcast.lane.b32.xlu1 %v506_v49, 264  ;;  %508 = vbcast.lane.b32.xlu0 %v506_v49, 256  ;;  %v4661_v49 = vld [vmem:[%s5065_s30 + $0x30] sm:$0xff] }
  0xc9   : > { %v5147_v54 = vpop.permute.xlu1 %204  ;;  %v5149_v55 = vpop.permute.xlu0 %200 }
  0xcb   : > { %523 = vbcast.lane.b32.xlu1 %v517_v53, 264  ;;  %519 = vbcast.lane.b32.xlu0 %v517_v53, 256 }
  0xcd   : > { %v5152_v57 = vpop.permute.xlu1 %215  ;;  %v5154_v58 = vpop.permute.xlu0 %211 }
  0xce   : > { %7553 = vst [vmem:[#allocation19_spill] sm:$0xff] %v5152_v57 }
  0xcf   : > { %534 = vbcast.lane.b32.xlu1 %v528_v56, 264  ;;  %530 = vbcast.lane.b32.xlu0 %v528_v56, 256  ;;  %v693_v56 = vrot.slane %v4661_v49, %v5077_v3 }
  0xd1   : > { %v5157_v60 = vpop.permute.xlu1 %226  ;;  %v5159_v61 = vpop.permute.xlu0 %222 }
  0xd3   : > { %545 = vbcast.lane.b32.xlu1 %v539_v59, 264  ;;  %541 = vbcast.lane.b32.xlu0 %v539_v59, 256 }
  0xd5   : > { %v5162_v63 = vpop.permute.xlu1 %237  ;;  %v5164_v0 = vpop.permute.xlu0 %233 }
  0xd7   : > { %556 = vbcast.lane.b32.xlu1 %v550_v62, 264  ;;  %552 = vbcast.lane.b32.xlu0 %v550_v62, 256 }
  0xd9   : > { %v5167_v5 = vpop.permute.xlu1 %248  ;;  %v5169_v6 = vpop.permute.xlu0 %244 }
  0xdb   : > { %567 = vbcast.lane.b32.xlu1 %v561_v4, 264  ;;  %563 = vbcast.lane.b32.xlu0 %v561_v4, 256  ;;  %v704_v4 = vrot.slane %v4661_v49, %v5074_v2 }
  0xdd   : > { %v5172_v10 = vpop.permute.xlu1 %259  ;;  %v5174_v12 = vpop.permute.xlu0 %255 }
  0xde   : > { %7554 = vst [vmem:[#allocation20_spill] sm:$0xff] %v5172_v10 }
  0xdf   : > { %578 = vbcast.lane.b32.xlu1 %v572_v8, 264  ;;  %574 = vbcast.lane.b32.xlu0 %v572_v8, 256 }
  0xe1   : > { %v5177_v16 = vpop.permute.xlu1 %270  ;;  %v5179_v18 = vpop.permute.xlu0 %266 }
  0xe2   : > { %7555 = vst [vmem:[#allocation21_spill] sm:$0xff] %v5177_v16 }
  0xe3   : > { %589 = vbcast.lane.b32.xlu1 %v583_v14, 264  ;;  %585 = vbcast.lane.b32.xlu0 %v583_v14, 256 }
  0xe5   : > { %v5183_v21 = vpop.permute.xlu1 %281  ;;  %v5185_v22 = vpop.permute.xlu0 %277 }
  0xe6   : > { %7556 = vst [vmem:[#allocation22_spill] sm:$0xff] %v5183_v21 }
  0xe7   : > { %600 = vbcast.lane.b32.xlu1 %v594_v19, 264  ;;  %596 = vbcast.lane.b32.xlu0 %v594_v19, 256  ;;  %v715_v19 = vrot.slane %v4661_v49, %v5083_v7 }
  0xe9   : > { %v5188_v24 = vpop.permute.xlu1 %292  ;;  %v5190_v25 = vpop.permute.xlu0 %288 }
  0xea   : > { %7557 = vst [vmem:[#allocation23_spill] sm:$0xff] %v5188_v24  ;;  %v4901_v24 = vmov 1983009808  }
  0xeb   : > { %611 = vbcast.lane.b32.xlu1 %v605_v23, 264  ;;  %607 = vbcast.lane.b32.xlu0 %v605_v23, 256 }
  0xed   : > { %v5193_v27 = vpop.permute.xlu1 %303  ;;  %v5195_v28 = vpop.permute.xlu0 %299 }
  0xee   : > { %7558 = vst [vmem:[#allocation24_spill] sm:$0xff] %v5193_v27 }
  0xef   : > { %622 = vbcast.lane.b32.xlu1 %v616_v26, 264  ;;  %618 = vbcast.lane.b32.xlu0 %v616_v26, 256  ;;  %v726_v26 = vrot.slane %v4661_v49, %v5087_v9 }
  0xf1   : > { %v5198_v30 = vpop.permute.xlu1 %314  ;;  %v5200_v31 = vpop.permute.xlu0 %310 }
  0xf2   : > { %7559 = vst [vmem:[#allocation25_spill] sm:$0xff] %v5198_v30  ;;  %v4662_v30 = vld [vmem:[%s5065_s30 + $0x38] sm:$0xff] }
  0xf3   : > { %633 = vbcast.lane.b32.xlu1 %v627_v29, 264  ;;  %629 = vbcast.lane.b32.xlu0 %v627_v29, 256 }
  0xf5   : > { %v5203_v33 = vpop.permute.xlu1 %325  ;;  %v5205_v34 = vpop.permute.xlu0 %321 }
  0xf6   : > { %7560 = vst [vmem:[#allocation26_spill] sm:$0xff] %v5203_v33  ;;  %v770_v33 = vrot.slane %v4661_v49, %v5103_v17 }
  0xf7   : > { %644 = vbcast.lane.b32.xlu1 %v638_v32, 264  ;;  %640 = vbcast.lane.b32.xlu0 %v638_v32, 256 }
  0xf9   : > { %v5208_v36 = vpop.permute.xlu1 %336  ;;  %v5210_v37 = vpop.permute.xlu0 %332 }
  0xfa   : > { %7561 = vst [vmem:[#allocation27_spill] sm:$0xff] %v5208_v36 }
  0xfb   : > { %655 = vbcast.lane.b32.xlu1 %v649_v35, 264  ;;  %651 = vbcast.lane.b32.xlu0 %v649_v35, 256  ;;  %v737_v35 = vrot.slane %v4661_v49, %v5091_v11 }
  0xfd   : > { %v5213_v39 = vpop.permute.xlu1 %347  ;;  %v5215_v40 = vpop.permute.xlu0 %343 }
  0xfe   : > { %7562 = vst [vmem:[#allocation28_spill] sm:$0xff] %v5213_v39 }
  0xff   : > { %666 = vbcast.lane.b32.xlu1 %v660_v38, 264  ;;  %662 = vbcast.lane.b32.xlu0 %v660_v38, 256 }
 0x101   : > { %v5218_v42 = vpop.permute.xlu1 %358  ;;  %v5220_v43 = vpop.permute.xlu0 %354 }
 0x102   : > { %7563 = vst [vmem:[#allocation29_spill] sm:$0xff] %v5218_v42 }
 0x103   : > { %677 = vbcast.lane.b32.xlu1 %v671_v41, 264  ;;  %673 = vbcast.lane.b32.xlu0 %v671_v41, 256 }
 0x105   : > { %v5224_v50 = vpop.permute.xlu1 %369  ;;  %v5226_v53 = vpop.permute.xlu0 %365 }
 0x106   : > { %7564 = vst [vmem:[#allocation30_spill] sm:$0xff] %v5224_v50 }
 0x107   : > { %688 = vbcast.lane.b32.xlu1 %v682_v46, 264  ;;  %684 = vbcast.lane.b32.xlu0 %v682_v46, 256  ;;  %v748_v46 = vrot.slane %v4661_v49, %v5095_v13 }
 0x109   : > { %v5229_v59 = vpop.permute.xlu1 %380  ;;  %v5231_v62 = vpop.permute.xlu0 %376 }
 0x10a   : > { %7565 = vst [vmem:[#allocation31_spill] sm:$0xff] %v5229_v59 }
 0x10b   : > { %699 = vbcast.lane.b32.xlu1 %v693_v56, 264  ;;  %695 = vbcast.lane.b32.xlu0 %v693_v56, 256 }
 0x10d   : > { %v5234_v8 = vpop.permute.xlu1 %391  ;;  %v5236_v14 = vpop.permute.xlu0 %387 }
 0x10e   : > { %7566 = vst [vmem:[#allocation32_spill] sm:$0xff] %v5234_v8 }
 0x10f   : > { %710 = vbcast.lane.b32.xlu1 %v704_v4, 264  ;;  %706 = vbcast.lane.b32.xlu0 %v704_v4, 256 }
 0x111   : > { %v5239_v20 = vpop.permute.xlu1 %402  ;;  %v5241_v23 = vpop.permute.xlu0 %398 }
 0x112   : > { %7567 = vst [vmem:[#allocation33_spill] sm:$0xff] %v5239_v20 }
 0x113   : > { %721 = vbcast.lane.b32.xlu1 %v715_v19, 264  ;;  %717 = vbcast.lane.b32.xlu0 %v715_v19, 256  ;;  %v759_v19 = vrot.slane %v4661_v49, %v5099_v15 }
 0x115   : > { %v5244_v29 = vpop.permute.xlu1 %413  ;;  %v5246_v32 = vpop.permute.xlu0 %409 }
 0x116   : > { %7568 = vst [vmem:[#allocation34_spill] sm:$0xff] %v5244_v29 }
 0x117   : > { %732 = vbcast.lane.b32.xlu1 %v726_v26, 264  ;;  %728 = vbcast.lane.b32.xlu0 %v726_v26, 256 }
 0x119   : > { %v5249_v38 = vpop.permute.xlu1 %424  ;;  %v5251_v41 = vpop.permute.xlu0 %420 }
 0x11a   : > { %7569 = vst [vmem:[#allocation35_spill] sm:$0xff] %v5249_v38 }
 0x11b   : > { %743 = vbcast.lane.b32.xlu1 %v737_v35, 264  ;;  %739 = vbcast.lane.b32.xlu0 %v737_v35, 256 }
 0x11d   : > { %v5254_v56 = vpop.permute.xlu1 %435  ;;  %v5256_v4 = vpop.permute.xlu0 %431 }
 0x11e   : > { %7570 = vst [vmem:[#allocation36_spill] sm:$0xff] %v5254_v56  ;;  %v781_v56 = vrot.slane %v4662_v30, %v5077_v3  ;;  %v814_v3 = vrot.slane %v4662_v30, %v5087_v9  ;;  %v847_v9 = vrot.slane %v4662_v30, %v5099_v15 }
 0x11f   : > { %754 = vbcast.lane.b32.xlu1 %v748_v46, 264  ;;  %750 = vbcast.lane.b32.xlu0 %v748_v46, 256 }
 0x121   : > { %v5259_v26 = vpop.permute.xlu1 %446  ;;  %v5261_v27 = vpop.permute.xlu0 %442 }
 0x122   : > { %7571 = vst [vmem:[#allocation37_spill] sm:$0xff] %v5259_v26  ;;  %v792_v26 = vrot.slane %v4662_v30, %v5074_v2  ;;  %v825_v2 = vrot.slane %v4662_v30, %v5091_v11  ;;  %v934_v11 = vunpack.c.l.s4 %v4901_v24 }
 0x123   : > { %765 = vbcast.lane.b32.xlu1 %v759_v19, 264  ;;  %761 = vbcast.lane.b32.xlu0 %v759_v19, 256 }
 0x124   : > { %v935_v21 = vunpack.c.0.s8 %v934_v11 }
 0x125   : > { %v5265_v35 = vpop.permute.xlu1 %457  ;;  %v5267_v36 = vpop.permute.xlu0 %453 }
 0x126   : > { %7572 = vst [vmem:[#allocation38_spill] sm:$0xff] %v5265_v35  ;;  %v803_v35 = vrot.slane %v4662_v30, %v5083_v7  ;;  %v836_v7 = vrot.slane %v4662_v30, %v5095_v13 }
 0x127   : > { %776 = vbcast.lane.b32.xlu1 %v770_v33, 264  ;;  %772 = vbcast.lane.b32.xlu0 %v770_v33, 256 }
 0x129   : > { %v5270_v46 = vpop.permute.xlu1 %468  ;;  %v5272_v16 = vpop.permute.xlu0 %464 }
 0x12a   : > { %7573 = vst [vmem:[#allocation39_spill] sm:$0xff] %v5270_v46 }
 0x12b   : > { %787 = vbcast.lane.b32.xlu1 %v781_v56, 264  ;;  %783 = vbcast.lane.b32.xlu0 %v781_v56, 256 }
 0x12d   : > { %v5275_v19 = vpop.permute.xlu1 %479  ;;  %v5277_v49 = vpop.permute.xlu0 %475 }
 0x12e   : > { %7574 = vst [vmem:[#allocation40_spill] sm:$0xff] %v5275_v19 }
 0x12f   : > { %798 = vbcast.lane.b32.xlu1 %v792_v26, 264  ;;  %794 = vbcast.lane.b32.xlu0 %v792_v26, 256 }
 0x131   : > { %v5280_v10 = vpop.permute.xlu1 %490  ;;  %v5282_v33 = vpop.permute.xlu0 %486 }
 0x132   : > { %7575 = vst [vmem:[#allocation41_spill] sm:$0xff] %v5280_v10 }
 0x133   : > { %809 = vbcast.lane.b32.xlu1 %v803_v35, 264  ;;  %805 = vbcast.lane.b32.xlu0 %v803_v35, 256 }
 0x135   : > { %v5285_v46 = vpop.permute.xlu1 %501  ;;  %v5287_v56 = vpop.permute.xlu0 %497 }
 0x136   : > { %7576 = vst [vmem:[#allocation42_spill] sm:$0xff] %v5285_v46 }
 0x137   : > { %820 = vbcast.lane.b32.xlu1 %v814_v3, 264  ;;  %816 = vbcast.lane.b32.xlu0 %v814_v3, 256 }
 0x139   : > { %v5290_v19 = vpop.permute.xlu1 %512  ;;  %v5292_v26 = vpop.permute.xlu0 %508 }
 0x13a   : > { %7577 = vst [vmem:[#allocation43_spill] sm:$0xff] %v5290_v19  ;;  %v858_v19 = vrot.slane %v4662_v30, %v5103_v17 }
 0x13b   : > { %831 = vbcast.lane.b32.xlu1 %v825_v2, 264  ;;  %827 = vbcast.lane.b32.xlu0 %v825_v2, 256 }
 0x13d   : > { %v5295_v10 = vpop.permute.xlu1 %523  ;;  %v520_v35 = vpop.permute.xlu0 %519 }
 0x13e   : > { %v867_v42 = vsel %vm866_vm0, %v5133_v45, %v520_v35 }
 0x13f   : > { %842 = vbcast.lane.b32.xlu1 %v836_v7, 264  ;;  %838 = vbcast.lane.b32.xlu0 %v836_v7, 256 }
 0x141   : > { %v5298_v46 = vpop.permute.xlu1 %534  ;;  %v531_v3 = vpop.permute.xlu0 %530 }
 0x142   : > { %v869_v30 = vsel %vm866_vm0, %v5131_v44, %v531_v3 }
 0x143   : > { %853 = vbcast.lane.b32.xlu1 %v847_v9, 264  ;;  %849 = vbcast.lane.b32.xlu0 %v847_v9, 256  ;;  %v5310_v9 = vsub.s32 %v935_v21, %v5071_v1 }
 0x145   : > { %v5301_v2 = vpop.permute.xlu1 %545  ;;  %v542_v13 = vpop.permute.xlu0 %541  ;;  %7578 = vst [vmem:[#allocation44_spill] sm:$0xff] %v5310_v9 }
 0x146   : > { %v871_v7 = vsel %vm866_vm0, %v5144_v52, %v542_v13 }
 0x147   : > { %v932_v15 = vcombine.high %v867_v42, %v871_v7  ;;  %864 = vbcast.lane.b32.xlu1 %v858_v19, 264  ;;  %860 = vbcast.lane.b32.xlu0 %v858_v19, 256  ;;  %v931_v17 = vcombine.low %v867_v42, %v871_v7 }
 0x149   : > { %v5307_v39 = vpop.permute.xlu1 %556  ;;  %v553_v24 = vpop.permute.xlu0 %552  ;;  %v939_v59 = vrot.slane %v931_v17, %v5310_v9  ;;  %v946_v21 = vrot.slane %v932_v15, %v5310_v9 }
 0x14a   : > { %v873_v11 = vsel %vm866_vm0, %v5149_v55, %v553_v24  ;;  %v4902_v55 = vmov 1934713408  }
 0x14b   : > { %v947_v45 = vcombine.low %v869_v30, %v873_v11  ;;  %v948_v35 = vcombine.high %v869_v30, %v873_v11  ;;  %v998_v7 = vunpack.c.l.s4 %v4902_v55 }
 0x14d   : > { %v955_v13 = vrot.slane %v947_v45, %v5310_v9  ;;  %v962_v52 = vrot.slane %v948_v35, %v5310_v9  ;;  %v5318_v19 = vpop.permute.xlu1 %567  ;;  %v564_v8 = vpop.permute.xlu0 %563  ;;  %v999_v35 = vunpack.c.0.s8 %v998_v7 }
 0x14e   : > { %7579 = vst [vmem:[#allocation45_spill] sm:$0xff] %v5318_v19  ;;  %v875_v11 = vsel %vm866_vm0, %v5154_v58, %v564_v8 }
 0x14f   : > { %v996_v50 = vcombine.high %v939_v59, %v955_v13  ;;  %v1011_v29 = vcombine.low %v946_v21, %v962_v52  ;;  %v1012_v44 = vcombine.high %v946_v21, %v962_v52  ;;  %v5337_v19 = vsub.s32 %v999_v35, %v5071_v1 }
 0x150   : > { %v995_v58 = vcombine.low %v939_v59, %v955_v13 }
 0x151   : > { %v5322_v42 = vpop.permute.xlu1 %578  ;;  %v575_v3 = vpop.permute.xlu0 %574  ;;  %7580 = vst [vmem:[#allocation46_spill] sm:$0xff] %v5337_v19  ;;  %v5349_v1 = vrot.slane %v996_v50, %v5337_v19  ;;  %v5352_v59 = vrot.slane %v1011_v29, %v5337_v19  ;;  %v5369_v50 = vrot.slane %v1012_v44, %v5337_v19 }
 0x152   : > { %v877_v52 = vsel %vm866_vm0, %v5159_v61, %v575_v3 }
 0x155   : > { %v5324_v24 = vpop.permute.xlu1 %589  ;;  %v586_v30 = vpop.permute.xlu0 %585 }
 0x156   : > { %v879_v45 = vsel %vm866_vm0, %v5164_v0, %v586_v30 }
 0x157   : > { %v964_v17 = vcombine.high %v875_v11, %v879_v45  ;;  %v963_v21 = vcombine.low %v875_v11, %v879_v45  ;;  %v5346_v45 = vrot.slane %v995_v58, %v5337_v19 }
 0x159   : > { %v5330_v15 = vpop.permute.xlu1 %600  ;;  %v597_v20 = vpop.permute.xlu0 %596  ;;  %v971_v48 = vrot.slane %v963_v21, %v5310_v9  ;;  %v978_v61 = vrot.slane %v964_v17, %v5310_v9  ;;  %7582 = vst [vmem:[#allocation48_spill] sm:$0xff] %v5346_v45 }
 0x15a   : > { %v881_v55 = vsel %vm866_vm0, %v5169_v6, %v597_v20 }
 0x15b   : > { %v979_v38 = vcombine.low %v877_v52, %v881_v55  ;;  %v980_v57 = vcombine.high %v877_v52, %v881_v55 }
 0x15d   : > { %v987_v0 = vrot.slane %v979_v38, %v5310_v9  ;;  %v994_v8 = vrot.slane %v980_v57, %v5310_v9  ;;  %v5341_v7 = vpop.permute.xlu1 %611  ;;  %v608_v30 = vpop.permute.xlu0 %607 }
 0x15e   : > { %7581 = vst [vmem:[#allocation47_spill] sm:$0xff] %v5341_v7 }
 0x15f   : > { %v1027_v3 = vcombine.low %v971_v48, %v987_v0  ;;  %v1028_v11 = vcombine.high %v971_v48, %v987_v0  ;;  %v1043_v6 = vcombine.low %v978_v61, %v994_v8  ;;  %v1044_v20 = vcombine.high %v978_v61, %v994_v8 }
 0x161   : > { %v619_v57 = vpop.permute.xlu0 %618  ;;  %v5355_v38 = vrot.slane %v1027_v3, %v5337_v19  ;;  %v5358_v13 = vrot.slane %v1028_v11, %v5337_v19  ;;  %v5361_v48 = vrot.slane %v1043_v6, %v5337_v19  ;;  %v5364_v17 = vrot.slane %v1044_v20, %v5337_v19  ;;  %v5366_v35 = vpop.permute.xlu1 %622 }
 0x162   : > { %7584 = vst [vmem:[#allocation50_spill] sm:$0xff] %v5366_v35  ;;  %v883_v3 = vsel %vm866_vm0, %v5174_v12, %v608_v30  ;;  %v885_v44 = vsel %vm866_vm0, %v5179_v18, %v619_v57 }
 0x163   : > { %7583 = vst [vmem:[#allocation49_spill] sm:$0xff] %v5355_v38  ;;  %v1060_v29 = vcombine.high %v5346_v45, %v5355_v38 }
 0x165   : > { %v630_v58 = vpop.permute.xlu0 %629  ;;  %2023 = vrot.lane.b32.xlu0 %v1060_v29, %s4903_s21  ;;  %v5392_v20 = vpop.permute.xlu1 %633 }
 0x166   : > { %v887_v11 = vsel %vm866_vm0, %v5185_v22, %v630_v58  ;;  %7585 = vst [vmem:[#allocation51_spill] sm:$0xff] %v5392_v20 }
 0x167   : > { %v1204_v6 = vcombine.high %v883_v3, %v887_v11  ;;  %v1203_v8 = vcombine.low %v883_v3, %v887_v11 }
 0x169   : > { %v641_v0 = vpop.permute.xlu0 %640  ;;  %v1211_v22 = vrot.slane %v1203_v8, %v5310_v9  ;;  %v1218_v58 = vrot.slane %v1204_v6, %v5310_v9  ;;  %v5402_v52 = vpop.permute.xlu1 %644 }
 0x16a   : > { %v889_v61 = vsel %vm866_vm0, %v5190_v25, %v641_v0  ;;  %7586 = vst [vmem:[#allocation52_spill] sm:$0xff] %v5402_v52 }
 0x16b   : > { %v1219_v55 = vcombine.low %v885_v44, %v889_v61  ;;  %v1220_v21 = vcombine.high %v885_v44, %v889_v61 }
 0x16d   : > { %v1227_v12 = vrot.slane %v1219_v55, %v5310_v9  ;;  %v1234_v30 = vrot.slane %v1220_v21, %v5310_v9  ;;  %v652_v29 = vpop.permute.xlu0 %651  ;;  %v5404_v3 = vpop.permute.xlu1 %655 }
 0x16e   : > { %7587 = vst [vmem:[#allocation53_spill] sm:$0xff] %v5404_v3  ;;  %v891_v0 = vsel %vm866_vm0, %v5195_v28, %v652_v29 }
 0x16f   : > { %v1268_v38 = vcombine.high %v1211_v22, %v1227_v12  ;;  %v1283_v45 = vcombine.low %v1218_v58, %v1234_v30  ;;  %v1284_v18 = vcombine.high %v1218_v58, %v1234_v30  ;;  %v1267_v3 = vcombine.low %v1211_v22, %v1227_v12 }
 0x171   : > { %v663_v57 = vpop.permute.xlu0 %662  ;;  %v5410_v8 = vpop.permute.xlu1 %666  ;;  %v5426_v12 = vrot.slane %v1268_v38, %v5337_v19  ;;  %v5429_v22 = vrot.slane %v1283_v45, %v5337_v19 }
 0x172   : > { %7588 = vst [vmem:[#allocation54_spill] sm:$0xff] %v5410_v8  ;;  %v893_v61 = vsel %vm866_vm0, %v5200_v31, %v663_v57 }
 0x175   : > { %v674_v25 = vpop.permute.xlu0 %673  ;;  %v5420_v8 = vpop.permute.xlu1 %677 }
 0x176   : > { %v895_v21 = vsel %vm866_vm0, %v5205_v34, %v674_v25  ;;  %7589 = vst [vmem:[#allocation55_spill] sm:$0xff] %v5420_v8 }
 0x177   : > { %v1236_v55 = vcombine.high %v891_v0, %v895_v21  ;;  %v1235_v11 = vcombine.low %v891_v0, %v895_v21 }
 0x179   : > { %v685_v44 = vpop.permute.xlu0 %684  ;;  %v1243_v34 = vrot.slane %v1235_v11, %v5310_v9  ;;  %v1250_v25 = vrot.slane %v1236_v55, %v5310_v9 }
 0x17a   : > { %v897_v6 = vsel %vm866_vm0, %v5210_v37, %v685_v44  ;;  %v5423_v37 = vrot.slane %v1267_v3, %v5337_v19  ;;  %v5444_v3 = vrot.slane %v1284_v18, %v5337_v19 }
 0x17b   : > { %v1251_v30 = vcombine.low %v893_v61, %v897_v6  ;;  %v1252_v58 = vcombine.high %v893_v61, %v897_v6 }
 0x17c   : > { %7590 = vst [vmem:[#allocation56_spill] sm:$0xff] %v5423_v37  ;;  %7594 = vst [vmem:[#allocation60_spill] sm:$0xff] %v5444_v3 }
 0x17d   : > { %v1259_v35 = vrot.slane %v1251_v30, %v5310_v9  ;;  %v1266_v28 = vrot.slane %v1252_v58, %v5310_v9  ;;  %v696_v29 = vpop.permute.xlu0 %695 }
 0x17f   : > { %v1299_v7 = vcombine.low %v1243_v34, %v1259_v35  ;;  %v1300_v31 = vcombine.high %v1243_v34, %v1259_v35  ;;  %v1315_v57 = vcombine.low %v1250_v25, %v1266_v28  ;;  %v1316_v0 = vcombine.high %v1250_v25, %v1266_v28  ;;  %v5462_v34 = vpop.permute.xlu1 %688 }
 0x180   : > { %7595 = vst [vmem:[#allocation61_spill] sm:$0xff] %v5462_v34 }
 0x181   : > { %v707_v21 = vpop.permute.xlu0 %706  ;;  %v5432_v44 = vrot.slane %v1299_v7, %v5337_v19  ;;  %v5435_v55 = vrot.slane %v1300_v31, %v5337_v19  ;;  %v5438_v35 = vrot.slane %v1315_v57, %v5337_v19  ;;  %v5441_v61 = vrot.slane %v1316_v0, %v5337_v19 }
 0x182   : > { %v901_v58 = vsel %vm866_vm0, %v5220_v43, %v707_v21 }
 0x183   : > { %7591 = vst [vmem:[#allocation57_spill] sm:$0xff] %v5432_v44  ;;  %7592 = vst [vmem:[#allocation58_spill] sm:$0xff] %v5438_v35  ;;  %v1332_v45 = vcombine.high %v5423_v37, %v5432_v44  ;;  %v5465_v31 = vpop.permute.xlu1 %699 }
 0x184   : > { %7593 = vst [vmem:[#allocation59_spill] sm:$0xff] %v5441_v61 }
 0x185   : > { %v718_v6 = vpop.permute.xlu0 %717  ;;  %2025 = vrot.lane.b32.xlu1 %v1332_v45, %s4903_s21  ;;  %v899_v45 = vsel %vm866_vm0, %v5215_v40, %v696_v29 }
 0x186   : > { %v903_v28 = vsel %vm866_vm0, %v5226_v53, %v718_v6 }
 0x187   : > { %v5467_v11 = vpop.permute.xlu1 %710  ;;  %v1475_v37 = vcombine.low %v899_v45, %v903_v28 }
 0x189   : > { %v729_v25 = vpop.permute.xlu0 %728  ;;  %v1483_v29 = vrot.slane %v1475_v37, %v5310_v9 }
 0x18a   : > { %v905_v18 = vsel %vm866_vm0, %v5231_v62, %v729_v25 }
 0x18b   : > { %v1491_v7 = vcombine.low %v901_v58, %v905_v18  ;;  %v5479_v44 = vpop.permute.xlu1 %721 }
 0x18d   : > { %v740_v57 = vpop.permute.xlu0 %739  ;;  %v1499_v43 = vrot.slane %v1491_v7, %v5310_v9 }
 0x18e   : > { %v907_v62 = vsel %vm866_vm0, %v5236_v14, %v740_v57 }
 0x18f   : > { %v5490_v61 = vpop.permute.xlu1 %732  ;;  %v1539_v3 = vcombine.low %v1483_v29, %v1499_v43 }
 0x191   : > { %v751_v0 = vpop.permute.xlu0 %750  ;;  %v5494_v8 = vrot.slane %v1539_v3, %v5337_v19 }
 0x192   : > { %v909_v53 = vsel %vm866_vm0, %v5241_v23, %v751_v0 }
 0x193   : > { %7596 = vst [vmem:[#allocation62_spill] sm:$0xff] %v5494_v8 }
 0x195   : > { %v762_v30 = vpop.permute.xlu0 %761 }
 0x196   : > { %v911_v38 = vsel %vm866_vm0, %v5246_v32, %v762_v30 }
 0x197   : > { %v1507_v21 = vcombine.low %v907_v62, %v911_v38  ;;  %v1508_v20 = vcombine.high %v907_v62, %v911_v38 }
 0x199   : > { %v773_v25 = vpop.permute.xlu0 %772  ;;  %v1515_v14 = vrot.slane %v1507_v21, %v5310_v9  ;;  %v1522_v35 = vrot.slane %v1508_v20, %v5310_v9 }
 0x19a   : > { %v913_v6 = vsel %vm866_vm0, %v5251_v41, %v773_v25  ;;  %v5499_v41 = vpop.permute.xlu1 %743 }
 0x19b   : > { %v1523_v40 = vcombine.low %v909_v53, %v913_v6 }
 0x19d   : > { %v1531_v32 = vrot.slane %v1523_v40, %v5310_v9  ;;  %v784_v30 = vpop.permute.xlu0 %783  ;;  %v1540_v40 = vcombine.high %v1483_v29, %v1499_v43 }
 0x19f   : > { %v1571_v57 = vcombine.low %v1515_v14, %v1531_v32  ;;  %v1572_v0 = vcombine.high %v1515_v14, %v1531_v32  ;;  %v1554_v52 = vrot.slane %v1540_v40, %v5337_v19  ;;  %v7598_v32 = vcombine.low %v5349_v1, %v5358_v13 }
 0x1a0   : > { %v1524_v14 = vcombine.high %v909_v53, %v913_v6 }
 0x1a1   : > { %v795_v7 = vpop.permute.xlu0 %794  ;;  %v5497_v23 = vrot.slane %v1571_v57, %v5337_v19  ;;  %v1586_v21 = vrot.slane %v1572_v0, %v5337_v19  ;;  %v5508_v57 = vpop.permute.xlu1 %754  ;;  %v1476_v0 = vcombine.high %v899_v45, %v903_v28 }
 0x1a2   : > { %v5518_v40 = vrot.slane %v1524_v14, %v5310_v9  ;;  %v5538_v62 = vsel %vm866_vm0, %v5261_v27, %v795_v7 }
 0x1a3   : > { %7597 = vst [vmem:[#allocation63_spill] sm:$0xff] %v5497_v23  ;;  %v1604_v37 = vcombine.high %v5494_v8, %v5497_v23  ;;  %v1605_v43 = vcombine.low %v1554_v52, %v1586_v21  ;;  %v1606_v45 = vcombine.high %v1554_v52, %v1586_v21  ;;  %v5551_v52 = vsel %vm866_vm0, %v5256_v4, %v784_v30 }
 0x1a4   : > { %v1587_v28 = vcombine.low %v1522_v35, %v5518_v40 }
 0x1a5   : > { %v806_v25 = vpop.permute.xlu0 %805  ;;  %2027 = vrot.lane.b32.xlu0 %v1604_v37, %s4903_s21  ;;  %v1492_v37 = vcombine.high %v901_v58, %v905_v18  ;;  %v5515_v34 = vpop.permute.xlu1 %765  ;;  %v7599_v18 = vcombine.high %v5349_v1, %v5358_v13  ;;  %v5533_v58 = vrot.slane %v1476_v0, %v5310_v9 }
 0x1a6   : > { %v5542_v20 = vsel %vm866_vm0, %v5267_v36, %v806_v25  ;;  %v1595_v36 = vrot.slane %v1587_v28, %v5337_v19 }
 0x1a7   : > { %v5521_v8 = vrot.slane %v1492_v37, %v5310_v9  ;;  %v1747_v6 = vcombine.low %v5551_v52, %v5542_v20 }
 0x1a9   : > { %v817_v3 = vpop.permute.xlu0 %816  ;;  %2039 = vrot.lane.b32.xlu0 %v7598_v32, %s4904_s3  ;;  %v1555_v13 = vcombine.low %v5533_v58, %v5521_v8  ;;  %v1755_v14 = vrot.slane %v1747_v6, %v5310_v9 }
 0x1aa   : > { %v5530_v38 = vsel %vm866_vm0, %v5272_v16, %v817_v3  ;;  %v777_v16 = vpop.permute.xlu1 %776 }
 0x1ab   : > { %v1763_v53 = vcombine.low %v5538_v62, %v5530_v38  ;;  %v1563_v25 = vrot.slane %v1555_v13, %v5337_v19  ;;  %v5608_v13 = vsel %vm866_vm0, %v5136_v47, %v5298_v46  ;;  %v1556_v46 = vcombine.high %v5533_v58, %v5521_v8 }
 0x1ad   : > { %v828_v29 = vpop.permute.xlu0 %827  ;;  %2043 = vrot.lane.b32.xlu0 %v1605_v43, %s4904_s3  ;;  %v1771_v21 = vrot.slane %v1763_v53, %v5310_v9  ;;  %v1608_v6 = vcombine.high %v1563_v25, %v1595_v36 }
 0x1ae   : > { %v5562_v7 = vsel %vm866_vm0, %v5277_v49, %v828_v29  ;;  %v5580_v32 = vpop.permute.xlu1 %787  ;;  %v1607_v29 = vcombine.low %v1563_v25, %v1595_v36 }
 0x1af   : > { %v1811_v37 = vcombine.low %v1755_v14, %v1771_v21 }
 0x1b1   : > { %v839_v23 = vpop.permute.xlu0 %838  ;;  %2055 = vrot.lane.b32.xlu0 %v7599_v18, %s4905_s15  ;;  %v5596_v28 = vrot.slane %v1811_v37, %v5337_v19 }
 0x1b2   : > { %v5574_v3 = vsel %vm866_vm0, %v5282_v33, %v839_v23  ;;  %v5593_v23 = vpop.permute.xlu1 %798 }
 0x1b5   : > { %v850_v1 = vpop.permute.xlu0 %849  ;;  %2059 = vrot.lane.b32.xlu0 %v1606_v45, %s4905_s15 }
 0x1b6   : > { %v5555_v27 = vsel %vm866_vm0, %v5287_v56, %v850_v1  ;;  %v7600_v56 = vcombine.low %v5352_v59, %v5361_v48  ;;  %v7601_v1 = vcombine.high %v5352_v59, %v5361_v48  ;;  %v5621_v59 = vsel %vm866_vm0, %v5142_v51, %v5301_v2  ;;  %v7602_v51 = vld [vmem:[#allocation18_spill] sm:$0xff]  ;;  %v5658_v36 = vpop.permute.xlu1 %809 }
 0x1b7   : > { %v1779_v4 = vcombine.low %v5562_v7, %v5555_v27  ;;  %v1812_v48 = vcombine.high %v1755_v14, %v1771_v21  ;;  %v5642_v2 = vsel %vm866_vm0, %v7602_v51, %v5295_v10  ;;  %v7613_v51 = vld [vmem:[#allocation28_spill] sm:$0xff] }
 0x1b8   : > { %v1067_v25 = vcombine.low %v5642_v2, %v5621_v59 }
 0x1b9   : > { %2071 = vrot.lane.b32.xlu0 %v7600_v56, %s4906_s18  ;;  %v861_v30 = vpop.permute.xlu0 %860  ;;  %v1787_v0 = vrot.slane %v1779_v4, %v5310_v9  ;;  %v1826_v37 = vrot.slane %v1812_v48, %v5337_v19 }
 0x1ba   : > { %v5578_v49 = vsel %vm866_vm0, %v5292_v26, %v861_v30  ;;  %v5591_v26 = vsel %vm866_vm0, %v5147_v54, %v5307_v39  ;;  %v5613_v54 = vsel %vm866_vm0, %v5167_v5, %v5330_v15  ;;  %v1588_v39 = vcombine.high %v1522_v35, %v5518_v40  ;;  %v7604_v35 = vld [vmem:[#allocation19_spill] sm:$0xff] }
 0x1bb   : > { %v1795_v43 = vcombine.low %v5574_v3, %v5578_v49  ;;  %v1083_v47 = vcombine.low %v5608_v13, %v5591_v26  ;;  %v5630_v5 = vsel %vm866_vm0, %v5157_v60, %v5322_v42  ;;  %v5635_v15 = vsel %vm866_vm0, %v5162_v63, %v5324_v24  ;;  %v7603_v42 = vld [vmem:[#allocation45_spill] sm:$0xff]  ;;  %v7605_v24 = vld [vmem:[#allocation35_spill] sm:$0xff] }
 0x1bc   : > { %v1115_v8 = vcombine.low %v5630_v5, %v5613_v54  ;;  %v5651_v63 = vsel %vm866_vm0, %v7604_v35, %v7603_v42  ;;  %v5655_v40 = vsel %vm866_vm0, %v7605_v24, %v777_v16  ;;  %v1602_v58 = vrot.slane %v1588_v39, %v5337_v19  ;;  %v7606_v16 = vld [vmem:[#allocation33_spill] sm:$0xff] }
 0x1bd   : > { %v1803_v18 = vrot.slane %v1795_v43, %v5310_v9  ;;  %2075 = vrot.lane.b32.xlu0 %v1607_v29, %s4906_s18  ;;  %v5664_v21 = vrot.slane %v1083_v47, %v5310_v9  ;;  %v1099_v56 = vcombine.low %v5651_v63, %v5635_v15  ;;  %v1570_v30 = vrot.slane %v1556_v46, %v5337_v19  ;;  %v7607_v43 = vld [vmem:[#allocation34_spill] sm:$0xff] }
 0x1be   : > { %v5672_v14 = vsel %vm866_vm0, %v7606_v16, %v5508_v57  ;;  %v5677_v29 = vsel %vm866_vm0, %v7607_v43, %v5515_v34  ;;  %v5689_v57 = vrot.slane %v1115_v8, %v5310_v9  ;;  %v1796_v47 = vcombine.high %v5574_v3, %v5578_v49  ;;  %v7614_v8 = vld [vmem:[#allocation29_spill] sm:$0xff]  ;;  %v5727_v49 = vpop.permute.xlu1 %820 }
 0x1bf   : > { %v1843_v33 = vcombine.low %v1787_v0, %v1803_v18  ;;  %v1844_v53 = vcombine.high %v1787_v0, %v1803_v18  ;;  %v7608_v0 = vcombine.low %v5369_v50, %v5364_v17  ;;  %v7609_v18 = vcombine.low %v5426_v12, %v5435_v55 }
 0x1c0   : > { %v1609_v46 = vcombine.low %v1570_v30, %v1602_v58  ;;  %v5721_v42 = vsel %vm866_vm0, %v7614_v8, %v5467_v11  ;;  %v1764_v35 = vcombine.high %v5538_v62, %v5530_v38  ;;  %v1075_v11 = vrot.slane %v1067_v25, %v5310_v9 }
 0x1c1   : > { %v5599_v45 = vrot.slane %v1843_v33, %v5337_v19  ;;  %2087 = vrot.lane.b32.xlu0 %v7601_v1, %s4907_s19  ;;  %v1858_v10 = vrot.slane %v1844_v53, %v5337_v19  ;;  %v7610_v33 = vld [vmem:[#allocation30_spill] sm:$0xff]  ;;  %v7611_v1 = vld [vmem:[#allocation31_spill] sm:$0xff]  ;;  %v1659_v53 = vcombine.low %v5672_v14, %v5655_v40  ;;  %v1748_v38 = vcombine.high %v5551_v52, %v5542_v20 }
 0x1c2   : > { %v5694_v34 = vsel %vm866_vm0, %v7610_v33, %v5479_v44  ;;  %v5699_v39 = vsel %vm866_vm0, %v7611_v1, %v5490_v61  ;;  %v5711_v44 = vrot.slane %v1099_v56, %v5310_v9  ;;  %v5716_v61 = vsel %vm866_vm0, %v7613_v51, %v5465_v31 }
 0x1c3   : > { %v1876_v4 = vcombine.high %v5596_v28, %v5599_v45  ;;  %v1877_v48 = vcombine.low %v1826_v37, %v1858_v10  ;;  %v1627_v3 = vcombine.low %v5721_v42, %v5699_v39  ;;  %v1780_v31 = vcombine.high %v5562_v7, %v5555_v27 }
 0x1c4   : > { %v1163_v24 = vcombine.low %v5711_v44, %v5689_v57  ;;  %v1611_v56 = vcombine.low %v5716_v61, %v5694_v34  ;;  %v5741_v16 = vrot.slane %v1659_v53, %v5310_v9  ;;  %v5746_v62 = vrot.slane %v1796_v47, %v5310_v9 }
 0x1c5   : > { %2091 = vrot.lane.b32.xlu0 %v1608_v6, %s4907_s19  ;;  %2029 = vrot.lane.b32.xlu1 %v1876_v4, %s4903_s21  ;;  %v7612_v6 = vld [vmem:[#allocation32_spill] sm:$0xff]  ;;  %v1131_v27 = vcombine.low %v1075_v11, %v5664_v21  ;;  %v5753_v25 = vrot.slane %v1627_v3, %v5310_v9  ;;  %v5756_v43 = vrot.slane %v1764_v35, %v5310_v9 }
 0x1c6   : > { %v5706_v4 = vsel %vm866_vm0, %v7612_v6, %v5499_v41  ;;  %v7615_v20 = vcombine.high %v5369_v50, %v5364_v17  ;;  %v7616_v52 = vcombine.high %v5426_v12, %v5435_v55  ;;  %v5771_v33 = vrot.slane %v1611_v56, %v5310_v9  ;;  %v5778_v6 = vpop.permute.xlu1 %831 }
 0x1c7   : > { %v1643_v41 = vcombine.low %v5706_v4, %v5677_v29  ;;  %v5776_v53 = vrot.slane %v1748_v38, %v5310_v9  ;;  %v1610_v50 = vcombine.high %v1570_v30, %v1602_v58  ;;  %v1878_v47 = vcombine.high %v1826_v37, %v1858_v10  ;;  %v7617_v37 = vld [vmem:[#allocation58_spill] sm:$0xff] }
 0x1c8   : > { %v1139_v12 = vrot.slane %v1131_v27, %v5337_v19  ;;  %v1675_v55 = vcombine.low %v5771_v33, %v5753_v25  ;;  %v1164_v56 = vcombine.high %v5711_v44, %v5689_v57  ;;  %v7621_v44 = vld [vmem:[#allocation52_spill] sm:$0xff] }
 0x1c9   : > { %2103 = vrot.lane.b32.xlu0 %v7608_v0, %s4908_s26  ;;  %2041 = vrot.lane.b32.xlu1 %v7609_v18, %s4904_s3  ;;  %v5750_v7 = vrot.slane %v1643_v41, %v5310_v9  ;;  %v5759_v0 = vrot.slane %v1780_v31, %v5310_v9  ;;  %v1171_v18 = vrot.slane %v1163_v24, %v5337_v19 }
 0x1ca   : > { %v1683_v58 = vrot.slane %v1675_v55, %v5337_v19  ;;  %v843_v30 = vpop.permute.xlu1 %842  ;;  %v7618_v41 = vcombine.low %v5429_v22, %v7617_v37  ;;  %v1132_v31 = vcombine.high %v1075_v11, %v5664_v21  ;;  %v1116_v24 = vcombine.high %v5630_v5, %v5613_v54  ;;  %v7619_v11 = vld [vmem:[#allocation51_spill] sm:$0xff] }
 0x1cb   : > { %v1707_v1 = vcombine.low %v5750_v7, %v5741_v16  ;;  %v1859_v17 = vcombine.low %v5759_v0, %v5746_v62  ;;  %v1195_v8 = vcombine.low %v1139_v12, %v1171_v18  ;;  %v1196_v27 = vcombine.high %v1139_v12, %v1171_v18  ;;  %v7622_v18 = vld [vmem:[#allocation23_spill] sm:$0xff]  ;;  %v7628_v12 = vld [vmem:[#allocation61_spill] sm:$0xff] }
 0x1cc   : > { %v5810_v21 = vrot.slane %v1132_v31, %v5337_v19  ;;  %v1100_v54 = vcombine.high %v5651_v63, %v5635_v15  ;;  %v5815_v5 = vrot.slane %v1116_v24, %v5310_v9  ;;  %v7624_v15 = vld [vmem:[#allocation47_spill] sm:$0xff]  ;;  %v7630_v31 = vld [vmem:[#allocation54_spill] sm:$0xff]  ;;  %v7631_v24 = vld [vmem:[#allocation25_spill] sm:$0xff] }
 0x1cd   : > { %2107 = vrot.lane.b32.xlu0 %v1609_v46, %s4908_s26  ;;  %2045 = vrot.lane.b32.xlu1 %v1877_v48, %s4904_s3  ;;  %v1827_v46 = vcombine.low %v5776_v53, %v5756_v43  ;;  %v1715_v48 = vrot.slane %v1707_v1, %v5337_v19  ;;  %v1867_v51 = vrot.slane %v1859_v17, %v5337_v19  ;;  %v7620_v1 = vld [vmem:[#allocation22_spill] sm:$0xff]  ;;  %v7629_v55 = vld [vmem:[#allocation27_spill] sm:$0xff] }
 0x1ce   : > { %v854_v38 = vpop.permute.xlu1 %853  ;;  %v5820_v57 = vsel %vm866_vm0, %v7620_v1, %v7619_v11  ;;  %v7626_v17 = vld [vmem:[#allocation50_spill] sm:$0xff]  ;;  %v7634_v1 = vld [vmem:[#allocation53_spill] sm:$0xff] }
 0x1cf   : > { %v1835_v10 = vrot.slane %v1827_v46, %v5337_v19  ;;  %v1739_v3 = vcombine.low %v1683_v58, %v1715_v48  ;;  %v5848_v46 = vsel %vm866_vm0, %v7629_v55, %v7628_v12  ;;  %v7633_v11 = vld [vmem:[#allocation26_spill] sm:$0xff]  ;;  %v7637_v12 = vld [vmem:[#allocation60_spill] sm:$0xff]  ;;  %v7638_v55 = vld [vmem:[#allocation59_spill] sm:$0xff] }
 0x1d1   : > { %2119 = vrot.lane.b32.xlu0 %v7615_v20, %s4909_s2  ;;  %2057 = vrot.lane.b32.xlu1 %v7616_v52, %s4905_s15  ;;  %v1879_v35 = vcombine.low %v1835_v10, %v1867_v51  ;;  %v1068_v20 = vcombine.high %v5642_v2, %v5621_v59  ;;  %v1084_v52 = vcombine.high %v5608_v13, %v5591_v26  ;;  %v7625_v2 = vld [vmem:[#allocation20_spill] sm:$0xff] }
 0x1d2   : > { %v5825_v59 = vsel %vm866_vm0, %v7622_v18, %v7621_v44  ;;  %v7623_v26 = vcombine.high %v5429_v22, %v7617_v37  ;;  %v5833_v13 = vrot.slane %v1164_v56, %v5337_v19  ;;  %v5838_v63 = vsel %vm866_vm0, %v7625_v2, %v7624_v15  ;;  %v7635_v44 = vld [vmem:[#allocation24_spill] sm:$0xff] }
 0x1d3   : > { %v1708_v22 = vcombine.high %v5750_v7, %v5741_v16  ;;  %v1740_v37 = vcombine.high %v1683_v58, %v1715_v48  ;;  %v5861_v56 = vsel %vm866_vm0, %v7631_v24, %v7630_v31  ;;  %v1676_v7 = vcombine.high %v5771_v33, %v5753_v25  ;;  %v865_v48 = vpop.permute.xlu1 %864  ;;  %v7642_v31 = vld [vmem:[#allocation42_spill] sm:$0xff] }
 0x1d4   : > { %v5880_v58 = vrot.slane %v1084_v52, %v5310_v9  ;;  %v5888_v25 = vsel %vm866_vm0, %v7635_v44, %v7634_v1  ;;  %v5931_v24 = vsel %vm866_vm0, %v7642_v31, %v854_v38  ;;  %v1628_v1 = vcombine.high %v5721_v42, %v5699_v39  ;;  %v7646_v39 = vld [vmem:[#allocation36_spill] sm:$0xff] }
 0x1d5   : > { %2123 = vrot.lane.b32.xlu0 %v1610_v50, %s4909_s2  ;;  %2061 = vrot.lane.b32.xlu1 %v1878_v47, %s4905_s15  ;;  %v7627_v50 = vld [vmem:[#allocation21_spill] sm:$0xff]  ;;  %v1722_v33 = vrot.slane %v1708_v22, %v5337_v19  ;;  %v7639_v22 = vcombine.low %v7637_v12, %v7638_v55  ;;  %v5973_v42 = vsel %vm866_vm0, %v7646_v39, %v5580_v32 }
 0x1d6   : > { %v5843_v47 = vsel %vm866_vm0, %v7627_v50, %v7626_v17  ;;  %v1690_v17 = vrot.slane %v1676_v7, %v5337_v19  ;;  %v7644_v7 = vld [vmem:[#allocation38_spill] sm:$0xff] }
 0x1d7   : > { %v5948_v38 = vsel %vm866_vm0, %v7644_v7, %v5658_v36 }
 0x1d8   : > { %v1883_v44 = vcombine.low %v5973_v42, %v5948_v38 }
 0x1d9   : > { %2135 = vrot.lane.b32.xlu0 %v1195_v8, %s4910_s4  ;;  %2073 = vrot.lane.b32.xlu1 %v7618_v41, %s4906_s18  ;;  %v1860_v8 = vcombine.high %v5759_v0, %v5746_v62  ;;  %v1880_v41 = vcombine.high %v1835_v10, %v1867_v51  ;;  %v1387_v62 = vcombine.low %v5861_v56, %v5848_v46 }
 0x1da   : > { %v1828_v0 = vcombine.high %v5776_v53, %v5756_v43  ;;  %v5877_v51 = vrot.slane %v1068_v20, %v5310_v9  ;;  %v5883_v10 = vrot.slane %v1100_v54, %v5310_v9  ;;  %v1197_v20 = vcombine.low %v5810_v21, %v5833_v13 }
 0x1db   : > { %v1874_v53 = vrot.slane %v1860_v8, %v5337_v19  ;;  %v5909_v2 = vrot.slane %v1387_v62, %v5310_v9  ;;  %v1660_v8 = vcombine.high %v5672_v14, %v5655_v40  ;;  %v1741_v40 = vcombine.low %v1690_v17, %v1722_v33  ;;  %v7643_v62 = vld [vmem:[#allocation37_spill] sm:$0xff] }
 0x1dc   : > { %v1179_v52 = vcombine.low %v5883_v10, %v5815_v5  ;;  %v1842_v50 = vrot.slane %v1828_v0, %v5337_v19  ;;  %v7645_v0 = vld [vmem:[#allocation40_spill] sm:$0xff] }
 0x1dd   : > { %2139 = vrot.lane.b32.xlu0 %v1739_v3, %s4910_s4  ;;  %2077 = vrot.lane.b32.xlu1 %v1879_v35, %s4906_s18  ;;  %v1339_v3 = vcombine.low %v5838_v63, %v5820_v57  ;;  %v1355_v35 = vcombine.low %v5843_v47, %v5825_v59 }
 0x1de   : > { %v1881_v14 = vcombine.low %v1842_v50, %v1874_v53 }
 0x1df   : > { %v5899_v54 = vrot.slane %v1339_v3, %v5310_v9  ;;  %v5902_v18 = vrot.slane %v1355_v35, %v5310_v9  ;;  %v7641_v3 = vld [vmem:[#allocation41_spill] sm:$0xff] }
 0x1e0   : > { %v5927_v35 = vsel %vm866_vm0, %v7641_v3, %v843_v30  ;;  %v5943_v30 = vsel %vm866_vm0, %v7643_v62, %v5593_v23 }
 0x1e1   : > { %2151 = vrot.lane.b32.xlu0 %v1196_v27, %s7505_s5  ;;  %2089 = vrot.lane.b32.xlu1 %v7623_v26, %s4907_s19  ;;  %v7632_v27 = vld [vmem:[#allocation55_spill] sm:$0xff] }
 0x1e2   : > { %v5866_v16 = vsel %vm866_vm0, %v7633_v11, %v7632_v27  ;;  %v7636_v26 = vld [vmem:[#allocation43_spill] sm:$0xff] }
 0x1e3   : > { %v1371_v43 = vcombine.low %v5888_v25, %v5866_v16  ;;  %v5906_v15 = vsel %vm866_vm0, %v7636_v26, %v865_v48  ;;  %v5953_v48 = vsel %vm866_vm0, %v7645_v0, %v5778_v6  ;;  %v5968_v6 = vrot.slane %v1660_v8, %v5310_v9 }
 0x1e4   : > { %v1931_v11 = vcombine.low %v5927_v35, %v5906_v15  ;;  %v1915_v23 = vcombine.low %v5953_v48, %v5931_v24  ;;  %v1147_v26 = vcombine.low %v5877_v51, %v5880_v58 }
 0x1e5   : > { %2155 = vrot.lane.b32.xlu0 %v1740_v37, %s7505_s5  ;;  %2093 = vrot.lane.b32.xlu1 %v1880_v41, %s4907_s19  ;;  %v7640_v37 = vld [vmem:[#allocation39_spill] sm:$0xff]  ;;  %v5934_v27 = vrot.slane %v1371_v43, %v5310_v9 }
 0x1e6   : > { %v5923_v41 = vsel %vm866_vm0, %v7640_v37, %v5727_v49  ;;  %v1644_v49 = vcombine.high %v5706_v4, %v5677_v29  ;;  %v1612_v4 = vcombine.high %v5716_v61, %v5694_v34  ;;  %v1939_v43 = vrot.slane %v1931_v11, %v5310_v9 }
 0x1e7   : > { %v1899_v29 = vcombine.low %v5943_v30, %v5923_v41  ;;  %v1435_v36 = vcombine.low %v5934_v27, %v5909_v2  ;;  %v1403_v34 = vcombine.low %v5899_v54, %v5902_v18  ;;  %v1923_v8 = vrot.slane %v1915_v23, %v5310_v9 }
 0x1e8   : > { %v1658_v61 = vrot.slane %v1644_v49, %v5310_v9  ;;  %v1626_v3 = vrot.slane %v1612_v4, %v5310_v9  ;;  %v1891_v11 = vrot.slane %v1883_v44, %v5310_v9  ;;  %v1882_v49 = vcombine.high %v1842_v50, %v1874_v53 }
 0x1e9   : > { %2167 = vrot.lane.b32.xlu0 %v1197_v20, %s4912_s14  ;;  %2105 = vrot.lane.b32.xlu1 %v7639_v22, %s4908_s26  ;;  %v1198_v20 = vcombine.high %v5810_v21, %v5833_v13  ;;  %v1642_v22 = vrot.slane %v1628_v1, %v5310_v9  ;;  %v1907_v32 = vrot.slane %v1899_v29, %v5310_v9 }
 0x1ea   : > { %v7647_v21 = vcombine.high %v7637_v12, %v7638_v55  ;;  %v1187_v13 = vrot.slane %v1179_v52, %v5337_v19  ;;  %v1443_v37 = vrot.slane %v1435_v36, %v5337_v19  ;;  %v1723_v31 = vcombine.low %v1658_v61, %v5968_v6 }
 0x1eb   : > { %v1155_v62 = vrot.slane %v1147_v26, %v5337_v19  ;;  %v1411_v7 = vrot.slane %v1403_v34, %v5337_v19  ;;  %v1691_v0 = vcombine.low %v1626_v3, %v1642_v22  ;;  %v1947_v12 = vcombine.low %v1891_v11, %v1907_v32 }
 0x1ec   : > { %v1731_v52 = vrot.slane %v1723_v31, %v5337_v19  ;;  %v1180_v50 = vcombine.high %v5883_v10, %v5815_v5  ;;  %v1436_v36 = vcombine.high %v5934_v27, %v5909_v2  ;;  %v1148_v44 = vcombine.high %v5877_v51, %v5880_v58 }
 0x1ed   : > { %2171 = vrot.lane.b32.xlu0 %v1741_v40, %s4912_s14  ;;  %2109 = vrot.lane.b32.xlu1 %v1881_v14, %s4908_s26  ;;  %v1979_v40 = vcombine.low %v1923_v8, %v1939_v43  ;;  %v1742_v14 = vcombine.high %v1690_v17, %v1722_v33  ;;  %v1199_v1 = vcombine.low %v1155_v62, %v1187_v13 }
 0x1ee   : > { %v1467_v29 = vcombine.low %v1411_v7, %v1443_v37  ;;  %v1699_v23 = vrot.slane %v1691_v0, %v5337_v19  ;;  %v1955_v33 = vrot.slane %v1947_v12, %v5337_v19  ;;  %v1200_v4 = vcombine.high %v1155_v62, %v1187_v13 }
 0x1ef   : > { %v1987_v55 = vrot.slane %v1979_v40, %v5337_v19  ;;  %v1468_v39 = vcombine.high %v1411_v7, %v1443_v37  ;;  %v1194_v26 = vrot.slane %v1180_v50, %v5337_v19  ;;  %v1450_v5 = vrot.slane %v1436_v36, %v5337_v19 }
 0x1f0   : > { %v1743_v53 = vcombine.low %v1699_v23, %v1731_v52  ;;  %v1724_v10 = vcombine.high %v1658_v61, %v5968_v6  ;;  %v1980_v2 = vcombine.high %v1923_v8, %v1939_v43  ;;  %v1744_v27 = vcombine.high %v1699_v23, %v1731_v52 }
 0x1f1   : > { %2183 = vrot.lane.b32.xlu0 %v1198_v20, %s4913_s23  ;;  %2121 = vrot.lane.b32.xlu1 %v7647_v21, %s4909_s2  ;;  %v2011_v17 = vcombine.low %v1955_v33, %v1987_v55  ;;  %v1404_v20 = vcombine.high %v5899_v54, %v5902_v18  ;;  %v2012_v34 = vcombine.high %v1955_v33, %v1987_v55  ;;  %v7648_v55 = vld [vmem:[#allocation11_spill] sm:$0xff] }
 0x1f2   : > { %v1162_v21 = vrot.slane %v1148_v44, %v5337_v19  ;;  %v1692_v58 = vcombine.high %v1626_v3, %v1642_v22  ;;  %v1948_v54 = vcombine.high %v1891_v11, %v1907_v32  ;;  %v1388_v18 = vcombine.high %v5861_v56, %v5848_v46 }
 0x1f3   : > { %v1418_v51 = vrot.slane %v1404_v20, %v5337_v19  ;;  %v1738_v13 = vrot.slane %v1724_v10, %v5337_v19  ;;  %v1994_v6 = vrot.slane %v1980_v2, %v5337_v19  ;;  %v1372_v8 = vcombine.high %v5888_v25, %v5866_v16  ;;  %v7651_v2 = vld [vmem:[#allocation13_spill] sm:$0xff] }
 0x1f4   : > { %v1201_v43 = vcombine.low %v1162_v21, %v1194_v26  ;;  %v1356_v22 = vcombine.high %v5843_v47, %v5825_v59  ;;  %v1706_v32 = vrot.slane %v1692_v58, %v5337_v19  ;;  %v1962_v37 = vrot.slane %v1948_v54, %v5337_v19 }
 0x1f5   : > { %2187 = vrot.lane.b32.xlu0 %v1742_v14, %s4913_s23  ;;  %2125 = vrot.lane.b32.xlu1 %v1882_v49, %s4909_s2  ;;  %v1469_v61 = vcombine.low %v1418_v51, %v1450_v5  ;;  %v1402_v46 = vrot.slane %v1388_v18, %v5310_v9  ;;  %v1340_v56 = vcombine.high %v5838_v63, %v5820_v57 }
 0x1f6   : > { %v1932_v16 = vcombine.high %v5927_v35, %v5906_v15  ;;  %v1745_v25 = vcombine.low %v1706_v32, %v1738_v13  ;;  %v2013_v3 = vcombine.low %v1962_v37, %v1994_v6  ;;  %v1386_v59 = vrot.slane %v1372_v8, %v5310_v9 }
 0x1f7   : > { %v1370_v47 = vrot.slane %v1356_v22, %v5310_v9  ;;  %v1900_v31 = vcombine.high %v5943_v30, %v5923_v41  ;;  %v1916_v11 = vcombine.high %v5953_v48, %v5931_v24  ;;  %v1202_v63 = vcombine.high %v1162_v21, %v1194_v26  ;;  %v4666_v48 = vld [vmem:[%s5065_s30 + $0x40] sm:$0xff] }
 0x1f8   : > { %v1451_v57 = vcombine.low %v1386_v59, %v1402_v46  ;;  %v1354_v15 = vrot.slane %v1340_v56, %v5310_v9  ;;  %v1884_v35 = vcombine.high %v5973_v42, %v5948_v38  ;;  %v1946_v40 = vrot.slane %v1932_v16, %v5310_v9  ;;  %v6063_v38 = vpop.permute.xlu0 %2023  ;;  %v7654_v16 = vld [vmem:[#allocation16_spill] sm:$0xff] }
 0x1f9   : > { %2199 = vrot.lane.b32.xlu0 %v1199_v1, %s4914_s20  ;;  %2137 = vrot.lane.b32.xlu1 %v1467_v29, %s4910_s4  ;;  %v1470_v14 = vcombine.high %v1418_v51, %v1450_v5  ;;  %v1914_v41 = vrot.slane %v1900_v31, %v5310_v9  ;;  %v1930_v24 = vrot.slane %v1916_v11, %v5310_v9  ;;  %v4667_v11 = vld [vmem:[%s5065_s30 + $0x48] sm:$0xff] }
 0x1fa   : > { %v1419_v49 = vcombine.low %v1354_v15, %v1370_v47  ;;  %v1459_v30 = vrot.slane %v1451_v57, %v5337_v19  ;;  %v1898_v62 = vrot.slane %v1884_v35, %v5310_v9  ;;  %v1746_v42 = vcombine.high %v1706_v32, %v1738_v13  ;;  %v7652_v13 = vld [vmem:[#allocation14_spill] sm:$0xff]  ;;  %v7653_v32 = vld [vmem:[#allocation15_spill] sm:$0xff]  ;;  %v6104_v57 = vpop.permute.xlu1 %2025 }
 0x1fb   : > { %v1995_v7 = vcombine.low %v1930_v24, %v1946_v40  ;;  %v2014_v0 = vcombine.high %v1962_v37, %v1994_v6  ;;  %v2354_v1 = vrot.slane %v4666_v48, %v7648_v55  ;;  %v1452_v20 = vcombine.high %v1386_v59, %v1402_v46 }
 0x1fc   : > { %v1427_v12 = vrot.slane %v1419_v49, %v5337_v19  ;;  %v1963_v52 = vcombine.low %v1898_v62, %v1914_v41  ;;  %v1420_v10 = vcombine.high %v1354_v15, %v1370_v47  ;;  %v1996_v21 = vcombine.high %v1930_v24, %v1946_v40  ;;  %v7655_v47 = vld [vmem:[#allocation17_spill] sm:$0xff] }
 0x1fd   : > { %2203 = vrot.lane.b32.xlu0 %v1743_v53, %s4914_s20  ;;  %2141 = vrot.lane.b32.xlu1 %v2011_v17, %s4910_s4  ;;  %v2003_v29 = vrot.slane %v1995_v7, %v5337_v19  ;;  %v7649_v17 = vld [vmem:[#allocation10_spill] sm:$0xff]  ;;  %v1964_v18 = vcombine.high %v1898_v62, %v1914_v41  ;;  %v2398_v6 = vrot.slane %v4666_v48, %v7652_v13 }
 0x1fe   : > { %v1471_v33 = vcombine.low %v1427_v12, %v1459_v30  ;;  %v1971_v53 = vrot.slane %v1963_v52, %v5337_v19  ;;  %v2365_v50 = vrot.slane %v4666_v48, %v7649_v17  ;;  %v1472_v5 = vcombine.high %v1427_v12, %v1459_v30 }
 0x1ff   : > { %v1434_v54 = vrot.slane %v1420_v10, %v5337_v19  ;;  %v1978_v22 = vrot.slane %v1964_v18, %v5337_v19  ;;  %v2409_v37 = vrot.slane %v4666_v48, %v7653_v32  ;;  %v2431_v31 = vrot.slane %v4666_v48, %v7655_v47 }
 0x200   : > { %v2016_v58 = vcombine.high %v1971_v53, %v2003_v29  ;;  %v2442_v35 = vrot.slane %v4667_v11, %v7648_v55  ;;  %v2453_v49 = vrot.slane %v4667_v11, %v7649_v17  ;;  %v2475_v7 = vrot.slane %v4667_v11, %v7651_v2 }
 0x201   : > { %2215 = vrot.lane.b32.xlu0 %v1200_v4, %s4915_s28  ;;  %2153 = vrot.lane.b32.xlu1 %v1468_v39, %s7505_s5  ;;  %v2015_v4 = vcombine.low %v1971_v53, %v2003_v29  ;;  %v7650_v39 = vld [vmem:[#allocation12_spill] sm:$0xff]  ;;  %v2486_v12 = vrot.slane %v4667_v11, %v7652_v13  ;;  %v2497_v29 = vrot.slane %v4667_v11, %v7653_v32 }
 0x202   : > { %v2376_v44 = vrot.slane %v4666_v48, %v7650_v39  ;;  %v2464_v30 = vrot.slane %v4667_v11, %v7650_v39 }
 0x205   : > { %2219 = vrot.lane.b32.xlu0 %v1744_v27, %s4915_s28  ;;  %2157 = vrot.lane.b32.xlu1 %v2012_v34, %s7505_s5  ;;  %s7511_s5 = smov 30   ;;  %v2387_v27 = vrot.slane %v4666_v48, %v7651_v2  ;;  %v1466_v34 = vrot.slane %v1452_v20, %v5337_v19  ;;  %v2519_v20 = vrot.slane %v4667_v11, %v7655_v47 }
 0x207   : > { %v1473_v8 = vcombine.low %v1434_v54, %v1466_v34  ;;  %v1474_v59 = vcombine.high %v1434_v54, %v1466_v34 }
 0x209   : > { %2231 = vrot.lane.b32.xlu0 %v1201_v43, %s7513_s29  ;;  %2169 = vrot.lane.b32.xlu1 %v1469_v61, %s4912_s14  ;;  %v2010_v43 = vrot.slane %v1996_v21, %v5337_v19  ;;  %v6205_v19 = vld [vmem:[%s5065_s30 + $0x58] sm:$0xff] }
 0x20b   : > { %v2017_v56 = vcombine.low %v1978_v22, %v2010_v43  ;;  %v2018_v15 = vcombine.high %v1978_v22, %v2010_v43 }
 0x20d   : > { %2235 = vrot.lane.b32.xlu0 %v1745_v25, %s7513_s29  ;;  %2173 = vrot.lane.b32.xlu1 %v2013_v3, %s4912_s14  ;;  %v2420_v25 = vrot.slane %v4666_v48, %v7654_v16 }
 0x211   : > { %2247 = vrot.lane.b32.xlu0 %v1202_v63, %s7511_s5  ;;  %2185 = vrot.lane.b32.xlu1 %v1470_v14, %s4913_s23 }
 0x215   : > { %2251 = vrot.lane.b32.xlu0 %v1746_v42, %s7511_s5  ;;  %2189 = vrot.lane.b32.xlu1 %v2014_v0, %s4913_s23 }
 0x217   : > { %v6070_v23 = vpop.permute.xlu0 %2027 }
 0x219   : > { %2356 = vbcast.lane.b32.xlu0 %v2354_v1, 256  ;;  %2201 = vrot.lane.b32.xlu1 %v1471_v33, %s4914_s20 }
 0x21b   : > { %v6075_v36 = vpop.permute.xlu0 %2039 }
 0x21d   : > { %2367 = vbcast.lane.b32.xlu0 %v2365_v50, 256  ;;  %2205 = vrot.lane.b32.xlu1 %v2015_v4, %s4914_s20 }
 0x21f   : > { %v6079_v26 = vpop.permute.xlu0 %2043 }
 0x221   : > { %2378 = vbcast.lane.b32.xlu0 %v2376_v44, 256  ;;  %2217 = vrot.lane.b32.xlu1 %v1472_v5, %s4915_s28  ;;  %v4668_v5 = vld [vmem:[%s5065_s30 + $0x50] sm:$0xff] }
 0x222   : > { %v2530_v34 = vrot.slane %v4668_v5, %v7648_v55  ;;  %v6156_v54 = vrot.slane %v4668_v5, %v7649_v17  ;;  %v6164_v43 = vrot.slane %v4668_v5, %v7650_v39 }
 0x223   : > { %v6084_v51 = vpop.permute.xlu0 %2055 }
 0x225   : > { %2389 = vbcast.lane.b32.xlu0 %v2387_v27, 256  ;;  %2221 = vrot.lane.b32.xlu1 %v2016_v58, %s4915_s28 }
 0x227   : > { %v6090_v61 = vpop.permute.xlu0 %2059 }
 0x229   : > { %2400 = vbcast.lane.b32.xlu0 %v2398_v6, 256  ;;  %2233 = vrot.lane.b32.xlu1 %v1473_v8, %s7513_s29 }
 0x22b   : > { %v6095_v46 = vpop.permute.xlu0 %2071 }
 0x22d   : > { %2411 = vbcast.lane.b32.xlu0 %v2409_v37, 256  ;;  %2237 = vrot.lane.b32.xlu1 %v2017_v56, %s7513_s29 }
 0x22f   : > { %v6099_v3 = vpop.permute.xlu0 %2075 }
 0x231   : > { %2422 = vbcast.lane.b32.xlu0 %v2420_v25, 256  ;;  %2249 = vrot.lane.b32.xlu1 %v1474_v59, %s7511_s5  ;;  %v6180_v59 = vrot.slane %v4668_v5, %v7652_v13 }
 0x233   : > { %v6106_v63 = vpop.permute.xlu0 %2087 }
 0x235   : > { %2433 = vbcast.lane.b32.xlu0 %v2431_v31, 256  ;;  %2253 = vrot.lane.b32.xlu1 %v2018_v15, %s7511_s5  ;;  %v6188_v15 = vrot.slane %v4668_v5, %v7653_v32  ;;  %s4658_s5 = sshll.u32 %s5061_s24, 6 }
 0x236   : > { %s6296_s29 = scalar_lea.vmem [#allocation5], %s4658_s5 }
 0x237   : > { %v6110_v40 = vpop.permute.xlu1 %2029  ;;  %v6112_v14 = vpop.permute.xlu0 %2091 }
 0x239   : > { %2444 = vbcast.lane.b32.xlu0 %v2442_v35, 256  ;;  %2360 = vbcast.lane.b32.xlu1 %v2354_v1, 264 }
 0x23b   : > { %v6115_v41 = vpop.permute.xlu1 %2041  ;;  %v6117_v24 = vpop.permute.xlu0 %2103 }
 0x23d   : > { %2455 = vbcast.lane.b32.xlu0 %v2453_v49, 256  ;;  %2371 = vbcast.lane.b32.xlu1 %v2365_v50, 264  ;;  %v2508_v50 = vrot.slane %v4667_v11, %v7654_v16 }
 0x23f   : > { %v6120_v48 = vpop.permute.xlu1 %2045  ;;  %v6122_v62 = vpop.permute.xlu0 %2107 }
 0x241   : > { %2466 = vbcast.lane.b32.xlu0 %v2464_v30, 256  ;;  %2382 = vbcast.lane.b32.xlu1 %v2376_v44, 264 }
 0x243   : > { %v6125_v42 = vpop.permute.xlu1 %2057  ;;  %v6127_v0 = vpop.permute.xlu0 %2119 }
 0x245   : > { %2477 = vbcast.lane.b32.xlu0 %v2475_v7, 256  ;;  %2393 = vbcast.lane.b32.xlu1 %v2387_v27, 264 }
 0x247   : > { %v6130_v52 = vpop.permute.xlu1 %2061  ;;  %v6132_v1 = vpop.permute.xlu0 %2123 }
 0x249   : > { %2488 = vbcast.lane.b32.xlu0 %v2486_v12, 256  ;;  %2404 = vbcast.lane.b32.xlu1 %v2398_v6, 264 }
 0x24b   : > { %v6135_v33 = vpop.permute.xlu1 %2073  ;;  %v6137_v53 = vpop.permute.xlu0 %2135 }
 0x24d   : > { %2499 = vbcast.lane.b32.xlu0 %v2497_v29, 256  ;;  %2415 = vbcast.lane.b32.xlu1 %v2409_v37, 264  ;;  %v6172_v37 = vrot.slane %v4668_v5, %v7651_v2 }
 0x24f   : > { %v6140_v4 = vpop.permute.xlu1 %2077  ;;  %v6142_v44 = vpop.permute.xlu0 %2139 }
 0x250   : > { %7656 = vst [vmem:[#allocation18_spill] sm:$0xff] %v6140_v4 }
 0x251   : > { %2510 = vbcast.lane.b32.xlu0 %v2508_v50, 256  ;;  %2426 = vbcast.lane.b32.xlu1 %v2420_v25, 264 }
 0x253   : > { %v6146_v10 = vpop.permute.xlu1 %2089  ;;  %v6148_v27 = vpop.permute.xlu0 %2151 }
 0x255   : > { %2521 = vbcast.lane.b32.xlu0 %v2519_v20, 256  ;;  %2437 = vbcast.lane.b32.xlu1 %v2431_v31, 264 }
 0x257   : > { %v6151_v21 = vpop.permute.xlu1 %2093  ;;  %v6153_v58 = vpop.permute.xlu0 %2155 }
 0x258   : > { %7657 = vst [vmem:[#allocation45_spill] sm:$0xff] %v6151_v21 }
 0x259   : > { %2532 = vbcast.lane.b32.xlu0 %v2530_v34, 256  ;;  %2448 = vbcast.lane.b32.xlu1 %v2442_v35, 264 }
 0x25b   : > { %v6158_v18 = vpop.permute.xlu1 %2105  ;;  %v6160_v6 = vpop.permute.xlu0 %2167 }
 0x25d   : > { %2543 = vbcast.lane.b32.xlu0 %v6156_v54, 256  ;;  %2459 = vbcast.lane.b32.xlu1 %v2453_v49, 264 }
 0x25f   : > { %v6166_v8 = vpop.permute.xlu1 %2109  ;;  %v6168_v22 = vpop.permute.xlu0 %2171 }
 0x260   : > { %7658 = vst [vmem:[#allocation19_spill] sm:$0xff] %v6166_v8 }
 0x261   : > { %2470 = vbcast.lane.b32.xlu1 %v2464_v30, 264  ;;  %2554 = vbcast.lane.b32.xlu0 %v6164_v43, 256  ;;  %v6194_v30 = vrot.slane %v4668_v5, %v7654_v16 }
 0x263   : > { %v6174_v56 = vpop.permute.xlu1 %2121  ;;  %v6176_v25 = vpop.permute.xlu0 %2183 }
 0x265   : > { %2481 = vbcast.lane.b32.xlu1 %v2475_v7, 264  ;;  %2565 = vbcast.lane.b32.xlu0 %v6172_v37, 256 }
 0x267   : > { %v6182_v31 = vpop.permute.xlu1 %2125  ;;  %v6184_v11 = vpop.permute.xlu0 %2187 }
 0x268   : > { %7659 = vst [vmem:[#allocation35_spill] sm:$0xff] %v6182_v31  ;;  %v7664_v31 = vld [vmem:[#allocation49_spill] sm:$0xff] }
 0x269   : > { %2492 = vbcast.lane.b32.xlu1 %v2486_v12, 264  ;;  %2576 = vbcast.lane.b32.xlu0 %v6180_v59, 256  ;;  %v6202_v12 = vrot.slane %v4668_v5, %v7655_v47 }
 0x26b   : > { %v6190_v35 = vpop.permute.xlu1 %2137  ;;  %v2200_v49 = vpop.permute.xlu0 %2199 }
 0x26c   : > { %7660 = vst [vmem:[#allocation33_spill] sm:$0xff] %v6190_v35 }
 0x26d   : > { %2503 = vbcast.lane.b32.xlu1 %v2497_v29, 264  ;;  %2587 = vbcast.lane.b32.xlu0 %v6188_v15, 256 }
 0x26f   : > { %v6196_v7 = vpop.permute.xlu1 %2141  ;;  %v6198_v60 = vpop.permute.xlu0 %2203 }
 0x270   : > { %7661 = vst [vmem:[#allocation34_spill] sm:$0xff] %v6196_v7  ;;  %v6212_v7 = vrot.slane %v6205_v19, %v7648_v55 }
 0x271   : > { %2514 = vbcast.lane.b32.xlu1 %v2508_v50, 264  ;;  %2598 = vbcast.lane.b32.xlu0 %v6194_v30, 256  ;;  %v7663_v50 = vld [vmem:[#allocation48_spill] sm:$0xff] }
 0x272   : > { %v7665_v5 = vcombine.low %v7663_v50, %v7664_v31 }
 0x273   : > { %v6207_v9 = vpop.permute.xlu1 %2153  ;;  %v2216_v29 = vpop.permute.xlu0 %2215 }
 0x274   : > { %7662 = vst [vmem:[#allocation30_spill] sm:$0xff] %v6207_v9  ;;  %v2260_v8 = vsel %vm2259_vm1, %v7665_v5, %v6063_v38  ;;  %v6230_v38 = vrot.slane %v6205_v19, %v7649_v17 }
 0x275   : > { %2525 = vbcast.lane.b32.xlu1 %v2519_v20, 264  ;;  %2609 = vbcast.lane.b32.xlu0 %v6202_v12, 256  ;;  %v2265_v9 = vsel %vm2264_vm2, %v2260_v8, %v6075_v36  ;;  %v7666_v36 = vld [vmem:[#allocation62_spill] sm:$0xff]  ;;  %v7667_v8 = vld [vmem:[#allocation63_spill] sm:$0xff] }
 0x276   : > { %v2270_v35 = vsel %vm2269_vm3, %v2265_v9, %v6084_v51  ;;  %v7668_v31 = vcombine.low %v7666_v36, %v7667_v8 }
 0x277   : > { %v6221_v21 = vpop.permute.xlu1 %2157  ;;  %v2220_v20 = vpop.permute.xlu0 %2219  ;;  %v2275_v4 = vsel %vm2274_vm4, %v2270_v35, %v6095_v46 }
 0x278   : > { %v2262_v50 = vsel %vm2259_vm1, %v7668_v31, %v6070_v23  ;;  %v2280_v9 = vsel %vm2279_vm5, %v2275_v4, %v6106_v63 }
 0x279   : > { %2536 = vbcast.lane.b32.xlu1 %v2530_v34, 264  ;;  %2620 = vbcast.lane.b32.xlu0 %v6212_v7, 256  ;;  %v2267_v51 = vsel %vm2264_vm2, %v2262_v50, %v6079_v26  ;;  %v2285_v46 = vsel %vm2284_vm6, %v2280_v9, %v6117_v24  ;;  %v6257_v24 = vrot.slane %v6205_v19, %v7650_v39 }
 0x27a   : > { %v2272_v5 = vsel %vm2269_vm3, %v2267_v51, %v6090_v61  ;;  %v2290_v23 = vsel %vm2289_vm7, %v2285_v46, %v6127_v0 }
 0x27b   : > { %v6243_v34 = vpop.permute.xlu1 %2169  ;;  %v2232_v35 = vpop.permute.xlu0 %2231  ;;  %v2277_v63 = vsel %vm2274_vm4, %v2272_v5, %v6099_v3  ;;  %v2295_v26 = vsel %vm2294_vm8, %v2290_v23, %v6137_v53 }
 0x27c   : > { %v2282_v61 = vsel %vm2279_vm5, %v2277_v63, %v6112_v14  ;;  %v2300_v0 = vsel %vm2299_vm9, %v2295_v26, %v6148_v27  ;;  %v6334_v63 = vld [vmem:[%s5065_s30 + $0x60] sm:$0xff] }
 0x27d   : > { %2547 = vbcast.lane.b32.xlu1 %v6156_v54, 264  ;;  %2631 = vbcast.lane.b32.xlu0 %v6230_v38, 256  ;;  %v2287_v3 = vsel %vm2284_vm6, %v2282_v61, %v6122_v62  ;;  %v2305_v53 = vsel %vm2304_vm10, %v2300_v0, %v6160_v6  ;;  %v6281_v6 = vrot.slane %v6205_v19, %v7651_v2  ;;  %v7670_v0 = vld [vmem:[#allocation57_spill] sm:$0xff] }
 0x27e   : > { %v2292_v36 = vsel %vm2289_vm7, %v2287_v3, %v6132_v1  ;;  %v2310_v14 = vsel %vm2309_vm11, %v2305_v53, %v6176_v25  ;;  %v6342_v61 = vrot.slane %v6334_v63, %v7648_v55 }
 0x27f   : > { %v6267_v4 = vpop.permute.xlu1 %2173  ;;  %v2236_v54 = vpop.permute.xlu0 %2235  ;;  %v2297_v27 = vsel %vm2294_vm8, %v2292_v36, %v6142_v44  ;;  %v2315_v62 = vsel %vm2314_vm12, %v2310_v14, %v2200_v49 }
 0x280   : > { %v2302_v1 = vsel %vm2299_vm9, %v2297_v27, %v6153_v58  ;;  %v2320_v25 = vsel %vm2319_vm13, %v2315_v62, %v2216_v29  ;;  %v6303_v58 = vrot.slane %v6205_v19, %v7652_v13  ;;  %v6361_v27 = vrot.slane %v6334_v63, %v7649_v17 }
 0x281   : > { %2558 = vbcast.lane.b32.xlu1 %v6164_v43, 264  ;;  %2642 = vbcast.lane.b32.xlu0 %v6257_v24, 256  ;;  %v2307_v8 = vsel %vm2304_vm10, %v2302_v1, %v6168_v22  ;;  %v2325_v44 = vsel %vm2324_vm14, %v2320_v25, %v2232_v35 }
 0x282   : > { %v2312_v31 = vsel %vm2309_vm11, %v2307_v8, %v6184_v11  ;;  %v7674_v8 = vld [vmem:[#allocation33_spill] sm:$0xff] }
 0x283   : > { %v6289_v49 = vpop.permute.xlu1 %2185  ;;  %v2248_v43 = vpop.permute.xlu0 %2247  ;;  %v2317_v9 = vsel %vm2314_vm12, %v2312_v31, %v6198_v60 }
 0x284   : > { %v2330_v50 = vsel %vm2329_vm15, %v2325_v44, %v2248_v43  ;;  %v2322_v22 = vsel %vm2319_vm13, %v2317_v9, %v2220_v20  ;;  %v6323_v20 = vrot.slane %v6205_v19, %v7654_v16  ;;  %v7676_v44 = vld [vmem:[#allocation30_spill] sm:$0xff]  ;;  %v7677_v43 = vld [vmem:[#allocation19_spill] sm:$0xff] }
 0x285   : > { %2334 = vst [vmem:[%s6296_s29] ss:$2 sm:$0xff] %v2330_v50  ;;  %2569 = vbcast.lane.b32.xlu1 %v6172_v37, 264  ;;  %2653 = vbcast.lane.b32.xlu0 %v6281_v6, 256  ;;  %v2327_v11 = vsel %vm2324_vm14, %v2322_v22, %v2236_v54  ;;  %v6315_v37 = vrot.slane %v6205_v19, %v7653_v32  ;;  %v7678_v22 = vld [vmem:[#allocation35_spill] sm:$0xff] }
 0x287   : > { %v6307_v29 = vpop.permute.xlu1 %2189  ;;  %v2252_v60 = vpop.permute.xlu0 %2251 }
 0x288   : > { %v2332_v51 = vsel %vm2329_vm15, %v2327_v11, %v2252_v60 }
 0x289   : > { %4664 = vst [vmem:[%s6296_s29 + $0x20] ss:$2 sm:$0xff] %v2332_v51  ;;  %2580 = vbcast.lane.b32.xlu1 %v6180_v59, 264  ;;  %2664 = vbcast.lane.b32.xlu0 %v6303_v58, 256  ;;  %v6331_v59 = vrot.slane %v6205_v19, %v7655_v47  ;;  %v7679_v51 = vld [vmem:[#allocation34_spill] sm:$0xff] }
 0x28b   : > { %v2202_v46 = vpop.permute.xlu1 %2201  ;;  %v6317_v35 = vpop.permute.xlu0 %2356 }
 0x28d   : > { %2591 = vbcast.lane.b32.xlu1 %v6188_v15, 264  ;;  %2675 = vbcast.lane.b32.xlu0 %v6315_v37, 256 }
 0x28f   : > { %v2206_v5 = vpop.permute.xlu1 %2205  ;;  %v6325_v23 = vpop.permute.xlu0 %2367 }
 0x291   : > { %2602 = vbcast.lane.b32.xlu1 %v6194_v30, 264  ;;  %2686 = vbcast.lane.b32.xlu0 %v6323_v20, 256  ;;  %v7669_v30 = vld [vmem:[#allocation56_spill] sm:$0xff] }
 0x292   : > { %v7671_v3 = vcombine.low %v7669_v30, %v7670_v0 }
 0x293   : > { %v2218_v15 = vpop.permute.xlu1 %2217  ;;  %v6336_v26 = vpop.permute.xlu0 %2378 }
 0x294   : > { %v2261_v19 = vsel %vm2259_vm1, %v7671_v3, %v6104_v57  ;;  %v7672_v57 = vcombine.low %v5596_v28, %v5599_v45  ;;  %v7673_v45 = vld [vmem:[#allocation18_spill] sm:$0xff] }
 0x295   : > { %2613 = vbcast.lane.b32.xlu1 %v6202_v12, 264  ;;  %2697 = vbcast.lane.b32.xlu0 %v6331_v59, 256  ;;  %v2266_v53 = vsel %vm2264_vm2, %v2261_v19, %v6115_v41 }
 0x296   : > { %v2271_v12 = vsel %vm2269_vm3, %v2266_v53, %v6125_v42  ;;  %v2263_v41 = vsel %vm2259_vm1, %v7672_v57, %v6110_v40 }
 0x297   : > { %v2222_v54 = vpop.permute.xlu1 %2221  ;;  %v6351_v36 = vpop.permute.xlu0 %2389  ;;  %v2276_v14 = vsel %vm2274_vm4, %v2271_v12, %v6135_v33  ;;  %v2268_v33 = vsel %vm2264_vm2, %v2263_v41, %v6120_v48  ;;  %v6388_v48 = vrot.slane %v6334_v63, %v7650_v39 }
 0x298   : > { %v2281_v42 = vsel %vm2279_vm5, %v2276_v14, %v6146_v10  ;;  %v2273_v25 = vsel %vm2269_vm3, %v2268_v33, %v6130_v52 }
 0x299   : > { %2624 = vbcast.lane.b32.xlu1 %v6212_v7, 264  ;;  %2708 = vbcast.lane.b32.xlu0 %v6342_v61, 256  ;;  %v2286_v7 = vsel %vm2284_vm6, %v2281_v42, %v6158_v18  ;;  %v2278_v40 = vsel %vm2274_vm4, %v2273_v25, %v7673_v45  ;;  %v7675_v18 = vld [vmem:[#allocation45_spill] sm:$0xff]  ;;  %v4671_v25 = vld [vmem:[%s5065_s30 + $0x68] sm:$0xff] }
 0x29a   : > { %v2291_v28 = vsel %vm2289_vm7, %v2286_v7, %v6174_v56  ;;  %v2283_v52 = vsel %vm2279_vm5, %v2278_v40, %v7675_v18 }
 0x29b   : > { %v2234_v62 = vpop.permute.xlu1 %2233  ;;  %v6374_v1 = vpop.permute.xlu0 %2400  ;;  %v2296_v10 = vsel %vm2294_vm8, %v2291_v28, %v7674_v8  ;;  %v2288_v31 = vsel %vm2284_vm6, %v2283_v52, %v7677_v43 }
 0x29c   : > { %v2301_v56 = vsel %vm2299_vm9, %v2296_v10, %v7676_v44  ;;  %v2293_v11 = vsel %vm2289_vm7, %v2288_v31, %v7678_v22  ;;  %v2860_v22 = vrot.slane %v4671_v25, %v7654_v16 }
 0x29d   : > { %2635 = vbcast.lane.b32.xlu1 %v6230_v38, 264  ;;  %2719 = vbcast.lane.b32.xlu0 %v6361_v27, 256  ;;  %v2306_v50 = vsel %vm2304_vm10, %v2301_v56, %v6243_v34  ;;  %v2298_v30 = vsel %vm2294_vm8, %v2293_v11, %v7679_v51  ;;  %v2739_v34 = vrot.slane %v6334_v63, %v7651_v2 }
 0x29e   : > { %v2311_v60 = vsel %vm2309_vm11, %v2306_v50, %v6289_v49  ;;  %v2303_v3 = vsel %vm2299_vm9, %v2298_v30, %v6221_v21  ;;  %v2750_v21 = vrot.slane %v6334_v63, %v7652_v13  ;;  %v2871_v51 = vrot.slane %v4671_v25, %v7655_v47  ;;  %v4672_v30 = vld [vmem:[%s5065_s30 + $0x70] sm:$0xff] }
 0x29f   : > { %v2238_v9 = vpop.permute.xlu1 %2237  ;;  %v6398_v38 = vpop.permute.xlu0 %2411  ;;  %v2316_v0 = vsel %vm2314_vm12, %v2311_v60, %v2202_v46  ;;  %v2308_v49 = vsel %vm2304_vm10, %v2303_v3, %v6267_v4  ;;  %v2882_v3 = vrot.slane %v4672_v30, %v7648_v55 }
 0x2a0   : > { %v2321_v19 = vsel %vm2319_vm13, %v2316_v0, %v2218_v15 }
 0x2a1   : > { %2646 = vbcast.lane.b32.xlu1 %v6257_v24, 264  ;;  %2730 = vbcast.lane.b32.xlu0 %v6388_v48, 256  ;;  %v2326_v53 = vsel %vm2324_vm14, %v2321_v19, %v2234_v62  ;;  %v2313_v24 = vsel %vm2309_vm11, %v2308_v49, %v6307_v29 }
 0x2a2   : > { %v2318_v57 = vsel %vm2314_vm12, %v2313_v24, %v2206_v5 }
 0x2a3   : > { %v2250_v12 = vpop.permute.xlu1 %2249  ;;  %v6417_v46 = vpop.permute.xlu0 %2422  ;;  %v2323_v4 = vsel %vm2319_vm13, %v2318_v57, %v2222_v54  ;;  %v2772_v54 = vrot.slane %v6334_v63, %v7654_v16 }
 0x2a4   : > { %v2331_v14 = vsel %vm2329_vm15, %v2326_v53, %v2250_v12  ;;  %v2328_v15 = vsel %vm2324_vm14, %v2323_v4, %v2238_v9  ;;  %v2893_v53 = vrot.slane %v4672_v30, %v7649_v17  ;;  %v2915_v4 = vrot.slane %v4672_v30, %v7651_v2 }
 0x2a5   : > { %4663 = vst [vmem:[%s6296_s29 + $0x10] ss:$2 sm:$0xff] %v2331_v14  ;;  %2657 = vbcast.lane.b32.xlu1 %v6281_v6, 264  ;;  %2741 = vbcast.lane.b32.xlu0 %v2739_v34, 256  ;;  %v2761_v6 = vrot.slane %v6334_v63, %v7653_v32  ;;  %v2904_v14 = vrot.slane %v4672_v30, %v7650_v39 }
 0x2a7   : > { %v2254_v41 = vpop.permute.xlu1 %2253  ;;  %v6429_v42 = vpop.permute.xlu0 %2433 }
 0x2a8   : > { %v2333_v29 = vsel %vm2329_vm15, %v2328_v15, %v2254_v41 }
 0x2a9   : > { %4665 = vst [vmem:[%s6296_s29 + $0x30] ss:$2 sm:$0xff] %v2333_v29  ;;  %2668 = vbcast.lane.b32.xlu1 %v6303_v58, 264  ;;  %2752 = vbcast.lane.b32.xlu0 %v2750_v21, 256  ;;  %v2783_v58 = vrot.slane %v6334_v63, %v7655_v47  ;;  %v2926_v29 = vrot.slane %v4672_v30, %v7652_v13 }
 0x2ab   : > { %v6436_v5 = vpop.permute.xlu1 %2360  ;;  %v6438_v33 = vpop.permute.xlu0 %2444 }
 0x2ad   : > { %2679 = vbcast.lane.b32.xlu1 %v6315_v37, 264  ;;  %2763 = vbcast.lane.b32.xlu0 %v2761_v6, 256  ;;  %v2794_v37 = vrot.slane %v4671_v25, %v7648_v55 }
 0x2af   : > { %v6443_v7 = vpop.permute.xlu1 %2371  ;;  %v6445_v62 = vpop.permute.xlu0 %2455 }
 0x2b1   : > { %2690 = vbcast.lane.b32.xlu1 %v6323_v20, 264  ;;  %2774 = vbcast.lane.b32.xlu0 %v2772_v54, 256  ;;  %v2805_v20 = vrot.slane %v4671_v25, %v7649_v17 }
 0x2b3   : > { %v6451_v28 = vpop.permute.xlu1 %2382  ;;  %v6453_v45 = vpop.permute.xlu0 %2466 }
 0x2b5   : > { %2701 = vbcast.lane.b32.xlu1 %v6331_v59, 264  ;;  %2785 = vbcast.lane.b32.xlu0 %v2783_v58, 256  ;;  %v2816_v59 = vrot.slane %v4671_v25, %v7650_v39 }
 0x2b7   : > { %v6457_v40 = vpop.permute.xlu1 %2393  ;;  %v6459_v8 = vpop.permute.xlu0 %2477 }
 0x2b9   : > { %2712 = vbcast.lane.b32.xlu1 %v6342_v61, 264  ;;  %2796 = vbcast.lane.b32.xlu0 %v2794_v37, 256  ;;  %v2827_v61 = vrot.slane %v4671_v25, %v7651_v2 }
 0x2bb   : > { %v6463_v63 = vpop.permute.xlu1 %2404  ;;  %v6465_v10 = vpop.permute.xlu0 %2488 }
 0x2bd   : > { %2723 = vbcast.lane.b32.xlu1 %v6361_v27, 264  ;;  %2807 = vbcast.lane.b32.xlu0 %v2805_v20, 256  ;;  %v2838_v27 = vrot.slane %v4671_v25, %v7652_v13 }
 0x2bf   : > { %v6469_v18 = vpop.permute.xlu1 %2415  ;;  %v6471_v52 = vpop.permute.xlu0 %2499 }
 0x2c1   : > { %2734 = vbcast.lane.b32.xlu1 %v6388_v48, 264  ;;  %2818 = vbcast.lane.b32.xlu0 %v2816_v59, 256  ;;  %v2849_v48 = vrot.slane %v4671_v25, %v7653_v32 }
 0x2c3   : > { %v6475_v44 = vpop.permute.xlu1 %2426  ;;  %v6477_v56 = vpop.permute.xlu0 %2510 }
 0x2c5   : > { %2745 = vbcast.lane.b32.xlu1 %v2739_v34, 264  ;;  %2829 = vbcast.lane.b32.xlu0 %v2827_v61, 256 }
 0x2c7   : > { %v6480_v43 = vpop.permute.xlu1 %2437  ;;  %v6482_v31 = vpop.permute.xlu0 %2521 }
 0x2c9   : > { %2756 = vbcast.lane.b32.xlu1 %v2750_v21, 264  ;;  %2840 = vbcast.lane.b32.xlu0 %v2838_v27, 256 }
 0x2cb   : > { %v6485_v50 = vpop.permute.xlu1 %2448  ;;  %v6487_v9 = vpop.permute.xlu0 %2532 }
 0x2cc   : > { %7680 = vst [vmem:[#allocation31_spill] sm:$0xff] %v6485_v50  ;;  %v2959_v50 = vrot.slane %v4672_v30, %v7655_v47 }
 0x2cd   : > { %2767 = vbcast.lane.b32.xlu1 %v2761_v6, 264  ;;  %2851 = vbcast.lane.b32.xlu0 %v2849_v48, 256 }
 0x2cf   : > { %v6490_v11 = vpop.permute.xlu1 %2459  ;;  %v6492_v60 = vpop.permute.xlu0 %2543 }
 0x2d0   : > { %7681 = vst [vmem:[#allocation32_spill] sm:$0xff] %v6490_v11 }
 0x2d1   : > { %2778 = vbcast.lane.b32.xlu1 %v2772_v54, 264  ;;  %2862 = vbcast.lane.b32.xlu0 %v2860_v22, 256 }
 0x2d3   : > { %v6496_v0 = vpop.permute.xlu1 %2470  ;;  %v6498_v34 = vpop.permute.xlu0 %2554 }
 0x2d4   : > { %7682 = vst [vmem:[#allocation28_spill] sm:$0xff] %v6496_v0 }
 0x2d5   : > { %2789 = vbcast.lane.b32.xlu1 %v2783_v58, 264  ;;  %2873 = vbcast.lane.b32.xlu0 %v2871_v51, 256  ;;  %v2937_v58 = vrot.slane %v4672_v30, %v7653_v32 }
 0x2d7   : > { %v6501_v19 = vpop.permute.xlu1 %2481  ;;  %v6503_v49 = vpop.permute.xlu0 %2565 }
 0x2d8   : > { %7683 = vst [vmem:[#allocation29_spill] sm:$0xff] %v6501_v19 }
 0x2d9   : > { %2800 = vbcast.lane.b32.xlu1 %v2794_v37, 264  ;;  %2884 = vbcast.lane.b32.xlu0 %v2882_v3, 256 }
 0x2db   : > { %v6506_v12 = vpop.permute.xlu1 %2492  ;;  %v6508_v24 = vpop.permute.xlu0 %2576 }
 0x2dd   : > { %2811 = vbcast.lane.b32.xlu1 %v2805_v20, 264  ;;  %2895 = vbcast.lane.b32.xlu0 %v2893_v53, 256  ;;  %v2948_v20 = vrot.slane %v4672_v30, %v7654_v16 }
 0x2df   : > { %v6511_v57 = vpop.permute.xlu1 %2503  ;;  %v6513_v21 = vpop.permute.xlu0 %2587 }
 0x2e1   : > { %2822 = vbcast.lane.b32.xlu1 %v2816_v59, 264  ;;  %2906 = vbcast.lane.b32.xlu0 %v2904_v14, 256 }
 0x2e3   : > { %v6516_v15 = vpop.permute.xlu1 %2514  ;;  %v6518_v41 = vpop.permute.xlu0 %2598 }
 0x2e5   : > { %2833 = vbcast.lane.b32.xlu1 %v2827_v61, 264  ;;  %2917 = vbcast.lane.b32.xlu0 %v2915_v4, 256 }
 0x2e7   : > { %v6521_v6 = vpop.permute.xlu1 %2525  ;;  %v6523_v54 = vpop.permute.xlu0 %2609 }
 0x2e9   : > { %2844 = vbcast.lane.b32.xlu1 %v2838_v27, 264  ;;  %2928 = vbcast.lane.b32.xlu0 %v2926_v29, 256  ;;  %v6537_v27 = vld [vmem:[%s5065_s30 + $0x78] sm:$0xff]  ;;  %s7752_s30 = smov 18  }
 0x2eb   : > { %v6526_v25 = vpop.permute.xlu1 %2536  ;;  %v6528_v37 = vpop.permute.xlu0 %2620 }
 0x2ec   : > { %7684 = vst [vmem:[#allocation58_spill] sm:$0xff] %v6526_v25  ;;  %7685 = vst [vmem:[#allocation51_spill] sm:$0xff] %v6528_v37 }
 0x2ed   : > { %2855 = vbcast.lane.b32.xlu1 %v2849_v48, 264  ;;  %2939 = vbcast.lane.b32.xlu0 %v2937_v58, 256  ;;  %v2970_v48 = vrot.slane %v6537_v27, %v7648_v55 }
 0x2ef   : > { %v6531_v59 = vpop.permute.xlu1 %2547  ;;  %v6533_v61 = vpop.permute.xlu0 %2631 }
 0x2f0   : > { %7686 = vst [vmem:[#allocation22_spill] sm:$0xff] %v6531_v59 }
 0x2f1   : > { %2866 = vbcast.lane.b32.xlu1 %v2860_v22, 264  ;;  %2950 = vbcast.lane.b32.xlu0 %v2948_v20, 256  ;;  %v2981_v22 = vrot.slane %v6537_v27, %v7649_v17 }
 0x2f3   : > { %v6539_v0 = vpop.permute.xlu1 %2558  ;;  %v6541_v11 = vpop.permute.xlu0 %2642 }
 0x2f4   : > { %7687 = vst [vmem:[#allocation52_spill] sm:$0xff] %v6539_v0 }
 0x2f5   : > { %2877 = vbcast.lane.b32.xlu1 %v2871_v51, 264  ;;  %2961 = vbcast.lane.b32.xlu0 %v2959_v50, 256  ;;  %v2992_v51 = vrot.slane %v6537_v27, %v7650_v39 }
 0x2f7   : > { %v6545_v19 = vpop.permute.xlu1 %2569  ;;  %v6547_v25 = vpop.permute.xlu0 %2653 }
 0x2f9   : > { %2888 = vbcast.lane.b32.xlu1 %v2882_v3, 264  ;;  %2972 = vbcast.lane.b32.xlu0 %v2970_v48, 256  ;;  %v3014_v3 = vrot.slane %v6537_v27, %v7652_v13 }
 0x2fb   : > { %v6551_v30 = vpop.permute.xlu1 %2580  ;;  %v6553_v59 = vpop.permute.xlu0 %2664 }
 0x2fc   : > { %7688 = vst [vmem:[#allocation23_spill] sm:$0xff] %v6551_v30  ;;  %7689 = vst [vmem:[#allocation47_spill] sm:$0xff] %v6553_v59 }
 0x2fd   : > { %2899 = vbcast.lane.b32.xlu1 %v2893_v53, 264  ;;  %2983 = vbcast.lane.b32.xlu0 %v2981_v22, 256  ;;  %v3036_v53 = vrot.slane %v6537_v27, %v7654_v16 }
 0x2ff   : > { %v6557_v0 = vpop.permute.xlu1 %2591  ;;  %v6559_v55 = vpop.permute.xlu0 %2675 }
 0x300   : > { %7690 = vst [vmem:[#allocation20_spill] sm:$0xff] %v6557_v0  ;;  %7691 = vst [vmem:[#allocation50_spill] sm:$0xff] %v6559_v55 }
 0x301   : > { %2910 = vbcast.lane.b32.xlu1 %v2904_v14, 264  ;;  %2994 = vbcast.lane.b32.xlu0 %v2992_v51, 256 }
 0x303   : > { %v6563_v37 = vpop.permute.xlu1 %2602  ;;  %v6565_v17 = vpop.permute.xlu0 %2686 }
 0x304   : > { %7692 = vst [vmem:[#allocation21_spill] sm:$0xff] %v6563_v37  ;;  %7693 = vst [vmem:[#allocation61_spill] sm:$0xff] %v6565_v17 }
 0x305   : > { %2921 = vbcast.lane.b32.xlu1 %v2915_v4, 264  ;;  %3016 = vbcast.lane.b32.xlu0 %v3014_v3, 256 }
 0x307   : > { %v6569_v30 = vpop.permute.xlu1 %2613  ;;  %v6571_v39 = vpop.permute.xlu0 %2697 }
 0x308   : > { %7694 = vst [vmem:[#allocation27_spill] sm:$0xff] %v6571_v39 }
 0x309   : > { %2932 = vbcast.lane.b32.xlu1 %v2926_v29, 264  ;;  %3038 = vbcast.lane.b32.xlu0 %v3036_v53, 256 }
 0x30b   : > { %v6573_v14 = vpop.permute.xlu1 %2624  ;;  %v2709_v55 = vpop.permute.xlu0 %2708 }
 0x30c   : > { %7695 = vst [vmem:[#allocation54_spill] sm:$0xff] %v6573_v14  ;;  %v3055_v16 = vsel %vm866_vm0, %v6317_v35, %v2709_v55  ;;  %v7699_v35 = vld [vmem:[#allocation44_spill] sm:$0xff] }
 0x30d   : > { %2943 = vbcast.lane.b32.xlu1 %v2937_v58, 264  ;;  %2998 = vbcast.lane.b32.xlu0 %v2992_v51, 264 }
 0x30f   : > { %v6575_v13 = vpop.permute.xlu1 %2635  ;;  %v2720_v59 = vpop.permute.xlu0 %2719 }
 0x310   : > { %7696 = vst [vmem:[#allocation25_spill] sm:$0xff] %v6575_v13 }
 0x311   : > { %2954 = vbcast.lane.b32.xlu1 %v2948_v20, 264  ;;  %3020 = vbcast.lane.b32.xlu0 %v3014_v3, 264  ;;  %v3057_v20 = vsel %vm866_vm0, %v6325_v23, %v2720_v59 }
 0x313   : > { %v6577_v4 = vpop.permute.xlu1 %2646  ;;  %v2731_v37 = vpop.permute.xlu0 %2730 }
 0x314   : > { %7697 = vst [vmem:[#allocation55_spill] sm:$0xff] %v6577_v4  ;;  %v3059_v29 = vsel %vm866_vm0, %v6336_v26, %v2731_v37 }
 0x315   : > { %v3120_v39 = vcombine.high %v3055_v16, %v3059_v29  ;;  %2965 = vbcast.lane.b32.xlu1 %v2959_v50, 264  ;;  %3042 = vbcast.lane.b32.xlu0 %v3036_v53, 264  ;;  %v3119_v14 = vcombine.low %v3055_v16, %v3059_v29 }
 0x317   : > { %v6583_v58 = vpop.permute.xlu1 %2657  ;;  %v2742_v51 = vpop.permute.xlu0 %2741  ;;  %v3127_v55 = vrot.slane %v3119_v14, %v7699_v35  ;;  %v3134_v26 = vrot.slane %v3120_v39, %v7699_v35  ;;  %v3025_v39 = vrot.slane %v6537_v27, %v7653_v32 }
 0x318   : > { %7698 = vst [vmem:[#allocation26_spill] sm:$0xff] %v6583_v58  ;;  %v3061_v3 = vsel %vm866_vm0, %v6351_v36, %v2742_v51  ;;  %v3003_v36 = vrot.slane %v6537_v27, %v7651_v2  ;;  %v3047_v2 = vrot.slane %v6537_v27, %v7655_v47 }
 0x319   : > { %v3135_v13 = vcombine.low %v3057_v20, %v3061_v3  ;;  %v3136_v4 = vcombine.high %v3057_v20, %v3061_v3  ;;  %2976 = vbcast.lane.b32.xlu1 %v2970_v48, 264 }
 0x31b   : > { %v3143_v50 = vrot.slane %v3135_v13, %v7699_v35  ;;  %v3150_v37 = vrot.slane %v3136_v4, %v7699_v35  ;;  %v6593_v53 = vpop.permute.xlu1 %2668  ;;  %v2753_v16 = vpop.permute.xlu0 %2752 }
 0x31c   : > { %7700 = vst [vmem:[#allocation53_spill] sm:$0xff] %v6593_v53  ;;  %v3063_v4 = vsel %vm866_vm0, %v6374_v1, %v2753_v16 }
 0x31d   : > { %v3184_v29 = vcombine.high %v3127_v55, %v3143_v50  ;;  %v3199_v58 = vcombine.low %v3134_v26, %v3150_v37  ;;  %v3200_v23 = vcombine.high %v3134_v26, %v3150_v37  ;;  %2987 = vbcast.lane.b32.xlu1 %v2981_v22, 264  ;;  %v3183_v16 = vcombine.low %v3127_v55, %v3143_v50 }
 0x31f   : > { %v6597_v59 = vpop.permute.xlu1 %2679  ;;  %v2764_v48 = vpop.permute.xlu0 %2763 }
 0x320   : > { %7701 = vst [vmem:[#allocation24_spill] sm:$0xff] %v6597_v59  ;;  %v3065_v32 = vsel %vm866_vm0, %v6398_v38, %v2764_v48 }
 0x321   : > { %3005 = vbcast.lane.b32.xlu1 %v3003_v36, 256 }
 0x323   : > { %v6601_v14 = vpop.permute.xlu1 %2690  ;;  %v2775_v13 = vpop.permute.xlu0 %2774 }
 0x324   : > { %7702 = vst [vmem:[#allocation43_spill] sm:$0xff] %v6601_v14  ;;  %v3067_v51 = vsel %vm866_vm0, %v6417_v46, %v2775_v13 }
 0x325   : > { %v3152_v22 = vcombine.high %v3063_v4, %v3067_v51  ;;  %3027 = vbcast.lane.b32.xlu1 %v3025_v39, 256  ;;  %v3151_v20 = vcombine.low %v3063_v4, %v3067_v51 }
 0x327   : > { %v6609_v3 = vpop.permute.xlu1 %2701  ;;  %v2786_v26 = vpop.permute.xlu0 %2785  ;;  %v3159_v46 = vrot.slane %v3151_v20, %v7699_v35  ;;  %v3166_v13 = vrot.slane %v3152_v22, %v7699_v35 }
 0x328   : > { %7703 = vst [vmem:[#allocation60_spill] sm:$0xff] %v6609_v3  ;;  %v3069_v37 = vsel %vm866_vm0, %v6429_v42, %v2786_v26  ;;  %v7704_v42 = vld [vmem:[#allocation46_spill] sm:$0xff] }
 0x329   : > { %v3167_v53 = vcombine.low %v3065_v32, %v3069_v37  ;;  %v3168_v1 = vcombine.high %v3065_v32, %v3069_v37  ;;  %3049 = vbcast.lane.b32.xlu1 %v3047_v2, 256  ;;  %v6622_v26 = vrot.slane %v3183_v16, %v7704_v42  ;;  %v6625_v55 = vrot.slane %v3184_v29, %v7704_v42 }
 0x32a   : > { %v6628_v50 = vrot.slane %v3199_v58, %v7704_v42  ;;  %v6645_v29 = vrot.slane %v3200_v23, %v7704_v42 }
 0x32b   : > { %v3175_v47 = vrot.slane %v3167_v53, %v7699_v35  ;;  %v3182_v27 = vrot.slane %v3168_v1, %v7699_v35  ;;  %v6619_v4 = vpop.permute.xlu1 %2712  ;;  %v2797_v51 = vpop.permute.xlu0 %2796  ;;  %7705 = vst [vmem:[#allocation59_spill] sm:$0xff] %v6622_v26 }
 0x32c   : > { %7708 = vst [vmem:[#allocation42_spill] sm:$0xff] %v6645_v29 }
 0x32d   : > { %v3215_v59 = vcombine.low %v3159_v46, %v3175_v47  ;;  %v3216_v38 = vcombine.high %v3159_v46, %v3175_v47  ;;  %v3231_v48 = vcombine.low %v3166_v13, %v3182_v27  ;;  %v3232_v14 = vcombine.high %v3166_v13, %v3182_v27  ;;  %3009 = vbcast.lane.b32.xlu1 %v3003_v36, 264 }
 0x32e   : > { %v3071_v27 = vsel %vm866_vm0, %v6438_v33, %v2797_v51 }
 0x32f   : > { %v6631_v53 = vrot.slane %v3215_v59, %v7704_v42  ;;  %v6634_v22 = vrot.slane %v3216_v38, %v7704_v42  ;;  %v6637_v20 = vrot.slane %v3231_v48, %v7704_v42  ;;  %v6640_v36 = vrot.slane %v3232_v14, %v7704_v42  ;;  %v6642_v32 = vpop.permute.xlu1 %2723  ;;  %v2808_v37 = vpop.permute.xlu0 %2807 }
 0x331   : > { %7706 = vst [vmem:[#allocation39_spill] sm:$0xff] %v6631_v53  ;;  %7707 = vst [vmem:[#allocation41_spill] sm:$0xff] %v6640_v36  ;;  %3031 = vbcast.lane.b32.xlu1 %v3025_v39, 264  ;;  %v3248_v58 = vcombine.high %v6622_v26, %v6631_v53  ;;  %v3073_v39 = vsel %vm866_vm0, %v6445_v62, %v2808_v37 }
 0x333   : > { %v6663_v13 = vpop.permute.xlu1 %2734  ;;  %4211 = vrot.lane.b32.xlu0 %v3248_v58, %s4903_s21  ;;  %v2819_v47 = vpop.permute.xlu0 %2818 }
 0x334   : > { %v3075_v38 = vsel %vm866_vm0, %v6453_v45, %v2819_v47 }
 0x335   : > { %v3392_v48 = vcombine.high %v3071_v27, %v3075_v38  ;;  %3053 = vbcast.lane.b32.xlu1 %v3047_v2, 264  ;;  %v3391_v46 = vcombine.low %v3071_v27, %v3075_v38 }
 0x337   : > { %v6670_v23 = vpop.permute.xlu1 %2745  ;;  %v2830_v16 = vpop.permute.xlu0 %2829  ;;  %v3399_v2 = vrot.slane %v3391_v46, %v7699_v35  ;;  %v3406_v47 = vrot.slane %v3392_v48, %v7699_v35 }
 0x338   : > { %v3077_v14 = vsel %vm866_vm0, %v6459_v8, %v2830_v16 }
 0x339   : > { %v3407_v58 = vcombine.low %v3073_v39, %v3077_v14  ;;  %v3408_v1 = vcombine.high %v3073_v39, %v3077_v14 }
 0x33b   : > { %v3415_v59 = vrot.slane %v3407_v58, %v7699_v35  ;;  %v3422_v33 = vrot.slane %v3408_v1, %v7699_v35  ;;  %v6678_v51 = vpop.permute.xlu1 %2756  ;;  %v2841_v45 = vpop.permute.xlu0 %2840 }
 0x33c   : > { %v3079_v16 = vsel %vm866_vm0, %v6465_v10, %v2841_v45 }
 0x33d   : > { %v3456_v3 = vcombine.high %v3399_v2, %v3415_v59  ;;  %v3471_v53 = vcombine.low %v3406_v47, %v3422_v33  ;;  %v3472_v62 = vcombine.high %v3406_v47, %v3422_v33  ;;  %v3455_v36 = vcombine.low %v3399_v2, %v3415_v59 }
 0x33f   : > { %v6682_v37 = vpop.permute.xlu1 %2767  ;;  %v2852_v27 = vpop.permute.xlu0 %2851  ;;  %v6706_v59 = vrot.slane %v3456_v3, %v7704_v42  ;;  %v6726_v3 = vrot.slane %v3472_v62, %v7704_v42 }
 0x340   : > { %v3081_v48 = vsel %vm866_vm0, %v6471_v52, %v2852_v27 }
 0x341   : > { %7714 = vst [vmem:[#allocation10_spill] sm:$0xff] %v6726_v3 }
 0x343   : > { %v6684_v8 = vpop.permute.xlu1 %2778  ;;  %v2863_v14 = vpop.permute.xlu0 %2862 }
 0x344   : > { %v3083_v1 = vsel %vm866_vm0, %v6477_v56, %v2863_v14 }
 0x345   : > { %v3424_v39 = vcombine.high %v3079_v16, %v3083_v1  ;;  %v3423_v58 = vcombine.low %v3079_v16, %v3083_v1 }
 0x347   : > { %v6690_v38 = vpop.permute.xlu1 %2789  ;;  %v2874_v46 = vpop.permute.xlu0 %2873  ;;  %v3431_v14 = vrot.slane %v3423_v58, %v7699_v35  ;;  %v3438_v0 = vrot.slane %v3424_v39, %v7699_v35 }
 0x348   : > { %v3085_v33 = vsel %vm866_vm0, %v6482_v31, %v2874_v46  ;;  %v6703_v31 = vrot.slane %v3455_v36, %v7704_v42  ;;  %v6723_v36 = vrot.slane %v3471_v53, %v7704_v42 }
 0x349   : > { %v3439_v47 = vcombine.low %v3081_v48, %v3085_v33  ;;  %v3440_v26 = vcombine.high %v3081_v48, %v3085_v33 }
 0x34a   : > { %7710 = vst [vmem:[#allocation38_spill] sm:$0xff] %v6703_v31 }
 0x34b   : > { %v3447_v29 = vrot.slane %v3439_v47, %v7699_v35  ;;  %v3454_v10 = vrot.slane %v3440_v26, %v7699_v35  ;;  %v6698_v45 = vpop.permute.xlu1 %2800  ;;  %v2885_v56 = vpop.permute.xlu0 %2884 }
 0x34c   : > { %7709 = vst [vmem:[#allocation37_spill] sm:$0xff] %v6698_v45 }
 0x34d   : > { %v3487_v17 = vcombine.low %v3431_v14, %v3447_v29  ;;  %v3488_v52 = vcombine.high %v3431_v14, %v3447_v29  ;;  %v3503_v27 = vcombine.low %v3438_v0, %v3454_v10  ;;  %v3504_v16 = vcombine.high %v3438_v0, %v3454_v10 }
 0x34f   : > { %v6708_v2 = vpop.permute.xlu1 %2811  ;;  %v2896_v26 = vpop.permute.xlu0 %2895  ;;  %v6711_v1 = vrot.slane %v3487_v17, %v7704_v42  ;;  %v6714_v46 = vrot.slane %v3488_v52, %v7704_v42  ;;  %v6717_v39 = vrot.slane %v3503_v27, %v7704_v42  ;;  %v6720_v0 = vrot.slane %v3504_v16, %v7704_v42 }
 0x350   : > { %7711 = vst [vmem:[#allocation40_spill] sm:$0xff] %v6708_v2  ;;  %v7743_v2 = vld [vmem:[#allocation26_spill] sm:$0xff] }
 0x351   : > { %7712 = vst [vmem:[#allocation36_spill] sm:$0xff] %v6711_v1  ;;  %7713 = vst [vmem:[#allocation11_spill] sm:$0xff] %v6720_v0  ;;  %v3520_v29 = vcombine.high %v6703_v31, %v6711_v1 }
 0x353   : > { %v6734_v58 = vpop.permute.xlu1 %2822  ;;  %v2907_v33 = vpop.permute.xlu0 %2906  ;;  %4213 = vrot.lane.b32.xlu1 %v3520_v29, %s4903_s21  ;;  %v6755_v29 = vsel %vm866_vm0, %v6492_v60, %v2896_v26 }
 0x354   : > { %7715 = vst [vmem:[#allocation12_spill] sm:$0xff] %v6734_v58  ;;  %v6759_v62 = vsel %vm866_vm0, %v6498_v34, %v2907_v33 }
 0x357   : > { %v6747_v52 = vpop.permute.xlu1 %2833  ;;  %v2918_v27 = vpop.permute.xlu0 %2917 }
 0x358   : > { %v6751_v53 = vsel %vm866_vm0, %v6503_v49, %v2918_v27  ;;  %v3087_v49 = vsel %vm866_vm0, %v6487_v9, %v2885_v56 }
 0x359   : > { %v3679_v14 = vcombine.low %v6755_v29, %v6751_v53  ;;  %v3663_v34 = vcombine.low %v3087_v49, %v6759_v62 }
 0x35b   : > { %v2845_v16 = vpop.permute.xlu1 %2844  ;;  %v2929_v48 = vpop.permute.xlu0 %2928  ;;  %v3687_v33 = vrot.slane %v3679_v14, %v7699_v35 }
 0x35c   : > { %v3080_v27 = vsel %vm866_vm0, %v6506_v12, %v2845_v16  ;;  %v3095_v45 = vsel %vm866_vm0, %v6508_v24, %v2929_v48  ;;  %v3671_v24 = vrot.slane %v3663_v34, %v7699_v35 }
 0x35e   : > { %v3728_v34 = vcombine.high %v3671_v24, %v3687_v33 }
 0x35f   : > { %v2856_v47 = vpop.permute.xlu1 %2855  ;;  %v2940_v17 = vpop.permute.xlu0 %2939 }
 0x360   : > { %v3097_v12 = vsel %vm866_vm0, %v6513_v21, %v2940_v17 }
 0x363   : > { %v2867_v10 = vpop.permute.xlu1 %2866  ;;  %v2951_v1 = vpop.permute.xlu0 %2950 }
 0x364   : > { %v3084_v31 = vsel %vm866_vm0, %v6516_v15, %v2867_v10  ;;  %v3099_v60 = vsel %vm866_vm0, %v6518_v41, %v2951_v1  ;;  %v3082_v15 = vsel %vm866_vm0, %v6511_v57, %v2856_v47 }
 0x365   : > { %v3559_v26 = vcombine.low %v3080_v27, %v3084_v31  ;;  %v3560_v10 = vcombine.high %v3080_v27, %v3084_v31  ;;  %v3695_v56 = vcombine.low %v3095_v45, %v3099_v60 }
 0x367   : > { %v2878_v0 = vpop.permute.xlu1 %2877  ;;  %v2962_v9 = vpop.permute.xlu0 %2961  ;;  %v6785_v57 = vrot.slane %v3559_v26, %v7699_v35  ;;  %v6788_v31 = vrot.slane %v3560_v10, %v7699_v35  ;;  %v3703_v48 = vrot.slane %v3695_v56, %v7699_v35 }
 0x368   : > { %v3086_v41 = vsel %vm866_vm0, %v6521_v6, %v2878_v0  ;;  %v3101_v1 = vsel %vm866_vm0, %v6523_v54, %v2962_v9  ;;  %v3727_v0 = vcombine.low %v3671_v24, %v3687_v33  ;;  %v3680_v33 = vcombine.high %v6755_v29, %v6751_v53 }
 0x369   : > { %v3575_v14 = vcombine.low %v3082_v15, %v3086_v41  ;;  %v3576_v16 = vcombine.high %v3082_v15, %v3086_v41  ;;  %v3711_v3 = vcombine.low %v3097_v12, %v3101_v1  ;;  %7716 = vst [vmem:[#allocation13_spill] sm:$0xff] %v6785_v57  ;;  %7717 = vst [vmem:[#allocation14_spill] sm:$0xff] %v6788_v31 }
 0x36a   : > { %v3696_v24 = vcombine.high %v3095_v45, %v3099_v60  ;;  %v3694_v31 = vrot.slane %v3680_v33, %v7699_v35  ;;  %v7724_v33 = vcombine.low %v6628_v50, %v6637_v20 }
 0x36b   : > { %v6791_v21 = vrot.slane %v3575_v14, %v7699_v35  ;;  %v6794_v17 = vrot.slane %v3576_v16, %v7699_v35  ;;  %v3719_v6 = vrot.slane %v3711_v3, %v7699_v35  ;;  %v6797_v54 = vpop.permute.xlu1 %2888  ;;  %v6811_v3 = vrot.slane %v3727_v0, %v7704_v42  ;;  %v6824_v27 = vpop.permute.xlu0 %2972 }
 0x36d   : > { %7718 = vst [vmem:[#allocation15_spill] sm:$0xff] %v6791_v21  ;;  %7719 = vst [vmem:[#allocation16_spill] sm:$0xff] %v6794_v17  ;;  %v3759_v15 = vcombine.low %v3703_v48, %v3719_v6  ;;  %v3760_v56 = vcombine.high %v3703_v48, %v3719_v6  ;;  %v7722_v6 = vcombine.low %v6625_v55, %v6634_v22 }
 0x36e   : > { %7720 = vst [vmem:[#allocation17_spill] sm:$0xff] %v6811_v3  ;;  %v3712_v48 = vcombine.high %v3097_v12, %v3101_v1  ;;  %v7723_v12 = vcombine.high %v6625_v55, %v6634_v22 }
 0x36f   : > { %v6808_v10 = vpop.permute.xlu1 %2899  ;;  %v6814_v9 = vrot.slane %v3759_v15, %v7704_v42  ;;  %v3774_v26 = vrot.slane %v3760_v56, %v7704_v42  ;;  %v3742_v15 = vrot.slane %v3728_v34, %v7704_v42  ;;  %v2984_v56 = vpop.permute.xlu0 %2983 }
 0x370   : > { %v3726_v34 = vrot.slane %v3712_v48, %v7699_v35 }
 0x371   : > { %7721 = vst [vmem:[#allocation48_spill] sm:$0xff] %v6814_v9  ;;  %v3792_v41 = vcombine.high %v6811_v3, %v6814_v9  ;;  %v3793_v47 = vcombine.low %v3742_v15, %v3774_v26  ;;  %v3794_v29 = vcombine.high %v3742_v15, %v3774_v26  ;;  %v6858_v26 = vsel %vm866_vm0, %v6457_v40, %v6670_v23  ;;  %v7741_v9 = vld [vmem:[#allocation54_spill] sm:$0xff] }
 0x372   : > { %v6863_v15 = vsel %vm866_vm0, %v6475_v44, %v6684_v8  ;;  %v6880_v40 = vsel %vm866_vm0, %v6463_v63, %v6678_v51  ;;  %v6885_v44 = vsel %vm866_vm0, %v6469_v18, %v6682_v37 }
 0x373   : > { %v6818_v14 = vpop.permute.xlu1 %2910  ;;  %4215 = vrot.lane.b32.xlu0 %v3792_v41, %s4903_s21  ;;  %v3664_v41 = vcombine.high %v3087_v49, %v6759_v62  ;;  %v2995_v60 = vpop.permute.xlu0 %2994 }
 0x375   : > { %v3678_v53 = vrot.slane %v3664_v41, %v7699_v35  ;;  %v6868_v41 = vsel %vm866_vm0, %v6480_v43, %v6690_v38  ;;  %v7725_v43 = vcombine.high %v6628_v50, %v6637_v20  ;;  %v6905_v50 = vsel %vm866_vm0, %v6436_v5, %v6619_v4 }
 0x376   : > { %v3303_v63 = vcombine.low %v6885_v44, %v6868_v41 }
 0x377   : > { %v2922_v0 = vpop.permute.xlu1 %2921  ;;  %4227 = vrot.lane.b32.xlu0 %v7722_v6, %s4904_s3  ;;  %v3710_v6 = vrot.slane %v3696_v24, %v7699_v35  ;;  %v3017_v55 = vpop.permute.xlu0 %3016  ;;  %v3744_v37 = vcombine.high %v3678_v53, %v3694_v31 }
 0x379   : > { %v3775_v45 = vcombine.low %v3710_v6, %v3726_v34  ;;  %v3776_v18 = vcombine.high %v3710_v6, %v3726_v34  ;;  %v6932_v34 = vsel %vm866_vm0, %v6541_v11, %v2995_v60  ;;  %v7727_v11 = vld [vmem:[#allocation51_spill] sm:$0xff] }
 0x37a   : > { %v6952_v60 = vsel %vm866_vm0, %v7727_v11, %v6824_v27  ;;  %v7734_v27 = vld [vmem:[#allocation52_spill] sm:$0xff] }
 0x37b   : > { %v6831_v17 = vpop.permute.xlu1 %2932  ;;  %4231 = vrot.lane.b32.xlu0 %v3793_v47, %s4904_s3  ;;  %v3743_v47 = vcombine.low %v3678_v53, %v3694_v31  ;;  %v3783_v62 = vrot.slane %v3775_v45, %v7704_v42  ;;  %v6921_v31 = vrot.slane %v3303_v63, %v7699_v35  ;;  %v6924_v4 = vrot.slane %v3776_v18, %v7704_v42  ;;  %v7735_v63 = vld [vmem:[#allocation47_spill] sm:$0xff] }
 0x37c   : > { %v3758_v53 = vrot.slane %v3744_v37, %v7704_v42 }
 0x37d   : > { %v3751_v48 = vrot.slane %v3743_v47, %v7704_v42  ;;  %v6941_v47 = vsel %vm866_vm0, %v6545_v19, %v2922_v0  ;;  %v7729_v19 = vld [vmem:[#allocation20_spill] sm:$0xff] }
 0x37f   : > { %v2944_v16 = vpop.permute.xlu1 %2943  ;;  %4243 = vrot.lane.b32.xlu0 %v7723_v12, %s4905_s15  ;;  %v3795_v22 = vcombine.low %v3751_v48, %v3783_v62  ;;  %v3039_v12 = vpop.permute.xlu0 %3038  ;;  %v3796_v51 = vcombine.high %v3751_v48, %v3783_v62  ;;  %v7726_v62 = vld [vmem:[#allocation61_spill] sm:$0xff] }
 0x380   : > { %v6945_v48 = vsel %vm866_vm0, %v7726_v62, %v3039_v12  ;;  %v6961_v0 = vsel %vm866_vm0, %v7729_v19, %v2944_v16  ;;  %v7731_v12 = vld [vmem:[#allocation42_spill] sm:$0xff]  ;;  %v6980_v16 = vsel %vm866_vm0, %v7735_v63, %v3017_v55 }
 0x381   : > { %v7737_v55 = vld [vmem:[#allocation58_spill] sm:$0xff] }
 0x382   : > { %v7000_v11 = vsel %vm866_vm0, %v7737_v55, %v6797_v54  ;;  %v7740_v54 = vld [vmem:[#allocation27_spill] sm:$0xff] }
 0x383   : > { %v2955_v1 = vpop.permute.xlu1 %2954  ;;  %4247 = vrot.lane.b32.xlu0 %v3794_v29, %s4905_s15  ;;  %v6875_v29 = vsel %vm866_vm0, %v6443_v7, %v6642_v32  ;;  %v3287_v7 = vcombine.low %v6880_v40, %v6863_v15  ;;  %v6900_v32 = vsel %vm866_vm0, %v6451_v28, %v6663_v13  ;;  %v2999_v5 = vpop.permute.xlu0 %2998 }
 0x384   : > { %v3271_v23 = vcombine.low %v6875_v29, %v6858_v26  ;;  %v3255_v38 = vcombine.low %v6905_v50, %v6900_v32 }
 0x385   : > { %v6918_v13 = vrot.slane %v3287_v7, %v7699_v35  ;;  %v6974_v7 = vsel %vm866_vm0, %v7734_v27, %v6818_v14  ;;  %v3967_v14 = vcombine.low %v6980_v16, %v6945_v48  ;;  %v7739_v27 = vld [vmem:[#allocation50_spill] sm:$0xff] }
 0x386   : > { %v6915_v28 = vrot.slane %v3271_v23, %v7699_v35  ;;  %v6995_v62 = vrot.slane %v3255_v38, %v7699_v35  ;;  %v3799_v38 = vcombine.low %v7000_v11, %v6974_v7 }
 0x387   : > { %v2966_v49 = vpop.permute.xlu1 %2965  ;;  %4259 = vrot.lane.b32.xlu0 %v7724_v33, %s4906_s18  ;;  %v7730_v33 = vld [vmem:[#allocation21_spill] sm:$0xff]  ;;  %v7004_v19 = vpop.permute.xlu0 %3020 }
 0x388   : > { %v6936_v6 = vsel %vm866_vm0, %v6569_v30, %v2966_v49  ;;  %v7728_v30 = vld [vmem:[#allocation22_spill] sm:$0xff]  ;;  %7738 = vst [vmem:[#allocation49_spill] sm:$0xff] %v7004_v19 }
 0x389   : > { %v6957_v49 = vsel %vm866_vm0, %v7728_v30, %v6808_v10  ;;  %v3935_v10 = vcombine.low %v6952_v60, %v6932_v34 }
 0x38a   : > { %v3815_v18 = vcombine.low %v6957_v49, %v6941_v47 }
 0x38b   : > { %v6852_v24 = vpop.permute.xlu1 %2976  ;;  %4263 = vrot.lane.b32.xlu0 %v3795_v22, %s4906_s18  ;;  %v6965_v22 = vsel %vm866_vm0, %v7730_v33, %v2955_v1  ;;  %v3847_v1 = vcombine.low %v6961_v0, %v6936_v6  ;;  %v3943_v55 = vrot.slane %v3935_v10, %v7699_v35 }
 0x38c   : > { %v3104_v3 = vsel %vm866_vm0, %v7741_v9, %v6852_v24 }
 0x38f   : > { %v6870_v45 = vpop.permute.xlu1 %2987  ;;  %4275 = vrot.lane.b32.xlu0 %v7725_v43, %s4907_s19  ;;  %v7732_v43 = vld [vmem:[#allocation41_spill] sm:$0xff] }
 0x390   : > { %v7733_v23 = vcombine.low %v7731_v12, %v7732_v43 }
 0x393   : > { %v3006_v8 = vpop.permute.xlu1 %3005  ;;  %4279 = vrot.lane.b32.xlu0 %v3796_v51, %s4907_s19  ;;  %v7736_v51 = vld [vmem:[#allocation23_spill] sm:$0xff] }
 0x394   : > { %v6909_v20 = vsel %vm866_vm0, %v6547_v25, %v3006_v8  ;;  %v6928_v25 = vsel %vm866_vm0, %v6533_v61, %v2984_v56  ;;  %v6989_v37 = vsel %vm866_vm0, %v7736_v51, %v6831_v17  ;;  %v3797_v8 = vcombine.low %v3758_v53, %v6924_v4 }
 0x395   : > { %v3951_v61 = vcombine.low %v6928_v25, %v6909_v20  ;;  %v3831_v30 = vcombine.low %v6989_v37, %v6965_v22 }
 0x397   : > { %v3028_v56 = vpop.permute.xlu1 %3027  ;;  %4291 = vrot.lane.b32.xlu0 %v7733_v23, %s4908_s26  ;;  %v3959_v17 = vrot.slane %v3951_v61, %v7699_v35  ;;  %v3351_v23 = vcombine.low %v6918_v13, %v6921_v31  ;;  %v7022_v61 = vrot.slane %v3847_v1, %v7699_v35  ;;  %v7038_v1 = vrot.slane %v3831_v30, %v7699_v35 }
 0x398   : > { %v7013_v63 = vsel %vm866_vm0, %v7739_v27, %v3028_v56  ;;  %v3319_v56 = vcombine.low %v6995_v62, %v6915_v28  ;;  %v7742_v27 = vld [vmem:[#allocation55_spill] sm:$0xff] }
 0x399   : > { %v3108_v10 = vsel %vm866_vm0, %v7742_v27, %v2999_v5  ;;  %v3359_v57 = vrot.slane %v3351_v23, %v7704_v42  ;;  %v7049_v5 = vrot.slane %v3799_v38, %v7699_v35  ;;  %v3895_v30 = vcombine.low %v7038_v1, %v7022_v61  ;;  %v7746_v23 = vld [vmem:[#allocation25_spill] sm:$0xff] }
 0x39a   : > { %v4071_v19 = vcombine.low %v3104_v3, %v3108_v10  ;;  %v4072_v58 = vcombine.high %v3104_v3, %v3108_v10  ;;  %v3106_v3 = vsel %vm866_vm0, %v7746_v23, %v6870_v45 }
 0x39b   : > { %v3050_v33 = vpop.permute.xlu1 %3049  ;;  %4295 = vrot.lane.b32.xlu0 %v3797_v8, %s4908_s26  ;;  %v3975_v8 = vrot.slane %v3967_v14, %v7699_v35  ;;  %v7744_v14 = vcombine.high %v7731_v12, %v7732_v43  ;;  %v3327_v12 = vrot.slane %v3319_v56, %v7704_v42 }
 0x39c   : > { %v7017_v51 = vsel %vm866_vm0, %v7740_v54, %v3050_v33  ;;  %v7032_v33 = vrot.slane %v3815_v18, %v7699_v35  ;;  %v3999_v54 = vcombine.low %v3943_v55, %v3959_v17  ;;  %v7072_v45 = vrot.slane %v4072_v58, %v7699_v35 }
 0x39d   : > { %v3983_v21 = vcombine.low %v7013_v63, %v7017_v51  ;;  %v3383_v23 = vcombine.low %v3327_v12, %v3359_v57 }
 0x39e   : > { %v3863_v43 = vcombine.low %v7049_v5, %v7032_v33  ;;  %v7063_v38 = vrot.slane %v3999_v54, %v7704_v42 }
 0x39f   : > { %v3991_v9 = vrot.slane %v3983_v21, %v7699_v35  ;;  %v3010_v24 = vpop.permute.xlu1 %3009  ;;  %4307 = vrot.lane.b32.xlu0 %v7744_v14, %s4909_s2  ;;  %v7053_v21 = vpop.permute.xlu0 %3042 }
 0x3a0   : > { %v3110_v18 = vsel %vm866_vm0, %v7743_v2, %v3010_v24  ;;  %7745 = vst [vmem:[#allocation62_spill] sm:$0xff] %v7053_v21  ;;  %v3798_v24 = vcombine.high %v3758_v53, %v6924_v4  ;;  %v7069_v21 = vrot.slane %v4071_v19, %v7699_v35  ;;  %v3903_v53 = vrot.slane %v3895_v30, %v7704_v42  ;;  %v7748_v30 = vld [vmem:[#allocation59_spill] sm:$0xff] }
 0x3a1   : > { %v4031_v27 = vcombine.low %v3975_v8, %v3991_v9  ;;  %v4087_v10 = vcombine.low %v3106_v3, %v3110_v18  ;;  %v4088_v2 = vcombine.high %v3106_v3, %v3110_v18  ;;  %v4032_v56 = vcombine.high %v3975_v8, %v3991_v9  ;;  %v7749_v8 = vld [vmem:[#allocation39_spill] sm:$0xff] }
 0x3a2   : > { %v7750_v9 = vcombine.low %v7748_v30, %v7749_v8  ;;  %v3871_v58 = vrot.slane %v3863_v43, %v7704_v42  ;;  %v3984_v43 = vcombine.high %v7013_v63, %v7017_v51  ;;  %v3320_v30 = vcombine.high %v6995_v62, %v6915_v28 }
 0x3a3   : > { %v7066_v14 = vrot.slane %v4031_v27, %v7704_v42  ;;  %v7075_v18 = vrot.slane %v4087_v10, %v7699_v35  ;;  %v7078_v4 = vrot.slane %v4088_v2, %v7699_v35  ;;  %4311 = vrot.lane.b32.xlu0 %v3798_v24, %s4909_s2  ;;  %v4000_v2 = vcombine.high %v3943_v55, %v3959_v17 }
 0x3a4   : > { %v4046_v3 = vrot.slane %v4032_v56, %v7704_v42  ;;  %v7751_v55 = vcombine.low %v6706_v59, %v6714_v46  ;;  %v3352_v56 = vcombine.high %v6918_v13, %v6921_v31  ;;  %v3936_v63 = vcombine.high %v6952_v60, %v6932_v34 }
 0x3a5   : > { %7747 = vst [vmem:[#allocation63_spill] sm:$0xff] %v7075_v18  ;;  %v4212_v54 = vpop.permute.xlu0 %4211  ;;  %v4064_v19 = vcombine.high %v7063_v38, %v7066_v14  ;;  %v4152_v10 = vcombine.high %v7072_v45, %v7078_v4  ;;  %v4063_v27 = vcombine.low %v7063_v38, %v7066_v14  ;;  %v3927_v18 = vcombine.low %v3871_v58, %v3903_v53 }
 0x3a6   : > { %v7096_v24 = vsel %vm2259_vm1, %v7750_v9, %v4212_v54  ;;  %v4014_v17 = vrot.slane %v4000_v2, %v7704_v42  ;;  %v3952_v2 = vcombine.high %v6928_v25, %v6909_v20  ;;  %v7125_v51 = vrot.slane %v3984_v43, %v7699_v35 }
 0x3a7   : > { %4217 = vrot.lane.b32.xlu1 %v4064_v19, %s4903_s21  ;;  %4323 = vrot.lane.b32.xlu0 %v3383_v23, %s4910_s4  ;;  %v3384_v23 = vcombine.high %v3327_v12, %v3359_v57  ;;  %v3968_v19 = vcombine.high %v6980_v16, %v6945_v48  ;;  %v3366_v57 = vrot.slane %v3352_v56, %v7704_v42  ;;  %s7776_s21 = smov 28  }
 0x3a8   : > { %v4065_v54 = vcombine.low %v4014_v17, %v4046_v3  ;;  %v3896_v13 = vcombine.high %v7038_v1, %v7022_v61  ;;  %v3928_v31 = vcombine.high %v3871_v58, %v3903_v53  ;;  %v7132_v25 = vrot.slane %v3952_v2, %v7699_v35 }
 0x3a9   : > { %v3982_v20 = vrot.slane %v3968_v19, %v7699_v35  ;;  %v7753_v28 = vcombine.high %v6706_v59, %v6714_v46  ;;  %v3334_v34 = vrot.slane %v3320_v30, %v7704_v42  ;;  %v3864_v48 = vcombine.high %v7049_v5, %v7032_v33 }
 0x3aa   : > { %v3950_v60 = vrot.slane %v3936_v63, %v7699_v35  ;;  %v4066_v62 = vcombine.high %v4014_v17, %v4046_v3  ;;  %v3304_v61 = vcombine.high %v6885_v44, %v6868_v41  ;;  %v3910_v1 = vrot.slane %v3896_v13, %v7704_v42 }
 0x3ab   : > { %4229 = vrot.lane.b32.xlu1 %v7751_v55, %s4904_s3  ;;  %4327 = vrot.lane.b32.xlu0 %v3927_v18, %s4910_s4  ;;  %v4047_v16 = vcombine.low %v3982_v20, %v7125_v51  ;;  %v3385_v12 = vcombine.low %v3334_v34, %v3366_v57  ;;  %v3272_v46 = vcombine.high %v6875_v29, %v6858_v26 }
 0x3ac   : > { %v4015_v59 = vcombine.low %v3950_v60, %v7132_v25  ;;  %v3288_v33 = vcombine.high %v6880_v40, %v6863_v15  ;;  %v3878_v5 = vrot.slane %v3864_v48, %v7704_v42  ;;  %v3256_v41 = vcombine.high %v6905_v50, %v6900_v32  ;;  %v7760_v48 = vld [vmem:[#allocation28_spill] sm:$0xff] }
 0x3ad   : > { %v4055_v44 = vrot.slane %v4047_v16, %v7704_v42  ;;  %v7159_v18 = vrot.slane %v3304_v61, %v7699_v35  ;;  %v3848_v53 = vcombine.high %v6961_v0, %v6936_v6  ;;  %v7754_v15 = vcombine.low %v6723_v36, %v6717_v39  ;;  %v7761_v16 = vld [vmem:[#allocation60_spill] sm:$0xff] }
 0x3ae   : > { %v3929_v58 = vcombine.low %v3878_v5, %v3910_v1  ;;  %v4023_v26 = vrot.slane %v4015_v59, %v7704_v42  ;;  %v7169_v29 = vrot.slane %v3272_v46, %v7699_v35  ;;  %v3302_v40 = vrot.slane %v3288_v33, %v7699_v35  ;;  %v7763_v59 = vld [vmem:[#allocation11_spill] sm:$0xff]  ;;  %v7765_v33 = vld [vmem:[#allocation37_spill] sm:$0xff] }
 0x3af   : > { %4233 = vrot.lane.b32.xlu1 %v4065_v54, %s4904_s3  ;;  %4339 = vrot.lane.b32.xlu0 %v3384_v23, %s7752_s30  ;;  %v3816_v32 = vcombine.high %v6957_v49, %v6941_v47  ;;  %v3832_v50 = vcombine.high %v6989_v37, %v6965_v22  ;;  %v3270_v6 = vrot.slane %v3256_v41, %v7699_v35  ;;  %v3032_v37 = vpop.permute.xlu1 %3031  ;;  %s7779_s3 = smov 30  }
 0x3b0   : > { %v4067_v0 = vcombine.low %v4023_v26, %v4055_v44  ;;  %v3367_v3 = vcombine.low %v3302_v40, %v7159_v18  ;;  %v3800_v8 = vcombine.high %v7000_v11, %v6974_v7  ;;  %v7182_v9 = vrot.slane %v3848_v53, %v7699_v35  ;;  %v7768_v53 = vld [vmem:[#allocation43_spill] sm:$0xff] }
 0x3b1   : > { %v3386_v17 = vcombine.high %v3334_v34, %v3366_v57  ;;  %v3335_v47 = vcombine.low %v3270_v6, %v7169_v29  ;;  %v7187_v49 = vrot.slane %v3816_v32, %v7699_v35  ;;  %v3846_v22 = vrot.slane %v3832_v50, %v7699_v35 }
 0x3b2   : > { %v3375_v55 = vrot.slane %v3367_v3, %v7704_v42  ;;  %v3814_v7 = vrot.slane %v3800_v8, %v7699_v35  ;;  %v3930_v43 = vcombine.high %v3878_v5, %v3910_v1  ;;  %v7755_v54 = vcombine.high %v6723_v36, %v6717_v39  ;;  %v7756_v39 = vld [vmem:[#allocation29_spill] sm:$0xff]  ;;  %v7766_v5 = vld [vmem:[#allocation31_spill] sm:$0xff] }
 0x3b3   : > { %4245 = vrot.lane.b32.xlu1 %v7753_v28, %s4905_s15  ;;  %4343 = vrot.lane.b32.xlu0 %v3928_v31, %s7752_s30  ;;  %v3911_v11 = vcombine.low %v3846_v22, %v7182_v9  ;;  %v3343_v56 = vrot.slane %v3335_v47, %v7704_v42  ;;  %v4048_v19 = vcombine.high %v3982_v20, %v7125_v51  ;;  %v3054_v13 = vpop.permute.xlu1 %3053  ;;  %v7757_v20 = vld [vmem:[#allocation40_spill] sm:$0xff]  ;;  %v7770_v8 = vld [vmem:[#allocation49_spill] sm:$0xff] }
 0x3b4   : > { %v3879_v23 = vcombine.low %v3814_v7, %v7187_v49  ;;  %v4068_v2 = vcombine.high %v4023_v26, %v4055_v44  ;;  %v4016_v57 = vcombine.high %v3950_v60, %v7132_v25  ;;  %v7208_v36 = vsel %vm866_vm0, %v7756_v39, %v6747_v52  ;;  %v7758_v28 = vld [vmem:[#allocation32_spill] sm:$0xff]  ;;  %v7767_v44 = vld [vmem:[#allocation62_spill] sm:$0xff] }
 0x3b5   : > { %v3919_v30 = vrot.slane %v3911_v11, %v7704_v42  ;;  %v3387_v63 = vcombine.low %v3343_v56, %v3375_v55  ;;  %v4062_v51 = vrot.slane %v4048_v19, %v7704_v42  ;;  %v7216_v34 = vsel %vm866_vm0, %v7758_v28, %v7757_v20  ;;  %v7759_v25 = vld [vmem:[#allocation12_spill] sm:$0xff] }
 0x3b6   : > { %v3887_v31 = vrot.slane %v3879_v23, %v7704_v42  ;;  %v7221_v60 = vsel %vm866_vm0, %v7760_v48, %v7759_v25  ;;  %v7225_v52 = vsel %vm866_vm0, %v7761_v16, %v3054_v13  ;;  %v3543_v61 = vcombine.low %v7216_v34, %v7208_v36  ;;  %v7769_v26 = vld [vmem:[#allocation24_spill] sm:$0xff]  ;;  %v7774_v13 = vld [vmem:[#allocation15_spill] sm:$0xff] }
 0x3b7   : > { %4249 = vrot.lane.b32.xlu1 %v4066_v62, %s4905_s15  ;;  %4355 = vrot.lane.b32.xlu0 %v3385_v12, %s4912_s14  ;;  %v4030_v1 = vrot.slane %v4016_v57, %v7704_v42  ;;  %v7762_v12 = vld [vmem:[#allocation10_spill] sm:$0xff]  ;;  %v7237_v41 = vsel %vm866_vm0, %v7766_v5, %v7765_v33  ;;  %v3368_v3 = vcombine.high %v3302_v40, %v7159_v18  ;;  %v7773_v57 = vld [vmem:[#allocation13_spill] sm:$0xff]  ;;  %v7777_v16 = vld [vmem:[#allocation63_spill] sm:$0xff]  ;;  %s4516_s15 = scalar_lea.sflag [#allocation4], %s5061_s24 }
 0x3b8   : > { %v3931_v62 = vcombine.low %v3887_v31, %v3919_v30  ;;  %v7764_v46 = vcombine.low %v7762_v12, %v7763_v59  ;;  %v3527_v32 = vcombine.low %v7237_v41, %v7221_v60  ;;  %v3388_v11 = vcombine.high %v3343_v56, %v3375_v55 }
 0x3b9   : > { %v3382_v40 = vrot.slane %v3368_v3, %v7704_v42  ;;  %v3912_v19 = vcombine.high %v3846_v22, %v7182_v9  ;;  %v3932_v55 = vcombine.high %v3887_v31, %v3919_v30  ;;  %v7775_v39 = vcombine.low %v7773_v57, %v7774_v13 }
 0x3ba   : > { %v3535_v23 = vrot.slane %v3527_v32, %v7699_v35  ;;  %v4070_v30 = vcombine.high %v4030_v1, %v4062_v51  ;;  %v7780_v33 = vcombine.high %v7773_v57, %v7774_v13 }
 0x3bb   : > { %4261 = vrot.lane.b32.xlu1 %v7754_v15, %s4906_s18  ;;  %4359 = vrot.lane.b32.xlu0 %v3929_v58, %s4912_s14  ;;  %v7242_v58 = vsel %vm866_vm0, %v7768_v53, %v7767_v44  ;;  %v7246_v15 = vsel %vm866_vm0, %v7769_v26, %v3032_v37  ;;  %v3551_v37 = vrot.slane %v3543_v61, %v7699_v35 }
 0x3bc   : > { %v4119_v50 = vcombine.low %v7246_v15, %v7225_v52  ;;  %v3631_v9 = vrot.slane %v7775_v39, %v7704_v42  ;;  %v3926_v31 = vrot.slane %v3912_v19, %v7704_v42  ;;  %v3638_v5 = vrot.slane %v7780_v33, %v7704_v42 }
 0x3bd   : > { %v3591_v56 = vcombine.low %v3535_v23, %v3551_v37  ;;  %v4120_v19 = vcombine.high %v7246_v15, %v7225_v52 }
 0x3be   : > { %v4127_v18 = vrot.slane %v4119_v50, %v7699_v35  ;;  %v7781_v50 = vld [vmem:[#allocation17_spill] sm:$0xff] }
 0x3bf   : > { %4265 = vrot.lane.b32.xlu1 %v4067_v0, %s4906_s18  ;;  %4371 = vrot.lane.b32.xlu0 %v3386_v17, %s4913_s23  ;;  %v4069_v0 = vcombine.low %v4030_v1, %v4062_v51  ;;  %v7771_v17 = vld [vmem:[#allocation53_spill] sm:$0xff]  ;;  %v3599_v28 = vrot.slane %v3591_v56, %v7704_v42 }
 0x3c0   : > { %v7257_v47 = vsel %vm866_vm0, %v7771_v17, %v7770_v8 }
 0x3c3   : > { %4277 = vrot.lane.b32.xlu1 %v7755_v54, %s4907_s19  ;;  %4375 = vrot.lane.b32.xlu0 %v3930_v43, %s4913_s23  ;;  %v4103_v43 = vcombine.low %v7257_v47, %v7242_v58  ;;  %v3336_v54 = vcombine.high %v3270_v6, %v7169_v29  ;;  %v3880_v6 = vcombine.high %v3814_v7, %v7187_v49 }
 0x3c4   : > { %v3655_v7 = vcombine.low %v3599_v28, %v3631_v9 }
 0x3c5   : > { %v3350_v29 = vrot.slane %v3336_v54, %v7704_v42  ;;  %v3894_v25 = vrot.slane %v3880_v6, %v7704_v42  ;;  %v7784_v54 = vcombine.high %v7069_v21, %v7777_v16 }
 0x3c7   : > { %4281 = vrot.lane.b32.xlu1 %v4068_v2, %s4907_s19  ;;  %4387 = vrot.lane.b32.xlu0 %v3387_v63, %s4914_s20  ;;  %v4111_v2 = vrot.slane %v4103_v43, %v7699_v35  ;;  %v7772_v63 = vcombine.high %v7762_v12, %v7763_v59  ;;  %v3389_v20 = vcombine.low %v3350_v29, %v3382_v40 }
 0x3c8   : > { %v3933_v48 = vcombine.low %v3894_v25, %v3926_v31  ;;  %v3390_v1 = vcombine.high %v3350_v29, %v3382_v40  ;;  %v3656_v12 = vcombine.high %v3599_v28, %v3631_v9  ;;  %v3934_v59 = vcombine.high %v3894_v25, %v3926_v31  ;;  %v7785_v29 = vld [vmem:[#allocation14_spill] sm:$0xff] }
 0x3c9   : > { %v4167_v22 = vcombine.low %v4111_v2, %v4127_v18  ;;  %v4168_v44 = vcombine.high %v4111_v2, %v4127_v18  ;;  %v3544_v43 = vcombine.high %v7216_v34, %v7208_v36  ;;  %v3528_v40 = vcombine.high %v7237_v41, %v7221_v60 }
 0x3ca   : > { %v4104_v34 = vcombine.high %v7257_v47, %v7242_v58  ;;  %v4134_v2 = vrot.slane %v4120_v19, %v7699_v35  ;;  %v7786_v58 = vld [vmem:[#allocation16_spill] sm:$0xff] }
 0x3cb   : > { %4293 = vrot.lane.b32.xlu1 %v7764_v46, %s4908_s26  ;;  %4391 = vrot.lane.b32.xlu0 %v3931_v62, %s4914_s20  ;;  %v4175_v49 = vrot.slane %v4167_v22, %v7704_v42  ;;  %v7778_v62 = vcombine.low %v7069_v21, %v7777_v16  ;;  %v3592_v46 = vcombine.high %v3535_v23, %v3551_v37 }
 0x3cc   : > { %v4182_v17 = vrot.slane %v4168_v44, %v7704_v42  ;;  %v4150_v23 = vrot.slane %v7784_v54, %v7704_v42  ;;  %v3558_v36 = vrot.slane %v3544_v43, %v7699_v35  ;;  %v4118_v52 = vrot.slane %v4104_v34, %v7699_v35 }
 0x3cd   : > { %v4143_v51 = vrot.slane %v7778_v62, %v7704_v42  ;;  %v3606_v32 = vrot.slane %v3592_v46, %v7704_v42  ;;  %v7787_v47 = vcombine.low %v7785_v29, %v7786_v58 }
 0x3ce   : > { %v4183_v57 = vcombine.low %v4118_v52, %v4134_v2  ;;  %v4202_v13 = vcombine.high %v4150_v23, %v4182_v17 }
 0x3cf   : > { %4297 = vrot.lane.b32.xlu1 %v4069_v0, %s4908_s26  ;;  %4403 = vrot.lane.b32.xlu0 %v3388_v11, %s4915_s28  ;;  %v4199_v61 = vcombine.low %v4143_v51, %v4175_v49  ;;  %v4200_v53 = vcombine.high %v4143_v51, %v4175_v49  ;;  %v7782_v0 = vld [vmem:[#allocation48_spill] sm:$0xff]  ;;  %v3657_v11 = vcombine.low %v3606_v32, %v3638_v5 }
 0x3d0   : > { %v7783_v3 = vcombine.low %v7781_v50, %v7782_v0  ;;  %v3647_v6 = vrot.slane %v7787_v47, %v7704_v42  ;;  %v4166_v50 = vrot.slane %v4152_v10, %v7704_v42  ;;  %v7791_v10 = vld [vmem:[#allocation36_spill] sm:$0xff] }
 0x3d3   : > { %4309 = vrot.lane.b32.xlu1 %v7772_v63, %s4909_s2  ;;  %4407 = vrot.lane.b32.xlu0 %v3932_v55, %s4915_s28  ;;  %v4201_v55 = vcombine.low %v4150_v23, %v4182_v17  ;;  %v3658_v63 = vcombine.high %v3606_v32, %v3638_v5 }
 0x3d7   : > { %4313 = vrot.lane.b32.xlu1 %v4070_v30, %s4909_s2  ;;  %4419 = vrot.lane.b32.xlu0 %v3389_v20, %s7776_s21  ;;  %v7788_v20 = vcombine.low %v7072_v45, %v7078_v4  ;;  %v7790_v4 = vld [vmem:[#allocation38_spill] sm:$0xff] }
 0x3d8   : > { %v7792_v23 = vcombine.low %v7790_v4, %v7791_v10 }
 0x3d9   : > { %v4159_v28 = vrot.slane %v7788_v20, %v7704_v42 }
 0x3db   : > { %4325 = vrot.lane.b32.xlu1 %v3655_v7, %s4910_s4  ;;  %4423 = vrot.lane.b32.xlu0 %v3933_v48, %s7776_s21 }
 0x3df   : > { %4329 = vrot.lane.b32.xlu1 %v4199_v61, %s4910_s4  ;;  %4435 = vrot.lane.b32.xlu0 %v3390_v1, %s7779_s3  ;;  %v7789_v1 = vcombine.high %v7785_v29, %v7786_v58 }
 0x3e3   : > { %4341 = vrot.lane.b32.xlu1 %v3656_v12, %s7752_s30  ;;  %4439 = vrot.lane.b32.xlu0 %v3934_v59, %s7779_s3  ;;  %v3654_v12 = vrot.slane %v7789_v1, %v7704_v42  ;;  %v4184_v59 = vcombine.high %v4118_v52, %v4134_v2 }
 0x3e5   : > { %v4216_v26 = vpop.permute.xlu0 %4215 }
 0x3e6   : > { %v4449_v8 = vsel %vm2259_vm1, %v7783_v3, %v4216_v26 }
 0x3e7   : > { %4345 = vrot.lane.b32.xlu1 %v4200_v53, %s7752_s30  ;;  %v4198_v53 = vrot.slane %v4184_v59, %v7704_v42 }
 0x3e9   : > { %v4228_v37 = vpop.permute.xlu0 %4227  ;;  %v4205_v0 = vcombine.low %v4166_v50, %v4198_v53 }
 0x3ea   : > { %v4451_v18 = vsel %vm2264_vm2, %v7096_v24, %v4228_v37  ;;  %v3542_v24 = vrot.slane %v3528_v40, %v7699_v35  ;;  %v4191_v35 = vrot.slane %v4183_v57, %v7704_v42  ;;  %v4206_v37 = vcombine.high %v4166_v50, %v4198_v53 }
 0x3eb   : > { %4357 = vrot.lane.b32.xlu1 %v3657_v11, %s4912_s14  ;;  %v4214_v11 = vpop.permute.xlu1 %4213 }
 0x3ec   : > { %v3607_v41 = vcombine.low %v3542_v24, %v3558_v36  ;;  %v4203_v49 = vcombine.low %v4159_v28, %v4191_v35  ;;  %v3608_v51 = vcombine.high %v3542_v24, %v3558_v36  ;;  %v4204_v46 = vcombine.high %v4159_v28, %v4191_v35 }
 0x3ed   : > { %v4232_v56 = vpop.permute.xlu0 %4231 }
 0x3ee   : > { %v4453_v21 = vsel %vm2264_vm2, %v4449_v8, %v4232_v56  ;;  %v3615_v9 = vrot.slane %v3607_v41, %v7704_v42  ;;  %v3622_v5 = vrot.slane %v3608_v51, %v7704_v42 }
 0x3ef   : > { %4361 = vrot.lane.b32.xlu1 %v4201_v55, %s4912_s14 }
 0x3f0   : > { %v3659_v30 = vcombine.low %v3615_v9, %v3647_v6  ;;  %v3660_v16 = vcombine.high %v3615_v9, %v3647_v6  ;;  %v3661_v26 = vcombine.low %v3622_v5, %v3654_v12  ;;  %v3662_v8 = vcombine.high %v3622_v5, %v3654_v12 }
 0x3f1   : > { %v4244_v60 = vpop.permute.xlu0 %4243 }
 0x3f2   : > { %v4455_v15 = vsel %vm2269_vm3, %v4451_v18, %v4244_v60  ;;  %v4448_v18 = vsel %vm2259_vm1, %v7792_v23, %v4214_v11 }
 0x3f3   : > { %4373 = vrot.lane.b32.xlu1 %v3658_v63, %s4913_s23 }
 0x3f5   : > { %v4248_v39 = vpop.permute.xlu0 %4247 }
 0x3f6   : > { %v4457_v22 = vsel %vm2269_vm3, %v4453_v21, %v4248_v39 }
 0x3f7   : > { %4377 = vrot.lane.b32.xlu1 %v4202_v13, %s4913_s23 }
 0x3f9   : > { %v4260_v31 = vpop.permute.xlu0 %4259 }
 0x3fa   : > { %v4459_v25 = vsel %vm2274_vm4, %v4455_v15, %v4260_v31 }
 0x3fb   : > { %4389 = vrot.lane.b32.xlu1 %v3659_v30, %s4914_s20 }
 0x3fd   : > { %v4264_v7 = vpop.permute.xlu0 %4263 }
 0x3fe   : > { %v4461_v48 = vsel %vm2274_vm4, %v4457_v22, %v4264_v7 }
 0x3ff   : > { %4393 = vrot.lane.b32.xlu1 %v4203_v49, %s4914_s20 }
 0x401   : > { %v4276_v62 = vpop.permute.xlu0 %4275 }
 0x402   : > { %v4463_v61 = vsel %vm2279_vm5, %v4459_v25, %v4276_v62 }
 0x403   : > { %4405 = vrot.lane.b32.xlu1 %v3660_v16, %s4915_s28 }
 0x405   : > { %v4280_v33 = vpop.permute.xlu0 %4279 }
 0x406   : > { %v4465_v44 = vsel %vm2279_vm5, %v4461_v48, %v4280_v33 }
 0x407   : > { %4409 = vrot.lane.b32.xlu1 %v4204_v46, %s4915_s28 }
 0x409   : > { %v4292_v32 = vpop.permute.xlu0 %4291 }
 0x40a   : > { %v4467_v25 = vsel %vm2284_vm6, %v4463_v61, %v4292_v32 }
 0x40b   : > { %4421 = vrot.lane.b32.xlu1 %v3661_v26, %s7776_s21 }
 0x40d   : > { %v4296_v3 = vpop.permute.xlu0 %4295 }
 0x40e   : > { %v4469_v51 = vsel %vm2284_vm6, %v4465_v44, %v4296_v3 }
 0x40f   : > { %4425 = vrot.lane.b32.xlu1 %v4205_v0, %s7776_s21 }
 0x411   : > { %v4308_v17 = vpop.permute.xlu0 %4307 }
 0x412   : > { %v4471_v7 = vsel %vm2289_vm7, %v4467_v25, %v4308_v17 }
 0x413   : > { %4437 = vrot.lane.b32.xlu1 %v3662_v8, %s7779_s3 }
 0x415   : > { %v4312_v43 = vpop.permute.xlu0 %4311 }
 0x416   : > { %v4473_v59 = vsel %vm2289_vm7, %v4469_v51, %v4312_v43 }
 0x417   : > { %4441 = vrot.lane.b32.xlu1 %v4206_v37, %s7779_s3 }
 0x419   : > { %v4218_v54 = vpop.permute.xlu1 %4217  ;;  %v4324_v45 = vpop.permute.xlu0 %4323 }
 0x41a   : > { %v4450_v42 = vsel %vm2259_vm1, %v4063_v27, %v4218_v54  ;;  %v4475_v48 = vsel %vm2294_vm8, %v4471_v7, %v4324_v45 }
 0x41d   : > { %v4230_v40 = vpop.permute.xlu1 %4229  ;;  %v4328_v55 = vpop.permute.xlu0 %4327 }
 0x41e   : > { %v4452_v19 = vsel %vm2264_vm2, %v4448_v18, %v4230_v40  ;;  %v4477_v61 = vsel %vm2294_vm8, %v4473_v59, %v4328_v55 }
 0x421   : > { %v4234_v56 = vpop.permute.xlu1 %4233  ;;  %v4340_v34 = vpop.permute.xlu0 %4339 }
 0x422   : > { %v4454_v36 = vsel %vm2264_vm2, %v4450_v42, %v4234_v56  ;;  %v4479_v16 = vsel %vm2299_vm9, %v4475_v48, %v4340_v34 }
 0x425   : > { %v4246_v21 = vpop.permute.xlu1 %4245  ;;  %v4344_v38 = vpop.permute.xlu0 %4343 }
 0x426   : > { %v4456_v24 = vsel %vm2269_vm3, %v4452_v19, %v4246_v21  ;;  %v4481_v5 = vsel %vm2299_vm9, %v4477_v61, %v4344_v38 }
 0x429   : > { %v4250_v14 = vpop.permute.xlu1 %4249  ;;  %v4356_v2 = vpop.permute.xlu0 %4355 }
 0x42a   : > { %v4458_v27 = vsel %vm2269_vm3, %v4454_v36, %v4250_v14  ;;  %v4483_v1 = vsel %vm2304_vm10, %v4479_v16, %v4356_v2 }
 0x42d   : > { %v4262_v63 = vpop.permute.xlu1 %4261  ;;  %v4360_v41 = vpop.permute.xlu0 %4359 }
 0x42e   : > { %v4460_v60 = vsel %vm2274_vm4, %v4456_v24, %v4262_v63  ;;  %v4485_v44 = vsel %vm2304_vm10, %v4481_v5, %v4360_v41 }
 0x431   : > { %v4266_v52 = vpop.permute.xlu1 %4265  ;;  %v4372_v29 = vpop.permute.xlu0 %4371 }
 0x432   : > { %v4462_v15 = vsel %vm2274_vm4, %v4458_v27, %v4266_v52  ;;  %v4487_v46 = vsel %vm2309_vm11, %v4483_v1, %v4372_v29 }
 0x435   : > { %v4278_v58 = vpop.permute.xlu1 %4277  ;;  %v4376_v6 = vpop.permute.xlu0 %4375 }
 0x436   : > { %v4464_v47 = vsel %vm2279_vm5, %v4460_v60, %v4278_v58  ;;  %v4489_v0 = vsel %vm2309_vm11, %v4485_v44, %v4376_v6 }
 0x439   : > { %v4282_v57 = vpop.permute.xlu1 %4281  ;;  %v4388_v39 = vpop.permute.xlu0 %4387 }
 0x43a   : > { %v4466_v13 = vsel %vm2279_vm5, %v4462_v15, %v4282_v57  ;;  %v4491_v33 = vsel %vm2314_vm12, %v4487_v46, %v4388_v39 }
 0x43d   : > { %v4294_v9 = vpop.permute.xlu1 %4293  ;;  %v4392_v22 = vpop.permute.xlu0 %4391 }
 0x43e   : > { %v4493_v8 = vsel %vm2314_vm12, %v4489_v0, %v4392_v22  ;;  %v4468_v56 = vsel %vm2284_vm6, %v4464_v47, %v4294_v9 }
 0x441   : > { %v4298_v35 = vpop.permute.xlu1 %4297  ;;  %v4404_v30 = vpop.permute.xlu0 %4403 }
 0x442   : > { %v4495_v53 = vsel %vm2319_vm13, %v4491_v33, %v4404_v30  ;;  %v4470_v38 = vsel %vm2284_vm6, %v4466_v13, %v4298_v35 }
 0x445   : > { %v4310_v31 = vpop.permute.xlu1 %4309  ;;  %v4408_v20 = vpop.permute.xlu0 %4407 }
 0x446   : > { %v4497_v17 = vsel %vm2319_vm13, %v4493_v8, %v4408_v20  ;;  %v4472_v34 = vsel %vm2289_vm7, %v4468_v56, %v4310_v31 }
 0x449   : > { %v4314_v28 = vpop.permute.xlu1 %4313  ;;  %v4420_v49 = vpop.permute.xlu0 %4419 }
 0x44a   : > { %v4499_v32 = vsel %vm2324_vm14, %v4495_v53, %v4420_v49  ;;  %v4474_v2 = vsel %vm2289_vm7, %v4470_v38, %v4314_v28 }
 0x44d   : > { %v4326_v62 = vpop.permute.xlu1 %4325  ;;  %v4424_v12 = vpop.permute.xlu0 %4423 }
 0x44e   : > { %v4501_v37 = vsel %vm2324_vm14, %v4497_v17, %v4424_v12  ;;  %v4476_v21 = vsel %vm2294_vm8, %v4472_v34, %v4326_v62 }
 0x451   : > { %v4330_v26 = vpop.permute.xlu1 %4329  ;;  %v4436_v50 = vpop.permute.xlu0 %4435 }
 0x452   : > { %v4503_v3 = vsel %vm2329_vm15, %v4499_v32, %v4436_v50  ;;  %v4478_v60 = vsel %vm2294_vm8, %v4474_v2, %v4330_v26 }
 0x453   : > { %4674 = vst [vmem:[%s6296_s29 + $0x1] ss:$2 sm:$0xff] %v4503_v3 }
 0x455   : > { %v4342_v11 = vpop.permute.xlu1 %4341  ;;  %v4440_v43 = vpop.permute.xlu0 %4439 }
 0x456   : > { %v4505_v54 = vsel %vm2329_vm15, %v4501_v37, %v4440_v43  ;;  %v4480_v24 = vsel %vm2299_vm9, %v4476_v21, %v4342_v11 }
 0x457   : > { %4676 = vst [vmem:[%s6296_s29 + $0x21] ss:$2 sm:$0xff] %v4505_v54 }
 0x459   : > { %v4346_v42 = vpop.permute.xlu1 %4345 }
 0x45a   : > { %v4482_v52 = vsel %vm2299_vm9, %v4478_v60, %v4346_v42 }
 0x45d   : > { %v4358_v45 = vpop.permute.xlu1 %4357 }
 0x45e   : > { %v4484_v14 = vsel %vm2304_vm10, %v4480_v24, %v4358_v45 }
 0x461   : > { %v4362_v4 = vpop.permute.xlu1 %4361 }
 0x462   : > { %v4486_v29 = vsel %vm2304_vm10, %v4482_v52, %v4362_v4 }
 0x465   : > { %v4374_v10 = vpop.permute.xlu1 %4373 }
 0x466   : > { %v4488_v63 = vsel %vm2309_vm11, %v4484_v14, %v4374_v10 }
 0x469   : > { %v4378_v23 = vpop.permute.xlu1 %4377 }
 0x46a   : > { %v4490_v6 = vsel %vm2309_vm11, %v4486_v29, %v4378_v23 }
 0x46d   : > { %v4390_v18 = vpop.permute.xlu1 %4389 }
 0x46e   : > { %v4492_v41 = vsel %vm2314_vm12, %v4488_v63, %v4390_v18 }
 0x471   : > { %v4394_v40 = vpop.permute.xlu1 %4393 }
 0x472   : > { %v4494_v13 = vsel %vm2314_vm12, %v4490_v6, %v4394_v40 }
 0x475   : > { %v4406_v19 = vpop.permute.xlu1 %4405 }
 0x476   : > { %v4496_v15 = vsel %vm2319_vm13, %v4492_v41, %v4406_v19 }
 0x479   : > { %v4410_v55 = vpop.permute.xlu1 %4409 }
 0x47a   : > { %v4498_v39 = vsel %vm2319_vm13, %v4494_v13, %v4410_v55 }
 0x47d   : > { %v4422_v36 = vpop.permute.xlu1 %4421 }
 0x47e   : > { %v4500_v58 = vsel %vm2324_vm14, %v4496_v15, %v4422_v36 }
 0x481   : > { %v4426_v27 = vpop.permute.xlu1 %4425 }
 0x482   : > { %v4502_v9 = vsel %vm2324_vm14, %v4498_v39, %v4426_v27 }
 0x485   : > { %v4438_v47 = vpop.permute.xlu1 %4437 }
 0x486   : > { %v4504_v57 = vsel %vm2329_vm15, %v4500_v58, %v4438_v47 }
 0x487   : > { %4675 = vst [vmem:[%s6296_s29 + $0x11] ss:$2 sm:$0xff] %v4504_v57 }
 0x489   : > { %v4442_v22 = vpop.permute.xlu1 %4441 }
 0x48a   : > { %v4506_v35 = vsel %vm2329_vm15, %v4502_v9, %v4442_v22 }
 0x48b   : > { %4677 = vst [vmem:[%s6296_s29 + $0x31] ss:$2 sm:$0xff] %v4506_v35 }
 0x48c   : > { %s4679_s18 = sshll.u32 %s4879_s9, 1  ;;  %s4680_s19 = sshll.u32 %s4883_s10, 4 }
 0x48d   : > { %s4528_s26 = sadd.s32 %s4680_s19, %s4679_s18  ;;  %s4547_s2 = sshll.u32 %s6296_s29, 4  ;;  %s4548_s2 = int_to_ptr.vmem [resolvable:$true] %s4547_s2 }
 0x48e   : > { %s4681_s4 = sshll.u32 %s4528_s26, 7  ;;  %s4918_s23 = smov 256  }
 0x48f   : > { %s4530_s24 = scalar_lea.hbm %s7475_s1, %s4681_s4  ;;  %p7793_p8 = scmp.ne.s32.totalorder %s7541_s22, 0 }
 0x490   : > { %s4919_s20 = smov 512   ;;  %s4920_s28 = smov 2  }
 0x491   : > { %4686 = sst [smem:[#allocation7]] (%p7793_p8), %s4918_s23  ;;  %s4921_s9 = smov 128  }
 0x492   : > { %4687 = sst [smem:[#allocation7 + $0x1]] (%p7793_p8), %s4919_s20  ;;  %s4922_s10 = smov 8  }
 0x493   : > { %4688 = sst [smem:[#allocation7 + $0x2]] (%p7793_p8), %s4920_s28  ;;  %s4923_s29 = smov [#allocation6]  }
 0x494   : > { %4689 = sst [smem:[#allocation7 + $0x3]] (%p7793_p8), %s4921_s9  ;;  %s4924_s30 = smov 0  }
 0x495   : > { %4690 = sst [smem:[#allocation7 + $0x4]] (%p7793_p8), %s4921_s9 }
 0x496   : > { %4691 = sst [smem:[#allocation7 + $0x5]] (%p7793_p8), %s4922_s10 }
 0x497   : > { %4692 = dma.general (%p7793_p8), %s4548_s2, 1024, %s4530_s24, %s4516_s15, %s4923_s29, [#allocation7], %s4924_s30, 0  }
 0x498 PF: > { %p4703_p9 = scmp.ge.s32.totalorder %s4895_s13, 2  ;;  %s4575_s21 = sand.u32 1, %s4867_s6  }
 0x499   : > { %p7794_p12 = scmp.ne.s32.totalorder %s7542_s25, 0  ;;  %s4576_s3 = scalar_lea.sflag [#allocation4], %s4575_s21 }
 0x49b   : > { %p4699_p0 = pnand %p4703_p9, %p7794_p12 }
 0x49d   : > { %4862 = dma.done.wait (!%p4699_p0), %s4576_s3, 1024  }
 0x49e   : > { %4864 = vsyncadd (!%p4699_p0), %s4576_s3, 4294966272  ;;  %s17_s13 = sadd.s32 1, %s4895_s13   ;;  %s7795_s6 = smov %s4871_s7 }
 0x49f   : > { %p14_p11 = scmp.ge.s32.totalorder %s17_s13, 6   ;;  %s7796_s7 = smov %s4875_s8 }
 0x4a0   : > { %s7797_s8 = smov %s5013_s27  ;;  %s7798_s9 = smov %s4887_s11 }
 0x4a1   : > { %s7799_s10 = smov %s4891_s12  ;;  %s7800_s11 = smov %s7803_s16 }
 0x4a2   : > { %s7801_s12 = smov %s7807_s17  ;;  %16 = sbr.rel (!%p14_p11) target bundleno = 7 (0x7), region = 84 }
 0x4a9   :  { %4581 = vsyncpa [#allocation3], 1 }
 0x4aa   :  { %4583 = vsyncpa [#allocation3 + $0x1], 1 }
 0x4ab   :  { %4584 = vsyncpa [#allocation4], 1 }
 0x4ac   :  { %4586 = vsyncpa [#allocation4 + $0x1], 1 }

// kernel: tpu_custom_call.1
= control target key start
LH: loop header
LB: loop body
LE: loop exit
PB: predicated region body
PF: predicated region fallthrough
CT: control target
= control target key end

     0   :  { %s1449_s0 = inlined_call_operand.hbm [shape: f32[2,16,32], index: 0, kind: input, shape index: {}]   ;;  %s1450_s1 = inlined_call_operand.hbm [shape: f32[2,16,16,16], index: 1, kind: input, shape index: {}]   ;;  %s1451_s2 = inlined_call_operand.hbm [shape: f32[2,4,32,32], index: 2, kind: output, shape index: {}]  }
   0x1   :  { %1460 = sst [smem:[#allocation13_spill]] %s1449_s0 }
   0x2   :  { %7 = vsyncpa [#allocation3], 0 }
   0x3   :  { %8 = vsyncpa [#allocation6], 0 }
   0x4   :  { %10 = vsyncpa [#allocation6 + $0x1], 0 }
   0x5   :  { %11 = vsyncpa [#allocation4], 0 }
   0x6   :  { %13 = vsyncpa [#allocation4 + $0x1], 0  ;;  %s1180_s9 = smov 0   ;;  %s1182_s10 = smov 0  }
   0x7   :  { %s1184_s11 = smov 0   ;;  %s1186_s12 = smov 0  }
   0x8   :  { %s1188_s13 = smov 0   ;;  %s1190_s14 = smov 0  }
   0x9   :  { %s1192_s15 = smov 0   ;;  %s1194_s16 = smov 0  }
   0xa LB: > { %s773_s17 = sadd.s32 4294967295, %s1151_s16   ;;  %s774_s18 = sadd.s32 4294967294, %s1151_s16   ;;  %s1151_s16 = sphi %s1194_s16, %s19_s16   ;;  %s1147_s15 = sphi %s1192_s15, %s1485_s15   ;;  %s1143_s14 = sphi %s1190_s14, %s1484_s14   ;;  %s1139_s13 = sphi %s1188_s13, %s1483_s13   ;;  %s1135_s12 = sphi %s1186_s12, %s1482_s12   ;;  %s1131_s11 = sphi %s1184_s11, %s1481_s11   ;;  %s1127_s10 = sphi %s1182_s10, %s1480_s10   ;;  %s1123_s9 = sphi %s1180_s9, %s1479_s9  }
   0xb   : > { %p68_p0 = scmp.ne.s32.totalorder %s1131_s11, %s1127_s10  ;;  %p69_p1 = scmp.eq.s32.totalorder %s1151_s16, 0 }
   0xc   : > { %p74_p2 = scmp.ne.s32.totalorder %s1127_s10, %s1123_s9  ;;  %p1228_p3 = scmp.eq.s32.totalorder %s773_s17, 0 }
   0xd   : > { %p100_p4 = scmp.eq.s32.totalorder %s773_s17, 3  ;;  %p1232_p5 = por %p69_p1, %p68_p0 }
   0xe   : > { %s1461_s20 = scalar_select %p1228_p3, 1, 0 }
   0xf   : > { %p106_p6 = scmp.eq.s32.totalorder %s774_s18, 3  ;;  %p1238_p7 = por %p1228_p3, %p74_p2 }
  0x10   : > { %p1242_p8 = por %p100_p4, %p68_p0  ;;  %p775_p10 = scmp.ge.s32.totalorder %s1151_s16, 1 }
  0x11   : > { %s1463_s22 = scalar_select %p1238_p7, 1, 0 }
  0x12   : > { %s1464_s23 = scalar_select %p1242_p8, 1, 0 }
  0x13   : > { %p1246_p9 = por %p106_p6, %p74_p2  ;;  %p113_p11 = scmp.lt.s32.totalorder %s1151_s16, 5 }
  0x14   : > { %s1153_s26 = smov [#allocation2]   ;;  %p941_p0 = scmp.lt.s32.totalorder %s1151_s16, 4 }
  0x15   : > { %s1465_s24 = scalar_select %p1246_p9, 1, 0 }
  0x16   : > { %p1252_p12 = pnand %p775_p10, %p113_p11  ;;  %s125_s27 = sshll.u32 %s1153_s26, 4  ;;  %s126_s27 = int_to_ptr.vmem [resolvable:$true] %s125_s27 }
  0x17   : > { %p1267_p2 = pnand %p941_p0, %p1232_p5  ;;  %s1469_s0 = sld [smem:[#allocation13_spill]] }
  0x18   : > { %s1466_s25 = scalar_select %p1252_p12, 1, 0 }
  0x19   : > { %p928_p13 = pneg %p1252_p12 }
  0x1a   : > { %s1468_s29 = scalar_select %p1267_p2, 1, 0 }
  0x1b   : > { %p1261_p1 = pnand %p928_p13, %p1228_p3 }
  0x1d   : > { %s1019_s4 = scalar_lea.hbm %s1469_s0, 512  ;;  %p1021_p6 = pneg %p1261_p1 }
  0x1e   : > { %p1020_p4 = scmp.ne.s32.totalorder %s1469_s0, %s1019_s4  ;;  %p1026_p13 = scmp.lt.u32.totalorder %s1019_s4, %s1469_s0 }
  0x20   : > { %p1022_p10 = pnand %p1021_p6, %p1020_p4 }
  0x22   : > { %p1023_p11 = pneg %p1022_p10 }
  0x24   : > { %p1028_p5 = pnand %p1026_p13, %p1023_p11 }
  0x26   : > { %1031 = shalt.err (!%p1028_p5)
}
  0x27   : > { %s1032_s17 = scalar_lea.vmem %s126_s27, 512  ;;  %p1040_p7 = scmp.lt.s32.totalorder %s126_s27, %s126_s27 }
  0x28   : > { %p1033_p0 = scmp.ne.s32.totalorder %s126_s27, %s1032_s17  ;;  %p1041_p3 = scmp.lt.s32.totalorder %s1032_s17, %s1032_s17 }
  0x2a   : > { %p1035_p9 = pnand %p1033_p0, %p1021_p6  ;;  %p1042_p12 = por %p1041_p3, %p1040_p7 }
  0x2c   : > { %p1036_p8 = pneg %p1035_p9 }
  0x2e   : > { %p1043_p2 = pnand %p1042_p12, %p1036_p8 }
  0x30   : > { %1046 = shalt.err (!%p1043_p2)
}
  0x31   : > { %s1458_s18 = smov 128   ;;  %s1459_s21 = smov 8  }
  0x32   : > { %931 = dma.hbm_to_vmem [thread:$0]  (!%p1261_p1), %s1469_s0, 512, %s126_s27, [#allocation3], %s1458_s18, %s1458_s18, %s1459_s21  }
  0x33   : > { %s28_s3 = sadd.s32 1, %s1143_s14  ;;  %s31_s4 = sadd.s32 1, %s1147_s15 }
  0x34   : > { %p29_p3 = scmp.ge.s32.totalorder %s28_s3, 2  ;;  %s139_s5 = sand.u32 1, %s1131_s11  }
  0x35   : > { %s779_s6 = sshll.u32 %s1147_s15, 5  ;;  %s778_s28 = sshll.u32 %s139_s5, 7 }
  0x36   : > { %s1487_s3 = smov (%p29_p3, %s28_s3), 0  ;;  %s1489_s4 = smov (!%p29_p3, %s31_s4), %s1147_s15 }
  0x37   : > { %s57_s7 = ssub.s32 %s1143_s14, %s1487_s3  ;;  %p33_p7 = scmp.ge.s32.totalorder %s1489_s4, 2 }
  0x38   : > { %s148_s8 = sadd.s32 %s1143_s14, %s779_s6  ;;  %s143_s17 = scalar_lea.vmem [#allocation5], %s778_s28 }
  0x39   : > { %s1491_s4 = smov (%p33_p7, %s1489_s4), 0  ;;  %s780_s27 = sshll.u32 %s148_s8, 7 }
  0x3a   : > { %s151_s26 = sshll.u32 %s143_s17, 4  ;;  %s56_s30 = ssub.s32 %s1147_s15, %s1491_s4  ;;  %s1311_s26 = int_to_ptr.vmem [resolvable:$true] %s151_s26 }
  0x3b   : > { %s1307_s21 = scalar_lea.hbm %s1450_s1, %s780_s27  ;;  %s1309_s0 = sor.u32 %s57_s7, %s56_s30 }
  0x3c   : > { %p59_p8 = scmp.eq.s32.totalorder %s1309_s0, 0  ;;  %s1314_s6 = scalar_lea.sflag [#allocation6], %s139_s5 }
  0x3d   : > { %s1047_s28 = scalar_lea.hbm %s1307_s21, 2048  ;;  %p1470_p12 = scmp.ne.s32.totalorder %s1468_s29, 0 }
  0x3e   : > { %p1048_p9 = scmp.ne.s32.totalorder %s1307_s21, %s1047_s28  ;;  %s1052_s8 = scalar_lea.hbm %s1450_s1, 8192 }
  0x3f   : > { %p1049_p1 = pneg %p1470_p12  ;;  %p1053_p6 = scmp.lt.u32.totalorder %s1307_s21, %s1450_s1 }
  0x40   : > { %p1054_p10 = scmp.lt.u32.totalorder %s1052_s8, %s1047_s28  ;;  %p1056_p13 = scmp.lt.u32.totalorder %s1047_s28, %s1307_s21 }
  0x41   : > { %p1050_p2 = pnand %p1049_p1, %p1048_p9 }
  0x42   : > { %p1055_p11 = por %p1054_p10, %p1053_p6 }
  0x43   : > { %p1051_p4 = pneg %p1050_p2 }
  0x44   : > { %p1057_p5 = por %p1056_p13, %p1055_p11 }
  0x46   : > { %p1058_p0 = pnand %p1057_p5, %p1051_p4 }
  0x48   : > { %1061 = shalt.err (!%p1058_p0)
}
  0x49   : > { %s1062_s5 = scalar_lea.vmem %s1311_s26, 2048  ;;  %s1156_s17 = smov [#allocation5]  }
  0x4a   : > { %p1063_p3 = scmp.ne.s32.totalorder %s1311_s26, %s1062_s5  ;;  %s1067_s30 = sshll.u32 %s1156_s17, 4  ;;  %s1068_s30 = int_to_ptr.vmem [resolvable:$false] %s1067_s30 }
  0x4b   : > { %s1069_s19 = scalar_lea.vmem %s1068_s30, 4096  ;;  %p1070_p2 = scmp.lt.s32.totalorder %s1311_s26, %s1068_s30 }
  0x4c   : > { %p1065_p7 = pnand %p1063_p3, %p1049_p1  ;;  %p1071_p6 = scmp.lt.s32.totalorder %s1069_s19, %s1062_s5 }
  0x4e   : > { %p1066_p9 = pneg %p1065_p7  ;;  %p1072_p10 = por %p1071_p6, %p1070_p2 }
  0x50   : > { %p1073_p11 = pnand %p1072_p10, %p1066_p9 }
  0x52   : > { %1076 = shalt.err (!%p1073_p11)
}
  0x53   : > { %s1157_s28 = smov 256   ;;  %s1471_s18 = smov 8  }
  0x54   : > { %s1472_s8 = smov 128   ;;  %s1473_s7 = sadd.s32 1, %s1131_s11 }
  0x55   : > { %935 = dma.hbm_to_vmem [thread:$0]  (!%p1470_p12), %s1307_s21, 2048, %s1311_s26, %s1314_s6, %s1157_s28, %s1472_s8, %s1471_s18  }
  0x56   : > { %s1349_s27 = scalar_select %p59_p8, %s1131_s11, %s1473_s7  }
  0x57   : > { %p1474_p1 = scmp.ne.s32.totalorder %s1466_s25, 0 }
  0x58   : > { %p1475_p4 = scmp.ne.s32.totalorder (!%p1474_p1), %s1461_s20, 0 }
  0x59   : > { %163 = sbr.rel (%p1474_p1) target bundleno = 347 (0x15b), region = 28 }
  0x60   : > { %1110 = dma.done.wait (%p1475_p4), [#allocation3], 512  }
  0x61   : > { %1112 = vsyncadd (%p1475_p4), [#allocation3], 4294966784  ;;  %s1358_s29 = sand.u32 1, %s1127_s10   ;;  %p1476_p8 = scmp.ne.s32.totalorder %s1463_s22, 0 }
  0x62   : > { %s783_s21 = sshll.u32 %s1358_s29, 7  ;;  %s170_s26 = scalar_lea.sflag [#allocation6], %s1358_s29 }
  0x63   : > { %s1362_s0 = scalar_lea.vmem [#allocation5], %s783_s21 }
  0x64   : > { %1114 = dma.done.wait (%p1476_p8), %s170_s26, 2048  }
  0x65   : > { %1116 = vsyncadd (%p1476_p8), %s170_s26, 4294965248  ;;  %vm209_vm0 = vcmask 130048   ;;  %v207_v0 = vld [vmem:[#allocation2 + $0x10] sm:$0xff]  ;;  %v208_v1 = vld [vmem:[#allocation2 + $0x18] sm:$0xff]  ;;  %s784_s20 = sshll.u32 %s1358_s29, 6  ;;  %s628_s25 = scalar_lea.sflag [#allocation4], %s1358_s29 }
  0x66   : > { %v785_v2 = vld [vmem:[%s1362_s0 + $0x20] sm:$0xff]  ;;  %v890_v3 = vpack.c.bf16 %v208_v1, %v207_v0  ;;  %v200_v6 = vld [vmem:[#allocation2 + $0x8] sm:$0xff]  ;;  %v787_v10 = vld [vmem:[%s1362_s0 + $0x30] sm:$0xff]  ;;  %s193_s22 = scalar_lea.vmem [#allocation7], %s784_s20 }
  0x67   : > { %854 = vmatprep.mubr.msk.f32.mxu0 %vm209_vm0, %v785_v2  ;;  %v804_v4 = vld [vmem:[%s1362_s0 + $0x60] sm:$0xff]  ;;  %v786_v8 = vld [vmem:[%s1362_s0 + $0x28] sm:$0xff]  ;;  %v806_v11 = vld [vmem:[%s1362_s0 + $0x70] sm:$0xff] }
  0x68   : > { %v199_v5 = vld [vmem:[#allocation2] sm:$0xff]  ;;  %874 = vmatprep.mubr.msk.f32.mxu1 %vm209_vm0, %v804_v4  ;;  %891 = vmatprep.subr.bf16.mxu0 %v890_v3  ;;  %v805_v9 = vld [vmem:[%s1362_s0 + $0x68] sm:$0xff]  ;;  %v788_v12 = vld [vmem:[%s1362_s0 + $0x38] sm:$0xff] }
  0x69   : > { %899 = vmatprep.subr.bf16.mxu1 %v890_v3  ;;  %v894_v7 = vpack.c.bf16 %v200_v6, %v199_v5  ;;  %893 = vmatpush3.bf16.msra.mxu0 %v890_v3  ;;  %v807_v13 = vld [vmem:[%s1362_s0 + $0x78] sm:$0xff]  ;;  %v195_v14 = vld [vmem:[%s1362_s0] sm:$0xff]  ;;  %v196_v16 = vld [vmem:[%s1362_s0 + $0x8] sm:$0xff] }
  0x6a   : > { %901 = vmatpush3.bf16.msra.mxu1 %v890_v3  ;;  %v800_v15 = vld [vmem:[%s1362_s0 + $0x40] sm:$0xff]  ;;  %v801_v17 = vld [vmem:[%s1362_s0 + $0x48] sm:$0xff]  ;;  %v197_v18 = vld [vmem:[%s1362_s0 + $0x10] sm:$0xff] }
  0x6b   : > { %895 = vmatprep.subr.bf16.mxu0 %v894_v7  ;;  %903 = vmatprep.subr.bf16.mxu1 %v894_v7  ;;  %v802_v19 = vld [vmem:[%s1362_s0 + $0x50] sm:$0xff]  ;;  %v198_v20 = vld [vmem:[%s1362_s0 + $0x18] sm:$0xff] }
  0x6c   : > { %855 = vmatmul.mubr.msk.f32.vlgmr.msra.gmra.mrb[0].mxu0 %vm209_vm0, %v786_v8  ;;  %v803_v21 = vld [vmem:[%s1362_s0 + $0x58] sm:$0xff] }
  0x6d   : > { %875 = vmatmul.mubr.msk.f32.vlgmr.msra.gmra.mrb[0].mxu1 %vm209_vm0, %v805_v9  ;;  %897 = vmatpush3.bf16.msra.mxu0 %v894_v7 }
  0x6e   : > { %905 = vmatpush3.bf16.msra.mxu1 %v894_v7  ;;  %857 = vmatprep.mubr.msk.f32.mxu0 %vm209_vm0, %v787_v10 }
  0x6f   : > { %877 = vmatprep.mubr.msk.f32.mxu1 %vm209_vm0, %v806_v11 }
  0x70   : > { %858 = vmatmul.mubr.msk.f32.gmra.mrb[2].mxu0 %vm209_vm0, %v788_v12 }
  0x71   : > { %878 = vmatmul.mubr.msk.f32.gmra.mrb[2].mxu1 %vm209_vm0, %v807_v13  ;;  %864 = vmatprep.mubr.msk.f32.mxu0 %vm209_vm0, %v195_v14 }
  0x72   : > { %884 = vmatprep.mubr.msk.f32.mxu1 %vm209_vm0, %v800_v15 }
  0x74   : > { %865 = vmatmul.mubr.msk.f32.vlgmr.msra.gmra.mrb[0].mxu0 %vm209_vm0, %v196_v16 }
  0x75   : > { %885 = vmatmul.mubr.msk.f32.vlgmr.msra.gmra.mrb[0].mxu1 %vm209_vm0, %v801_v17  ;;  %867 = vmatprep.mubr.msk.f32.mxu0 %vm209_vm0, %v197_v18 }
  0x76   : > { %887 = vmatprep.mubr.msk.f32.mxu1 %vm209_vm0, %v802_v19 }
  0x78   : > { %868 = vmatmul.mubr.msk.f32.gmra.mrb[2].mxu0 %vm209_vm0, %v198_v20 }
  0x79   : > { %888 = vmatmul.mubr.msk.f32.gmra.mrb[2].mxu1 %vm209_vm0, %v803_v21 }
 0x147   : > { %v866_v22 = vpop.f32.mrb[0].mxu0 }
 0x148   : > { %v886_v23 = vpop.f32.mrb[0].mxu1  ;;  %797 = vst [vmem:[%s193_s22 + $0x10] ss:$2 sm:$0xff] %v866_v22  ;;  %v385_v24 = vpop.f32.mrb[1].mxu0 }
 0x149   : > { %817 = vst [vmem:[%s193_s22 + $0x11] ss:$2 sm:$0xff] %v886_v23  ;;  %v600_v25 = vpop.f32.mrb[1].mxu1  ;;  %404 = vst [vmem:[%s193_s22] ss:$2 sm:$0xff] %v385_v24 }
 0x14a   : > { %816 = vst [vmem:[%s193_s22 + $0x1] ss:$2 sm:$0xff] %v600_v25 }
 0x14b   : > { %v869_v26 = vpop.f32.mrb[2].mxu0 }
 0x14c   : > { %v889_v27 = vpop.f32.mrb[2].mxu1  ;;  %799 = vst [vmem:[%s193_s22 + $0x30] ss:$2 sm:$0xff] %v869_v26  ;;  %v395_v28 = vpop.f32.mrb[3].mxu0 }
 0x14d   : > { %819 = vst [vmem:[%s193_s22 + $0x31] ss:$2 sm:$0xff] %v889_v27  ;;  %v610_v29 = vpop.f32.mrb[3].mxu1  ;;  %798 = vst [vmem:[%s193_s22 + $0x20] ss:$2 sm:$0xff] %v395_v28 }
 0x14e   : > { %818 = vst [vmem:[%s193_s22 + $0x21] ss:$2 sm:$0xff] %v610_v29 }
 0x14f   : > { %s821_s6 = sshll.u32 %s1135_s12, 1  ;;  %s822_s5 = sshll.u32 %s1139_s13, 4 }
 0x150   : > { %s640_s17 = sadd.s32 %s822_s5, %s821_s6  ;;  %s659_s30 = sshll.u32 %s193_s22, 4  ;;  %s660_s30 = int_to_ptr.vmem [resolvable:$true] %s659_s30 }
 0x151   : > { %s823_s19 = sshll.u32 %s640_s17, 7  ;;  %s1158_s7 = smov 256  }
 0x152   : > { %s642_s8 = scalar_lea.hbm %s1451_s2, %s823_s19  ;;  %p1477_p12 = scmp.ne.s32.totalorder %s1464_s23, 0 }
 0x153   : > { %s1159_s29 = smov 512   ;;  %s1160_s21 = smov 2  }
 0x154   : > { %920 = sst [smem:[#allocation9]] (%p1477_p12), %s1158_s7  ;;  %s1161_s12 = smov 128  }
 0x155   : > { %921 = sst [smem:[#allocation9 + $0x1]] (%p1477_p12), %s1159_s29  ;;  %s1162_s13 = smov 8  }
 0x156   : > { %922 = sst [smem:[#allocation9 + $0x2]] (%p1477_p12), %s1160_s21  ;;  %s1163_s26 = smov [#allocation8]  }
 0x157   : > { %923 = sst [smem:[#allocation9 + $0x3]] (%p1477_p12), %s1161_s12  ;;  %s1164_s0 = smov 0  }
 0x158   : > { %924 = sst [smem:[#allocation9 + $0x4]] (%p1477_p12), %s1161_s12 }
 0x159   : > { %925 = sst [smem:[#allocation9 + $0x5]] (%p1477_p12), %s1162_s13 }
 0x15a   : > { %926 = dma.general (%p1477_p12), %s660_s30, 1024, %s642_s8, %s628_s25, %s1163_s26, [#allocation9], %s1164_s0, 0  }
 0x15b PF: > { %p943_p13 = scmp.ge.s32.totalorder %s1151_s16, 2  ;;  %s687_s20 = sand.u32 1, %s1123_s9  }
 0x15c   : > { %p1478_p5 = scmp.ne.s32.totalorder %s1465_s24, 0  ;;  %s688_s22 = scalar_lea.sflag [#allocation4], %s687_s20 }
 0x15e   : > { %p937_p0 = pnand %p943_p13, %p1478_p5 }
 0x160   : > { %1118 = dma.done.wait (!%p937_p0), %s688_s22, 1024  }
 0x161   : > { %1120 = vsyncadd (!%p937_p0), %s688_s22, 4294966272  ;;  %s19_s16 = sadd.s32 1, %s1151_s16   ;;  %s1479_s9 = smov %s1127_s10 }
 0x162   : > { %p16_p3 = scmp.ge.s32.totalorder %s19_s16, 6   ;;  %s1480_s10 = smov %s1131_s11 }
 0x163   : > { %s1481_s11 = smov %s1349_s27  ;;  %s1482_s12 = smov %s1143_s14 }
 0x164   : > { %s1483_s13 = smov %s1147_s15  ;;  %s1484_s14 = smov %s1487_s3 }
 0x165   : > { %s1485_s15 = smov %s1491_s4  ;;  %18 = sbr.rel (!%p16_p3) target bundleno = 10 (0xa), region = 94 }
 0x16c   :  { %693 = vsyncpa [#allocation3], 1 }
 0x16d   :  { %695 = vsyncpa [#allocation3 + $0x1], 1 }
 0x16e   :  { %696 = vsyncpa [#allocation6], 1 }
 0x16f   :  { %698 = vsyncpa [#allocation6 + $0x1], 1 }
 0x170   :  { %699 = vsyncpa [#allocation4], 1 }
 0x171   :  { %701 = vsyncpa [#allocation4 + $0x1], 1 }

</bundles_post_ra>
